<compile_context>
chip_gen: v5e
topology: v5e:2x2
jax: 0.10.0
libtpu: 0.0.40
codegen_flags: <defaults>
</compile_context>

<pallas_src>
import functools

import jax
import jax.numpy as jnp
from jax.experimental import pallas as pl
from jax.experimental.pallas import tpu as pltpu


ENC_CFG = [(3, 12), (12, 24), (24, 48), (48, 96)]    # (Cin, Cout), Conv2d k4 s2 p1
DEC_CFG = [(96, 48), (48, 24), (24, 12), (12, 3)]    # (Cin, Cout), ConvT  k4 s2 p1


def _round_up(x, m):
    return ((x + m - 1) // m) * m


# ------------------- fused matmul + bias + activation kernel -----------------

def _matmul_bias_act_kernel(a_ref, b_ref, bias_ref, o_ref, *, act):
    acc = jnp.dot(a_ref[...], b_ref[...], preferred_element_type=jnp.float32)
    acc = acc + bias_ref[...]                      # (1, tn) broadcasts over rows
    if act == "relu":
        acc = jnp.maximum(acc, 0.0)
    elif act == "tanh":
        acc = jnp.tanh(acc)
    o_ref[...] = acc.astype(o_ref.dtype)


def matmul_bias_act(a, w, bias, act, out_dtype):
    """(M, K) bf16 @ (K, Np) bf16 + bias, fused activation.

    K and Np are pre-padded to multiples of 128 (weights padded at init,
    patches padded at build time), so only M may need padding here.
    """
    M, K = a.shape
    K2, Np = w.shape
    assert K == K2 and K % 128 == 0 and Np % 128 == 0
    tm = _round_up(M, 16) if M <= 256 else 256
    Mp = _round_up(M, tm)
    if Mp != M:
        a = jnp.pad(a, ((0, Mp - M), (0, 0)))
    tn = 256 if Np % 256 == 0 else 128
    out = pl.pallas_call(
        functools.partial(_matmul_bias_act_kernel, act=act),
        out_shape=jax.ShapeDtypeStruct((Mp, Np), out_dtype),
        grid=(Mp // tm, Np // tn),
        in_specs=[pl.BlockSpec((tm, K), lambda i, j: (i, 0)),
                  pl.BlockSpec((K, tn), lambda i, j: (0, j)),
                  pl.BlockSpec((1, tn), lambda i, j: (0, j))],
        out_specs=pl.BlockSpec((tm, tn), lambda i, j: (i, j)),
        compiler_params=pltpu.CompilerParams(
            dimension_semantics=("parallel", "parallel")),
    )(a, w, bias)
    return out[:M]


# ----------------------------- conv layers (NHWC) ----------------------------
# TODO(synk): im2col patch extraction / output interleave stay as XLA glue
# (strided slice + concat + reshape); only the matmul+bias+act is a Pallas kernel.

def conv4x4_s2(x, layer, cout, act, out_dtype):
    """NHWC Conv2d(kernel=4, stride=2, padding=1) + bias + act, one pallas_call."""
    n, h, w, c = x.shape
    ho, wo = h // 2, w // 2
    xp = jnp.pad(x.astype(jnp.bfloat16), ((0, 0), (1, 1), (1, 1), (0, 0)))
    cols = [xp[:, di:di + 2 * ho:2, dj:dj + 2 * wo:2, :]
            for di in range(4) for dj in range(4)]
    kp = layer['w'].shape[0]
    if kp > 16 * c:                                 # pad K to the weight's padded K
        cols.append(jnp.zeros((n, ho, wo, kp - 16 * c), jnp.bfloat16))
    patches = jnp.concatenate(cols, axis=-1).reshape(n * ho * wo, kp)
    out = matmul_bias_act(patches, layer['w'], layer['b'], act, out_dtype)
    return out[:, :cout].reshape(n, ho, wo, cout)


def conv_transpose4x4_s2(x, layer, cout, act, out_dtype):
    """NHWC ConvTranspose2d(kernel=4, stride=2, padding=1) via sub-pixel decomposition.

    For output parity (ry, rx), out[2q+ry, 2p+rx] is a 2x2 conv over padded
    input rows {q+ry, q+ry+1} (cols analogous) with kernel row kh = 3+ry-2*dy.
    All 4 parities share a 3x3-tap patch around (q, p), so one matmul with a
    stacked (9*Cin, 4*Cout) weight computes the whole layer.
    """
    n, h, w, c = x.shape
    xp = jnp.pad(x.astype(jnp.bfloat16), ((0, 0), (1, 1), (1, 1), (0, 0)))
    cols = [xp[:, dy:dy + h, dx:dx + w, :] for dy in range(3) for dx in range(3)]
    kp = layer['w'].shape[0]
    if kp > 9 * c:
        cols.append(jnp.zeros((n, h, w, kp - 9 * c), jnp.bfloat16))
    patches = jnp.concatenate(cols, axis=-1).reshape(n * h * w, kp)
    out = matmul_bias_act(patches, layer['w'], layer['b'], act, out_dtype)
    out = out[:, :4 * cout].reshape(n, h, w, 2, 2, cout)     # (.., ry, rx, co)
    return out.transpose(0, 1, 3, 2, 4, 5).reshape(n, 2 * h, 2 * w, cout)


# --------------------------------- forward -----------------------------------

def forward(params, x):
    x = x.transpose(0, 2, 3, 1)                              # NCHW -> NHWC
    for layer, (_, cout) in zip(params['enc'], ENC_CFG):
        x = conv4x4_s2(x, layer, cout, 'relu', jnp.bfloat16)
    n_dec = len(DEC_CFG)
    for i, (layer, (_, cout)) in enumerate(zip(params['dec'], DEC_CFG)):
        last = (i == n_dec - 1)
        x = conv_transpose4x4_s2(x, layer, cout,
                                 'tanh' if last else 'relu',
                                 jnp.float32 if last else jnp.bfloat16)
    return x.transpose(0, 3, 1, 2)                           # NHWC -> NCHW


# -------------------------------- parameters ----------------------------------

def make_params(seed=1):
    """Returns (pallas-ready params, raw PyTorch-layout weights for the reference)."""
    keys = iter(jax.random.split(jax.random.PRNGKey(seed), 64))

    def rnd(*shape, scale=0.1):
        return scale * jax.random.normal(next(keys), shape, dtype=jnp.float32)

    enc, enc_raw = [], []
    for cin, cout in ENC_CFG:
        w = rnd(cout, cin, 4, 4)                   # PyTorch Conv2d layout (O, I, kh, kw)
        b = rnd(cout)
        k, kp, np_ = 16 * cin, _round_up(16 * cin, 128), _round_up(cout, 128)
        wmat = w.transpose(2, 3, 1, 0).reshape(k, cout)      # (kh, kw, ci) x co
        wmat = jnp.zeros((kp, np_), jnp.float32).at[:k, :cout].set(wmat)
        bmat = jnp.zeros((1, np_), jnp.float32).at[0, :cout].set(b)
        enc.append({'w': wmat.astype(jnp.bfloat16), 'b': bmat})
        enc_raw.append((w, b))

    dec, dec_raw = [], []
    for cin, cout in DEC_CFG:
        w = rnd(cin, cout, 4, 4)                   # PyTorch ConvTranspose2d (I, O, kh, kw)
        b = rnd(cout)
        # Stacked sub-pixel weight: tap (dy, dx) in the 3x3 padded window,
        # output parity (ry, rx); contributing taps are dy in {ry, ry+1},
        # dx in {rx, rx+1} with kernel indices kh = 3+ry-2*dy, kw = 3+rx-2*dx.
        wbig = jnp.zeros((9, cin, 4, cout), jnp.float32)
        for ry in range(2):
            for rx in range(2):
                for dy in range(ry, ry + 2):
                    for dx in range(rx, rx + 2):
                        wbig = wbig.at[dy * 3 + dx, :, ry * 2 + rx, :].set(
                            w[:, :, 3 + ry - 2 * dy, 3 + rx - 2 * dx])
        k, nst = 9 * cin, 4 * cout
        kp, np_ = _round_up(k, 128), _round_up(nst, 128)
        wmat = jnp.zeros((kp, np_), jnp.float32).at[:k, :nst].set(wbig.reshape(k, nst))
        bmat = jnp.zeros((1, np_), jnp.float32).at[0, :nst].set(jnp.tile(b, 4))
        dec.append({'w': wmat.astype(jnp.bfloat16), 'b': bmat})
        dec_raw.append((w, b))

    return {'enc': enc, 'dec': dec}, {'enc': enc_raw, 'dec': dec_raw}


# ------------------------- pure-JAX reference (f32) ---------------------------

def reference_forward(raw, x):
    h = x
    for w, b in raw['enc']:
        h = jax.lax.conv_general_dilated(
            h, w, window_strides=(2, 2), padding=[(1, 1), (1, 1)],
            dimension_numbers=('NCHW', 'OIHW', 'NCHW')) + b[None, :, None, None]
        h = jax.nn.relu(h)
    n_dec = len(raw['dec'])
    for i, (w, b) in enumerate(raw['dec']):
        wf = jnp.flip(w, (2, 3)).transpose(1, 0, 2, 3)
        h = jax.lax.conv_general_dilated(
            h, wf, window_strides=(1, 1), padding=[(2, 2), (2, 2)],
            lhs_dilation=(2, 2),
            dimension_numbers=('NCHW', 'OIHW', 'NCHW')) + b[None, :, None, None]
        h = jnp.tanh(h) if i == n_dec - 1 else jax.nn.relu(h)
    return h


if __name__ == "__main__":
    params, raw = make_params()
    x = jax.random.normal(jax.random.PRNGKey(0), (2, 3, 64, 64), dtype=jnp.float32)

    out = jax.jit(forward)(params, x)
    out = jax.block_until_ready(out)

    assert out.shape == (2, 3, 64, 64), out.shape
    assert bool(jnp.all(jnp.isfinite(out)))
    assert bool(jnp.all(jnp.abs(out) <= 1.000001))          # Tanh output range

    ref = reference_forward(raw, x)
    max_err = float(jnp.max(jnp.abs(out - ref)))
    assert max_err < 0.12, f"max |err| vs f32 reference = {max_err}"

    print("KERNEL_OK")
</pallas_src>

<mosaic_0001>
module attributes {stable_mosaic.version = 11 : i64} {
  func.func @_matmul_bias_act_kernel(%arg0: i32, %arg1: i32, %arg2: memref<256x128xbf16, #tpu.memory_space<vmem>>, %arg3: memref<128x128xbf16, #tpu.memory_space<vmem>>, %arg4: memref<1x128xf32, #tpu.memory_space<vmem>>, %arg5: memref<256x128xbf16, #tpu.memory_space<vmem>>) attributes {dimension_semantics = [#tpu.dimension_semantics<parallel>, #tpu.dimension_semantics<parallel>], iteration_bounds = array<i64: 8, 1>, scalar_prefetch = 0 : i64, scratch_operands = 0 : i64, tpu.core_type = #tpu.core_type<tc>, window_params = [{transform_indices = @transform_0, window_bounds = array<i64: 256, 128>}, {transform_indices = @transform_1, window_bounds = array<i64: 128, 128>}, {transform_indices = @transform_2, window_bounds = array<i64: 1, 128>}, {transform_indices = @transform_3, window_bounds = array<i64: 256, 128>}]} {
    %c0 = arith.constant 0 : index
    %c0_0 = arith.constant 0 : index
    %0 = vector.load %arg2[%c0, %c0_0] : memref<256x128xbf16, #tpu.memory_space<vmem>>, vector<256x128xbf16>
    %c0_1 = arith.constant 0 : index
    %c0_2 = arith.constant 0 : index
    %1 = vector.load %arg3[%c0_1, %c0_2] : memref<128x128xbf16, #tpu.memory_space<vmem>>, vector<128x128xbf16>
    %cst = arith.constant dense<0.000000e+00> : vector<256x128xf32>
    %2 = tpu.matmul %0, %1, %cst {dimension_numbers = #tpu.dot_dimension_numbers<[1], [0], [0], [1], [0, 0, 1, 1], [], []>} : vector<256x128xbf16>, vector<128x128xbf16>, vector<256x128xf32> -> vector<256x128xf32>
    %c0_3 = arith.constant 0 : index
    %c0_4 = arith.constant 0 : index
    %3 = vector.load %arg4[%c0_3, %c0_4] : memref<1x128xf32, #tpu.memory_space<vmem>>, vector<1x128xf32>
    %4 = vector.broadcast %3 : vector<1x128xf32> to vector<256x128xf32>
    %5 = arith.addf %2, %4 : vector<256x128xf32>
    %cst_5 = arith.constant 0.000000e+00 : f32
    %6 = vector.broadcast %cst_5 : f32 to vector<256x128xf32>
    %7 = arith.maximumf %5, %6 : vector<256x128xf32>
    %8 = arith.truncf %7 : vector<256x128xf32> to vector<256x128xbf16>
    %c0_6 = arith.constant 0 : index
    %c0_7 = arith.constant 0 : index
    %9 = vector.load %arg5[%c0_6, %c0_7] : memref<256x128xbf16, #tpu.memory_space<vmem>>, vector<256x128xbf16>
    tpu.vector_store %arg5[%c0_6, %c0_7], %8 {strides = array<i32>} : memref<256x128xbf16, #tpu.memory_space<vmem>>, vector<256x128xbf16>,
    return
  }
  func.func @transform_0(%arg0: i32, %arg1: i32) -> (i32, i32) {
    %c0_i32 = arith.constant 0 : i32
    %c0_i32_0 = arith.constant 0 : i32
    return %arg0, %c0_i32 : i32, i32
  }
  func.func @transform_1(%arg0: i32, %arg1: i32) -> (i32, i32) {
    %c0_i32 = arith.constant 0 : i32
    %c0_i32_0 = arith.constant 0 : i32
    return %c0_i32, %arg1 : i32, i32
  }
  func.func @transform_2(%arg0: i32, %arg1: i32) -> (i32, i32) {
    %c0_i32 = arith.constant 0 : i32
    %c0_i32_0 = arith.constant 0 : i32
    return %c0_i32, %arg1 : i32, i32
  }
  func.func @transform_3(%arg0: i32, %arg1: i32) -> (i32, i32) {
    %c0_i32 = arith.constant 0 : i32
    return %arg0, %arg1 : i32, i32
  }
}

module attributes {stable_mosaic.version = 11 : i64} {
  func.func @_matmul_bias_act_kernel(%arg0: i32, %arg1: i32, %arg2: memref<256x256xbf16, #tpu.memory_space<vmem>>, %arg3: memref<256x128xbf16, #tpu.memory_space<vmem>>, %arg4: memref<1x128xf32, #tpu.memory_space<vmem>>, %arg5: memref<256x128xbf16, #tpu.memory_space<vmem>>) attributes {dimension_semantics = [#tpu.dimension_semantics<parallel>, #tpu.dimension_semantics<parallel>], iteration_bounds = array<i64: 2, 1>, scalar_prefetch = 0 : i64, scratch_operands = 0 : i64, tpu.core_type = #tpu.core_type<tc>, window_params = [{transform_indices = @transform_0, window_bounds = array<i64: 256, 256>}, {transform_indices = @transform_1, window_bounds = array<i64: 256, 128>}, {transform_indices = @transform_2, window_bounds = array<i64: 1, 128>}, {transform_indices = @transform_3, window_bounds = array<i64: 256, 128>}]} {
    %c0 = arith.constant 0 : index
    %c0_0 = arith.constant 0 : index
    %0 = vector.load %arg2[%c0, %c0_0] : memref<256x256xbf16, #tpu.memory_space<vmem>>, vector<256x256xbf16>
    %c0_1 = arith.constant 0 : index
    %c0_2 = arith.constant 0 : index
    %1 = vector.load %arg3[%c0_1, %c0_2] : memref<256x128xbf16, #tpu.memory_space<vmem>>, vector<256x128xbf16>
    %cst = arith.constant dense<0.000000e+00> : vector<256x128xf32>
    %2 = tpu.matmul %0, %1, %cst {dimension_numbers = #tpu.dot_dimension_numbers<[1], [0], [0], [1], [0, 0, 1, 1], [], []>} : vector<256x256xbf16>, vector<256x128xbf16>, vector<256x128xf32> -> vector<256x128xf32>
    %c0_3 = arith.constant 0 : index
    %c0_4 = arith.constant 0 : index
    %3 = vector.load %arg4[%c0_3, %c0_4] : memref<1x128xf32, #tpu.memory_space<vmem>>, vector<1x128xf32>
    %4 = vector.broadcast %3 : vector<1x128xf32> to vector<256x128xf32>
    %5 = arith.addf %2, %4 : vector<256x128xf32>
    %cst_5 = arith.constant 0.000000e+00 : f32
    %6 = vector.broadcast %cst_5 : f32 to vector<256x128xf32>
    %7 = arith.maximumf %5, %6 : vector<256x128xf32>
    %8 = arith.truncf %7 : vector<256x128xf32> to vector<256x128xbf16>
    %c0_6 = arith.constant 0 : index
    %c0_7 = arith.constant 0 : index
    %9 = vector.load %arg5[%c0_6, %c0_7] : memref<256x128xbf16, #tpu.memory_space<vmem>>, vector<256x128xbf16>
    tpu.vector_store %arg5[%c0_6, %c0_7], %8 {strides = array<i32>} : memref<256x128xbf16, #tpu.memory_space<vmem>>, vector<256x128xbf16>,
    return
  }
  func.func @transform_0(%arg0: i32, %arg1: i32) -> (i32, i32) {
    %c0_i32 = arith.constant 0 : i32
    %c0_i32_0 = arith.constant 0 : i32
    return %arg0, %c0_i32 : i32, i32
  }
  func.func @transform_1(%arg0: i32, %arg1: i32) -> (i32, i32) {
    %c0_i32 = arith.constant 0 : i32
    %c0_i32_0 = arith.constant 0 : i32
    return %c0_i32, %arg1 : i32, i32
  }
  func.func @transform_2(%arg0: i32, %arg1: i32) -> (i32, i32) {
    %c0_i32 = arith.constant 0 : i32
    %c0_i32_0 = arith.constant 0 : i32
    return %c0_i32, %arg1 : i32, i32
  }
  func.func @transform_3(%arg0: i32, %arg1: i32) -> (i32, i32) {
    %c0_i32 = arith.constant 0 : i32
    return %arg0, %arg1 : i32, i32
  }
}

module attributes {stable_mosaic.version = 11 : i64} {
  func.func @_matmul_bias_act_kernel(%arg0: i32, %arg1: i32, %arg2: memref<128x384xbf16, #tpu.memory_space<vmem>>, %arg3: memref<384x128xbf16, #tpu.memory_space<vmem>>, %arg4: memref<1x128xf32, #tpu.memory_space<vmem>>, %arg5: memref<128x128xbf16, #tpu.memory_space<vmem>>) attributes {dimension_semantics = [#tpu.dimension_semantics<parallel>, #tpu.dimension_semantics<parallel>], iteration_bounds = array<i64: 1, 1>, scalar_prefetch = 0 : i64, scratch_operands = 0 : i64, tpu.core_type = #tpu.core_type<tc>, window_params = [{transform_indices = @transform_0, window_bounds = array<i64: 128, 384>}, {transform_indices = @transform_1, window_bounds = array<i64: 384, 128>}, {transform_indices = @transform_2, window_bounds = array<i64: 1, 128>}, {transform_indices = @transform_3, window_bounds = array<i64: 128, 128>}]} {
    %c0 = arith.constant 0 : index
    %c0_0 = arith.constant 0 : index
    %0 = vector.load %arg2[%c0, %c0_0] : memref<128x384xbf16, #tpu.memory_space<vmem>>, vector<128x384xbf16>
    %c0_1 = arith.constant 0 : index
    %c0_2 = arith.constant 0 : index
    %1 = vector.load %arg3[%c0_1, %c0_2] : memref<384x128xbf16, #tpu.memory_space<vmem>>, vector<384x128xbf16>
    %cst = arith.constant dense<0.000000e+00> : vector<128x128xf32>
    %2 = tpu.matmul %0, %1, %cst {dimension_numbers = #tpu.dot_dimension_numbers<[1], [0], [0], [1], [0, 0, 1, 1], [], []>} : vector<128x384xbf16>, vector<384x128xbf16>, vector<128x128xf32> -> vector<128x128xf32>
    %c0_3 = arith.constant 0 : index
    %c0_4 = arith.constant 0 : index
    %3 = vector.load %arg4[%c0_3, %c0_4] : memref<1x128xf32, #tpu.memory_space<vmem>>, vector<1x128xf32>
    %4 = vector.broadcast %3 : vector<1x128xf32> to vector<128x128xf32>
    %5 = arith.addf %2, %4 : vector<128x128xf32>
    %cst_5 = arith.constant 0.000000e+00 : f32
    %6 = vector.broadcast %cst_5 : f32 to vector<128x128xf32>
    %7 = arith.maximumf %5, %6 : vector<128x128xf32>
    %8 = arith.truncf %7 : vector<128x128xf32> to vector<128x128xbf16>
    %c0_6 = arith.constant 0 : index
    %c0_7 = arith.constant 0 : index
    %9 = vector.load %arg5[%c0_6, %c0_7] : memref<128x128xbf16, #tpu.memory_space<vmem>>, vector<128x128xbf16>
    tpu.vector_store %arg5[%c0_6, %c0_7], %8 {strides = array<i32>} : memref<128x128xbf16, #tpu.memory_space<vmem>>, vector<128x128xbf16>,
    return
  }
  func.func @transform_0(%arg0: i32, %arg1: i32) -> (i32, i32) {
    %c0_i32 = arith.constant 0 : i32
    %c0_i32_0 = arith.constant 0 : i32
    return %arg0, %c0_i32 : i32, i32
  }
  func.func @transform_1(%arg0: i32, %arg1: i32) -> (i32, i32) {
    %c0_i32 = arith.constant 0 : i32
    %c0_i32_0 = arith.constant 0 : i32
    return %c0_i32, %arg1 : i32, i32
  }
  func.func @transform_2(%arg0: i32, %arg1: i32) -> (i32, i32) {
    %c0_i32 = arith.constant 0 : i32
    %c0_i32_0 = arith.constant 0 : i32
    return %c0_i32, %arg1 : i32, i32
  }
  func.func @transform_3(%arg0: i32, %arg1: i32) -> (i32, i32) {
    %c0_i32 = arith.constant 0 : i32
    return %arg0, %arg1 : i32, i32
  }
}

module attributes {stable_mosaic.version = 11 : i64} {
  func.func @_matmul_bias_act_kernel(%arg0: i32, %arg1: i32, %arg2: memref<32x768xbf16, #tpu.memory_space<vmem>>, %arg3: memref<768x128xbf16, #tpu.memory_space<vmem>>, %arg4: memref<1x128xf32, #tpu.memory_space<vmem>>, %arg5: memref<32x128xbf16, #tpu.memory_space<vmem>>) attributes {dimension_semantics = [#tpu.dimension_semantics<parallel>, #tpu.dimension_semantics<parallel>], iteration_bounds = array<i64: 1, 1>, scalar_prefetch = 0 : i64, scratch_operands = 0 : i64, tpu.core_type = #tpu.core_type<tc>, window_params = [{transform_indices = @transform_0, window_bounds = array<i64: 32, 768>}, {transform_indices = @transform_1, window_bounds = array<i64: 768, 128>}, {transform_indices = @transform_2, window_bounds = array<i64: 1, 128>}, {transform_indices = @transform_3, window_bounds = array<i64: 32, 128>}]} {
    %c0 = arith.constant 0 : index
    %c0_0 = arith.constant 0 : index
    %0 = vector.load %arg2[%c0, %c0_0] : memref<32x768xbf16, #tpu.memory_space<vmem>>, vector<32x768xbf16>
    %c0_1 = arith.constant 0 : index
    %c0_2 = arith.constant 0 : index
    %1 = vector.load %arg3[%c0_1, %c0_2] : memref<768x128xbf16, #tpu.memory_space<vmem>>, vector<768x128xbf16>
    %cst = arith.constant dense<0.000000e+00> : vector<32x128xf32>
    %2 = tpu.matmul %0, %1, %cst {dimension_numbers = #tpu.dot_dimension_numbers<[1], [0], [0], [1], [0, 0, 1, 1], [], []>} : vector<32x768xbf16>, vector<768x128xbf16>, vector<32x128xf32> -> vector<32x128xf32>
    %c0_3 = arith.constant 0 : index
    %c0_4 = arith.constant 0 : index
    %3 = vector.load %arg4[%c0_3, %c0_4] : memref<1x128xf32, #tpu.memory_space<vmem>>, vector<1x128xf32>
    %4 = vector.broadcast %3 : vector<1x128xf32> to vector<32x128xf32>
    %5 = arith.addf %2, %4 : vector<32x128xf32>
    %cst_5 = arith.constant 0.000000e+00 : f32
    %6 = vector.broadcast %cst_5 : f32 to vector<32x128xf32>
    %7 = arith.maximumf %5, %6 : vector<32x128xf32>
    %8 = arith.truncf %7 : vector<32x128xf32> to vector<32x128xbf16>
    %c0_6 = arith.constant 0 : index
    %c0_7 = arith.constant 0 : index
    %9 = vector.load %arg5[%c0_6, %c0_7] : memref<32x128xbf16, #tpu.memory_space<vmem>>, vector<32x128xbf16>
    tpu.vector_store %arg5[%c0_6, %c0_7], %8 {strides = array<i32>} : memref<32x128xbf16, #tpu.memory_space<vmem>>, vector<32x128xbf16>,
    return
  }
  func.func @transform_0(%arg0: i32, %arg1: i32) -> (i32, i32) {
    %c0_i32 = arith.constant 0 : i32
    %c0_i32_0 = arith.constant 0 : i32
    return %arg0, %c0_i32 : i32, i32
  }
  func.func @transform_1(%arg0: i32, %arg1: i32) -> (i32, i32) {
    %c0_i32 = arith.constant 0 : i32
    %c0_i32_0 = arith.constant 0 : i32
    return %c0_i32, %arg1 : i32, i32
  }
  func.func @transform_2(%arg0: i32, %arg1: i32) -> (i32, i32) {
    %c0_i32 = arith.constant 0 : i32
    %c0_i32_0 = arith.constant 0 : i32
    return %c0_i32, %arg1 : i32, i32
  }
  func.func @transform_3(%arg0: i32, %arg1: i32) -> (i32, i32) {
    %c0_i32 = arith.constant 0 : i32
    return %arg0, %arg1 : i32, i32
  }
}

module attributes {stable_mosaic.version = 11 : i64} {
  func.func @_matmul_bias_act_kernel(%arg0: i32, %arg1: i32, %arg2: memref<32x896xbf16, #tpu.memory_space<vmem>>, %arg3: memref<896x256xbf16, #tpu.memory_space<vmem>>, %arg4: memref<1x256xf32, #tpu.memory_space<vmem>>, %arg5: memref<32x256xbf16, #tpu.memory_space<vmem>>) attributes {dimension_semantics = [#tpu.dimension_semantics<parallel>, #tpu.dimension_semantics<parallel>], iteration_bounds = array<i64: 1, 1>, scalar_prefetch = 0 : i64, scratch_operands = 0 : i64, tpu.core_type = #tpu.core_type<tc>, window_params = [{transform_indices = @transform_0, window_bounds = array<i64: 32, 896>}, {transform_indices = @transform_1, window_bounds = array<i64: 896, 256>}, {transform_indices = @transform_2, window_bounds = array<i64: 1, 256>}, {transform_indices = @transform_3, window_bounds = array<i64: 32, 256>}]} {
    %c0 = arith.constant 0 : index
    %c0_0 = arith.constant 0 : index
    %0 = vector.load %arg2[%c0, %c0_0] : memref<32x896xbf16, #tpu.memory_space<vmem>>, vector<32x896xbf16>
    %c0_1 = arith.constant 0 : index
    %c0_2 = arith.constant 0 : index
    %1 = vector.load %arg3[%c0_1, %c0_2] : memref<896x256xbf16, #tpu.memory_space<vmem>>, vector<896x256xbf16>
    %cst = arith.constant dense<0.000000e+00> : vector<32x256xf32>
    %2 = tpu.matmul %0, %1, %cst {dimension_numbers = #tpu.dot_dimension_numbers<[1], [0], [0], [1], [0, 0, 1, 1], [], []>} : vector<32x896xbf16>, vector<896x256xbf16>, vector<32x256xf32> -> vector<32x256xf32>
    %c0_3 = arith.constant 0 : index
    %c0_4 = arith.constant 0 : index
    %3 = vector.load %arg4[%c0_3, %c0_4] : memref<1x256xf32, #tpu.memory_space<vmem>>, vector<1x256xf32>
    %4 = vector.broadcast %3 : vector<1x256xf32> to vector<32x256xf32>
    %5 = arith.addf %2, %4 : vector<32x256xf32>
    %cst_5 = arith.constant 0.000000e+00 : f32
    %6 = vector.broadcast %cst_5 : f32 to vector<32x256xf32>
    %7 = arith.maximumf %5, %6 : vector<32x256xf32>
    %8 = arith.truncf %7 : vector<32x256xf32> to vector<32x256xbf16>
    %c0_6 = arith.constant 0 : index
    %c0_7 = arith.constant 0 : index
    %9 = vector.load %arg5[%c0_6, %c0_7] : memref<32x256xbf16, #tpu.memory_space<vmem>>, vector<32x256xbf16>
    tpu.vector_store %arg5[%c0_6, %c0_7], %8 {strides = array<i32>} : memref<32x256xbf16, #tpu.memory_space<vmem>>, vector<32x256xbf16>,
    return
  }
  func.func @transform_0(%arg0: i32, %arg1: i32) -> (i32, i32) {
    %c0_i32 = arith.constant 0 : i32
    %c0_i32_0 = arith.constant 0 : i32
    return %arg0, %c0_i32 : i32, i32
  }
  func.func @transform_1(%arg0: i32, %arg1: i32) -> (i32, i32) {
    %c0_i32 = arith.constant 0 : i32
    %c0_i32_0 = arith.constant 0 : i32
    return %c0_i32, %arg1 : i32, i32
  }
  func.func @transform_2(%arg0: i32, %arg1: i32) -> (i32, i32) {
    %c0_i32 = arith.constant 0 : i32
    %c0_i32_0 = arith.constant 0 : i32
    return %c0_i32, %arg1 : i32, i32
  }
  func.func @transform_3(%arg0: i32, %arg1: i32) -> (i32, i32) {
    %c0_i32 = arith.constant 0 : i32
    return %arg0, %arg1 : i32, i32
  }
}

module attributes {stable_mosaic.version = 11 : i64} {
  func.func @_matmul_bias_act_kernel(%arg0: i32, %arg1: i32, %arg2: memref<128x512xbf16, #tpu.memory_space<vmem>>, %arg3: memref<512x128xbf16, #tpu.memory_space<vmem>>, %arg4: memref<1x128xf32, #tpu.memory_space<vmem>>, %arg5: memref<128x128xbf16, #tpu.memory_space<vmem>>) attributes {dimension_semantics = [#tpu.dimension_semantics<parallel>, #tpu.dimension_semantics<parallel>], iteration_bounds = array<i64: 1, 1>, scalar_prefetch = 0 : i64, scratch_operands = 0 : i64, tpu.core_type = #tpu.core_type<tc>, window_params = [{transform_indices = @transform_0, window_bounds = array<i64: 128, 512>}, {transform_indices = @transform_1, window_bounds = array<i64: 512, 128>}, {transform_indices = @transform_2, window_bounds = array<i64: 1, 128>}, {transform_indices = @transform_3, window_bounds = array<i64: 128, 128>}]} {
    %c0 = arith.constant 0 : index
    %c0_0 = arith.constant 0 : index
    %0 = vector.load %arg2[%c0, %c0_0] : memref<128x512xbf16, #tpu.memory_space<vmem>>, vector<128x512xbf16>
    %c0_1 = arith.constant 0 : index
    %c0_2 = arith.constant 0 : index
    %1 = vector.load %arg3[%c0_1, %c0_2] : memref<512x128xbf16, #tpu.memory_space<vmem>>, vector<512x128xbf16>
    %cst = arith.constant dense<0.000000e+00> : vector<128x128xf32>
    %2 = tpu.matmul %0, %1, %cst {dimension_numbers = #tpu.dot_dimension_numbers<[1], [0], [0], [1], [0, 0, 1, 1], [], []>} : vector<128x512xbf16>, vector<512x128xbf16>, vector<128x128xf32> -> vector<128x128xf32>
    %c0_3 = arith.constant 0 : index
    %c0_4 = arith.constant 0 : index
    %3 = vector.load %arg4[%c0_3, %c0_4] : memref<1x128xf32, #tpu.memory_space<vmem>>, vector<1x128xf32>
    %4 = vector.broadcast %3 : vector<1x128xf32> to vector<128x128xf32>
    %5 = arith.addf %2, %4 : vector<128x128xf32>
    %cst_5 = arith.constant 0.000000e+00 : f32
    %6 = vector.broadcast %cst_5 : f32 to vector<128x128xf32>
    %7 = arith.maximumf %5, %6 : vector<128x128xf32>
    %8 = arith.truncf %7 : vector<128x128xf32> to vector<128x128xbf16>
    %c0_6 = arith.constant 0 : index
    %c0_7 = arith.constant 0 : index
    %9 = vector.load %arg5[%c0_6, %c0_7] : memref<128x128xbf16, #tpu.memory_space<vmem>>, vector<128x128xbf16>
    tpu.vector_store %arg5[%c0_6, %c0_7], %8 {strides = array<i32>} : memref<128x128xbf16, #tpu.memory_space<vmem>>, vector<128x128xbf16>,
    return
  }
  func.func @transform_0(%arg0: i32, %arg1: i32) -> (i32, i32) {
    %c0_i32 = arith.constant 0 : i32
    %c0_i32_0 = arith.constant 0 : i32
    return %arg0, %c0_i32 : i32, i32
  }
  func.func @transform_1(%arg0: i32, %arg1: i32) -> (i32, i32) {
    %c0_i32 = arith.constant 0 : i32
    %c0_i32_0 = arith.constant 0 : i32
    return %c0_i32, %arg1 : i32, i32
  }
  func.func @transform_2(%arg0: i32, %arg1: i32) -> (i32, i32) {
    %c0_i32 = arith.constant 0 : i32
    %c0_i32_0 = arith.constant 0 : i32
    return %c0_i32, %arg1 : i32, i32
  }
  func.func @transform_3(%arg0: i32, %arg1: i32) -> (i32, i32) {
    %c0_i32 = arith.constant 0 : i32
    return %arg0, %arg1 : i32, i32
  }
}

module attributes {stable_mosaic.version = 11 : i64} {
  func.func @_matmul_bias_act_kernel(%arg0: i32, %arg1: i32, %arg2: memref<256x128xbf16, #tpu.memory_space<vmem>>, %arg3: memref<128x128xbf16, #tpu.memory_space<vmem>>, %arg4: memref<1x128xf32, #tpu.memory_space<vmem>>, %arg5: memref<256x128xf32, #tpu.memory_space<vmem>>) attributes {dimension_semantics = [#tpu.dimension_semantics<parallel>, #tpu.dimension_semantics<parallel>], iteration_bounds = array<i64: 8, 1>, scalar_prefetch = 0 : i64, scratch_operands = 0 : i64, tpu.core_type = #tpu.core_type<tc>, window_params = [{transform_indices = @transform_0, window_bounds = array<i64: 256, 128>}, {transform_indices = @transform_1, window_bounds = array<i64: 128, 128>}, {transform_indices = @transform_2, window_bounds = array<i64: 1, 128>}, {transform_indices = @transform_3, window_bounds = array<i64: 256, 128>}]} {
    %c0 = arith.constant 0 : index
    %c0_0 = arith.constant 0 : index
    %0 = vector.load %arg2[%c0, %c0_0] : memref<256x128xbf16, #tpu.memory_space<vmem>>, vector<256x128xbf16>
    %c0_1 = arith.constant 0 : index
    %c0_2 = arith.constant 0 : index
    %1 = vector.load %arg3[%c0_1, %c0_2] : memref<128x128xbf16, #tpu.memory_space<vmem>>, vector<128x128xbf16>
    %cst = arith.constant dense<0.000000e+00> : vector<256x128xf32>
    %2 = tpu.matmul %0, %1, %cst {dimension_numbers = #tpu.dot_dimension_numbers<[1], [0], [0], [1], [0, 0, 1, 1], [], []>} : vector<256x128xbf16>, vector<128x128xbf16>, vector<256x128xf32> -> vector<256x128xf32>
    %c0_3 = arith.constant 0 : index
    %c0_4 = arith.constant 0 : index
    %3 = vector.load %arg4[%c0_3, %c0_4] : memref<1x128xf32, #tpu.memory_space<vmem>>, vector<1x128xf32>
    %4 = vector.broadcast %3 : vector<1x128xf32> to vector<256x128xf32>
    %5 = arith.addf %2, %4 : vector<256x128xf32>
    %6 = math.tanh %5 : vector<256x128xf32>
    %c0_5 = arith.constant 0 : index
    %c0_6 = arith.constant 0 : index
    %7 = vector.load %arg5[%c0_5, %c0_6] : memref<256x128xf32, #tpu.memory_space<vmem>>, vector<256x128xf32>
    tpu.vector_store %arg5[%c0_5, %c0_6], %6 {strides = array<i32>} : memref<256x128xf32, #tpu.memory_space<vmem>>, vector<256x128xf32>,
    return
  }
  func.func @transform_0(%arg0: i32, %arg1: i32) -> (i32, i32) {
    %c0_i32 = arith.constant 0 : i32
    %c0_i32_0 = arith.constant 0 : i32
    return %arg0, %c0_i32 : i32, i32
  }
  func.func @transform_1(%arg0: i32, %arg1: i32) -> (i32, i32) {
    %c0_i32 = arith.constant 0 : i32
    %c0_i32_0 = arith.constant 0 : i32
    return %c0_i32, %arg1 : i32, i32
  }
  func.func @transform_2(%arg0: i32, %arg1: i32) -> (i32, i32) {
    %c0_i32 = arith.constant 0 : i32
    %c0_i32_0 = arith.constant 0 : i32
    return %c0_i32, %arg1 : i32, i32
  }
  func.func @transform_3(%arg0: i32, %arg1: i32) -> (i32, i32) {
    %c0_i32 = arith.constant 0 : i32
    return %arg0, %arg1 : i32, i32
  }
}

</mosaic_0001>

<bundles_post_ra>
// kernel: forward.8
= control target key start
LH: loop header
LB: loop body
LE: loop exit
PB: predicated region body
PF: predicated region fallthrough
CT: control target
= control target key end

     0   :  { %s1029_s12 = smov 0   ;;  %s1031_s13 = smov 0   ;;  %s1169_s0 = inlined_call_operand.vmem [shape: bf16[2048,128], index: 0, kind: input, shape index: {}]   ;;  %s1170_s1 = inlined_call_operand.vmem [shape: bf16[128,128], index: 1, kind: input, shape index: {}]   ;;  %s1171_s2 = inlined_call_operand.vmem [shape: f32[1,128], index: 2, kind: input, shape index: {}]   ;;  %s1172_s3 = inlined_call_operand.vmem [shape: bf16[2048,128], index: 3, kind: output, shape index: {}]  }
   0x1   :  { %s1033_s14 = smov 0  }
   0x2 LB: > { %s25_s15 = sadd.s32 1, %s1003_s13  ;;  %p714_p0 = scmp.ge.s32.totalorder %s1007_s14, 1  ;;  %s1007_s14 = sphi %s1033_s14, %s13_s14   ;;  %s1003_s13 = sphi %s1031_s13, %s1174_s13   ;;  %s999_s12 = sphi %s1029_s12, %s1173_s12  }
   0x3   : > { %p27_p1 = scmp.ge.s32.totalorder %s25_s15, 8  ;;  %p169_p2 = scmp.lt.s32.totalorder %s1007_s14, 9 }
   0x5   : > { %s1176_s15 = smov (%p27_p1, %s25_s15), 0  ;;  %p170_p3 = pnand %p714_p0, %p169_p2 }
   0x6   : > { %s715_s24 = sshll.u32 (!%p170_p3), %s999_s12, 5 }
   0x7   : > { %173 = sbr.rel (%p170_p3) target bundleno = 241 (0xf1), region = 32  ;;  %p204_p4 = scmp.lt.s32.totalorder (!%p170_p3), %s715_s24, 255 }
   0xc   : > { %v840_v0 = vld [vmem:[%s1170_s1 + $0x38] sm:$0xff]  ;;  %v839_v1 = vld [vmem:[%s1170_s1 + $0x30] sm:$0xff]  ;;  %v838_v2 = vld [vmem:[%s1170_s1 + $0x28] sm:$0xff]  ;;  %s1178_s24 = smov (!%p204_p4, %s715_s24), 255 }
   0xd   : > { %421 = vmatpush.bf16.msra.mxu0 %v840_v0  ;;  %936 = vmatpush.bf16.msra.mxu1 %v840_v0  ;;  %v837_v3 = vld [vmem:[%s1170_s1 + $0x20] sm:$0xff]  ;;  %v836_v4 = vld [vmem:[%s1170_s1 + $0x18] sm:$0xff]  ;;  %v835_v5 = vld [vmem:[%s1170_s1 + $0x10] sm:$0xff]  ;;  %s716_s4 = sshll.u32 %s1178_s24, 2 }
   0xe   : > { %937 = vmatpush.bf16.msra.mxu2 %v840_v0  ;;  %938 = vmatpush.bf16.msra.mxu3 %v840_v0  ;;  %v834_v6 = vld [vmem:[%s1170_s1 + $0x8] sm:$0xff]  ;;  %v833_v7 = vld [vmem:[%s1170_s1] sm:$0xff]  ;;  %s1082_s9 = scalar_lea.vmem %s1169_s0, %s716_s4  ;;  %s1114_s17 = scalar_lea.vmem %s1172_s3, %s716_s4 }
   0xf   : > { %v817_v8 = vld [vmem:[%s1082_s9] sm:$0xff]  ;;  %v818_v12 = vld [vmem:[%s1082_s9 + $0x8] sm:$0xff]  ;;  %v819_v16 = vld [vmem:[%s1082_s9 + $0x10] sm:$0xff] }
  0x10   : > { %v821_v9 = vld [vmem:[%s1082_s9 + $0x20] sm:$0xff]  ;;  %v822_v13 = vld [vmem:[%s1082_s9 + $0x28] sm:$0xff]  ;;  %v823_v17 = vld [vmem:[%s1082_s9 + $0x30] sm:$0xff] }
  0x11   : > { %422 = vmatpush.bf16.msra.mxu0 %v839_v1  ;;  %939 = vmatpush.bf16.msra.mxu1 %v839_v1  ;;  %v825_v10 = vld [vmem:[%s1082_s9 + $0x40] sm:$0xff]  ;;  %v826_v14 = vld [vmem:[%s1082_s9 + $0x48] sm:$0xff]  ;;  %v827_v18 = vld [vmem:[%s1082_s9 + $0x50] sm:$0xff] }
  0x12   : > { %940 = vmatpush.bf16.msra.mxu2 %v839_v1  ;;  %941 = vmatpush.bf16.msra.mxu3 %v839_v1  ;;  %v829_v11 = vld [vmem:[%s1082_s9 + $0x60] sm:$0xff]  ;;  %v830_v15 = vld [vmem:[%s1082_s9 + $0x68] sm:$0xff]  ;;  %v831_v19 = vld [vmem:[%s1082_s9 + $0x70] sm:$0xff] }
  0x13   : > { %v820_v20 = vld [vmem:[%s1082_s9 + $0x18] sm:$0xff]  ;;  %v1103_v26 = vld [vmem:[%s1171_s2] ss:$0 sm:$0xff] }
  0x14   : > { %v824_v21 = vld [vmem:[%s1082_s9 + $0x38] sm:$0xff] }
  0x15   : > { %423 = vmatpush.bf16.msra.mxu0 %v838_v2  ;;  %942 = vmatpush.bf16.msra.mxu1 %v838_v2  ;;  %v828_v22 = vld [vmem:[%s1082_s9 + $0x58] sm:$0xff] }
  0x16   : > { %943 = vmatpush.bf16.msra.mxu2 %v838_v2  ;;  %944 = vmatpush.bf16.msra.mxu3 %v838_v2  ;;  %v832_v23 = vld [vmem:[%s1082_s9 + $0x78] sm:$0xff] }
  0x19   : > { %424 = vmatpush.bf16.msra.mxu0 %v837_v3  ;;  %945 = vmatpush.bf16.msra.mxu1 %v837_v3 }
  0x1a   : > { %946 = vmatpush.bf16.msra.mxu2 %v837_v3  ;;  %947 = vmatpush.bf16.msra.mxu3 %v837_v3 }
  0x1d   : > { %425 = vmatpush.bf16.msra.mxu0 %v836_v4  ;;  %948 = vmatpush.bf16.msra.mxu1 %v836_v4 }
  0x1e   : > { %949 = vmatpush.bf16.msra.mxu2 %v836_v4  ;;  %950 = vmatpush.bf16.msra.mxu3 %v836_v4 }
  0x21   : > { %426 = vmatpush.bf16.msra.mxu0 %v835_v5  ;;  %951 = vmatpush.bf16.msra.mxu1 %v835_v5 }
  0x22   : > { %952 = vmatpush.bf16.msra.mxu2 %v835_v5  ;;  %953 = vmatpush.bf16.msra.mxu3 %v835_v5 }
  0x25   : > { %427 = vmatpush.bf16.msra.mxu0 %v834_v6  ;;  %954 = vmatpush.bf16.msra.mxu1 %v834_v6 }
  0x26   : > { %955 = vmatpush.bf16.msra.mxu2 %v834_v6  ;;  %956 = vmatpush.bf16.msra.mxu3 %v834_v6 }
  0x29   : > { %428 = vmatpush.bf16.msra.mxu0 %v833_v7  ;;  %957 = vmatpush.bf16.msra.mxu1 %v833_v7 }
  0x2a   : > { %958 = vmatpush.bf16.msra.mxu2 %v833_v7  ;;  %959 = vmatpush.bf16.msra.mxu3 %v833_v7 }
  0x2c   : > { %429 = vmatmul.bf16.vlgmr.msra.gmra.mxu0 %v817_v8  ;;  %449 = vmatmul.bf16.vlgmr.msra.gmra.mxu1 %v821_v9 }
  0x2d   : > { %469 = vmatmul.bf16.vlgmr.msra.gmra.mxu2 %v825_v10  ;;  %489 = vmatmul.bf16.vlgmr.msra.gmra.mxu3 %v829_v11 }
  0x3c   : > { %434 = vmatmul.bf16.gmra.mxu0 %v818_v12  ;;  %454 = vmatmul.bf16.gmra.mxu1 %v822_v13 }
  0x3d   : > { %474 = vmatmul.bf16.gmra.mxu2 %v826_v14  ;;  %494 = vmatmul.bf16.gmra.mxu3 %v830_v15 }
  0x4c   : > { %439 = vmatmul.bf16.gmra.mxu0 %v819_v16  ;;  %459 = vmatmul.bf16.gmra.mxu1 %v823_v17 }
  0x4d   : > { %479 = vmatmul.bf16.gmra.mxu2 %v827_v18  ;;  %499 = vmatmul.bf16.gmra.mxu3 %v831_v19 }
  0x5c   : > { %444 = vmatmul.bf16.gmra.mxu0 %v820_v20  ;;  %464 = vmatmul.bf16.gmra.mxu1 %v824_v21 }
  0x5d   : > { %484 = vmatmul.bf16.gmra.mxu2 %v828_v22  ;;  %504 = vmatmul.bf16.gmra.mxu3 %v832_v23 }
  0xa9   : > { %v430_v24 = vpop.f32.mrf.mxu0  ;;  %v450_v25 = vpop.f32.mrf.mxu1 }
  0xaa   : > { %v431_v27 = vadd.f32 %v1103_v26, %v430_v24  ;;  %v451_v28 = vadd.f32 %v1103_v26, %v450_v25 }
  0xac   : > { %v510_v35 = vmax.f32 %v431_v27, 0.0  ;;  %v518_v36 = vmax.f32 %v451_v28, 0.0 }
  0xb0   : > { %v470_v29 = vpop.f32.mrf.mxu2  ;;  %v490_v30 = vpop.f32.mrf.mxu3 }
  0xb1   : > { %v432_v31 = vpop.f32.mrf.mxu0  ;;  %v452_v32 = vpop.f32.mrf.mxu1  ;;  %v471_v41 = vadd.f32 %v1103_v26, %v470_v29  ;;  %v491_v42 = vadd.f32 %v1103_v26, %v490_v30 }
  0xb2   : > { %v433_v33 = vadd.f32 %v1103_v26, %v432_v31  ;;  %v453_v34 = vadd.f32 %v1103_v26, %v452_v32 }
  0xb3   : > { %v526_v49 = vmax.f32 %v471_v41, 0.0  ;;  %v534_v50 = vmax.f32 %v491_v42, 0.0 }
  0xb4   : > { %v511_v37 = vmax.f32 %v433_v33, 0.0  ;;  %v519_v38 = vmax.f32 %v453_v34, 0.0 }
  0xb6   : > { %v844_v39 = vpack.c.bf16 %v511_v37, %v510_v35  ;;  %v864_v40 = vpack.c.bf16 %v519_v38, %v518_v36 }
  0xb8   : > { %845 = vst [vmem:[%s1114_s17] sm:$0xff] %v844_v39   ;;  %v472_v43 = vpop.f32.mrf.mxu2  ;;  %v492_v44 = vpop.f32.mrf.mxu3 }
  0xb9   : > { %924 = vst [vmem:[%s1114_s17 + $0x20] sm:$0xff] %v864_v40   ;;  %v473_v45 = vadd.f32 %v1103_v26, %v472_v43  ;;  %v493_v46 = vadd.f32 %v1103_v26, %v492_v44  ;;  %v435_v47 = vpop.f32.mrf.mxu0  ;;  %v455_v48 = vpop.f32.mrf.mxu1 }
  0xba   : > { %v436_v55 = vadd.f32 %v1103_v26, %v435_v47  ;;  %v456_v56 = vadd.f32 %v1103_v26, %v455_v48 }
  0xbb   : > { %v527_v51 = vmax.f32 %v473_v45, 0.0  ;;  %v535_v52 = vmax.f32 %v493_v46, 0.0 }
  0xbc   : > { %v512_v63 = vmax.f32 %v436_v55, 0.0  ;;  %v520_v0 = vmax.f32 %v456_v56, 0.0 }
  0xbd   : > { %v884_v53 = vpack.c.bf16 %v527_v51, %v526_v49  ;;  %v904_v54 = vpack.c.bf16 %v535_v52, %v534_v50 }
  0xbf   : > { %928 = vst [vmem:[%s1114_s17 + $0x40] sm:$0xff] %v884_v53  }
  0xc0   : > { %932 = vst [vmem:[%s1114_s17 + $0x60] sm:$0xff] %v904_v54   ;;  %v475_v57 = vpop.f32.mrf.mxu2  ;;  %v495_v58 = vpop.f32.mrf.mxu3 }
  0xc1   : > { %v437_v59 = vpop.f32.mrf.mxu0  ;;  %v457_v60 = vpop.f32.mrf.mxu1  ;;  %v476_v5 = vadd.f32 %v1103_v26, %v475_v57  ;;  %v496_v6 = vadd.f32 %v1103_v26, %v495_v58 }
  0xc2   : > { %v438_v61 = vadd.f32 %v1103_v26, %v437_v59  ;;  %v458_v62 = vadd.f32 %v1103_v26, %v457_v60 }
  0xc3   : > { %v528_v13 = vmax.f32 %v476_v5, 0.0  ;;  %v536_v14 = vmax.f32 %v496_v6, 0.0 }
  0xc4   : > { %v513_v1 = vmax.f32 %v438_v61, 0.0  ;;  %v521_v2 = vmax.f32 %v458_v62, 0.0 }
  0xc6   : > { %v849_v3 = vpack.c.bf16 %v513_v1, %v512_v63  ;;  %v869_v4 = vpack.c.bf16 %v521_v2, %v520_v0 }
  0xc8   : > { %921 = vst [vmem:[%s1114_s17 + $0x8] sm:$0xff] %v849_v3   ;;  %v477_v7 = vpop.f32.mrf.mxu2  ;;  %v497_v8 = vpop.f32.mrf.mxu3 }
  0xc9   : > { %925 = vst [vmem:[%s1114_s17 + $0x28] sm:$0xff] %v869_v4   ;;  %v478_v9 = vadd.f32 %v1103_v26, %v477_v7  ;;  %v498_v10 = vadd.f32 %v1103_v26, %v497_v8  ;;  %v440_v11 = vpop.f32.mrf.mxu0  ;;  %v460_v12 = vpop.f32.mrf.mxu1 }
  0xca   : > { %v441_v19 = vadd.f32 %v1103_v26, %v440_v11  ;;  %v461_v20 = vadd.f32 %v1103_v26, %v460_v12 }
  0xcb   : > { %v529_v15 = vmax.f32 %v478_v9, 0.0  ;;  %v537_v16 = vmax.f32 %v498_v10, 0.0 }
  0xcc   : > { %v514_v28 = vmax.f32 %v441_v19, 0.0  ;;  %v522_v29 = vmax.f32 %v461_v20, 0.0 }
  0xcd   : > { %v889_v17 = vpack.c.bf16 %v529_v15, %v528_v13  ;;  %v909_v18 = vpack.c.bf16 %v537_v16, %v536_v14 }
  0xcf   : > { %929 = vst [vmem:[%s1114_s17 + $0x48] sm:$0xff] %v889_v17  }
  0xd0   : > { %933 = vst [vmem:[%s1114_s17 + $0x68] sm:$0xff] %v909_v18   ;;  %v480_v21 = vpop.f32.mrf.mxu2  ;;  %v500_v22 = vpop.f32.mrf.mxu3 }
  0xd1   : > { %v442_v23 = vpop.f32.mrf.mxu0  ;;  %v462_v24 = vpop.f32.mrf.mxu1  ;;  %v481_v34 = vadd.f32 %v1103_v26, %v480_v21  ;;  %v501_v35 = vadd.f32 %v1103_v26, %v500_v22 }
  0xd2   : > { %v443_v25 = vadd.f32 %v1103_v26, %v442_v23  ;;  %v463_v27 = vadd.f32 %v1103_v26, %v462_v24 }
  0xd3   : > { %v530_v42 = vmax.f32 %v481_v34, 0.0  ;;  %v538_v43 = vmax.f32 %v501_v35, 0.0 }
  0xd4   : > { %v515_v30 = vmax.f32 %v443_v25, 0.0  ;;  %v523_v31 = vmax.f32 %v463_v27, 0.0 }
  0xd6   : > { %v854_v32 = vpack.c.bf16 %v515_v30, %v514_v28  ;;  %v874_v33 = vpack.c.bf16 %v523_v31, %v522_v29 }
  0xd8   : > { %922 = vst [vmem:[%s1114_s17 + $0x10] sm:$0xff] %v854_v32   ;;  %v482_v36 = vpop.f32.mrf.mxu2  ;;  %v502_v37 = vpop.f32.mrf.mxu3 }
  0xd9   : > { %926 = vst [vmem:[%s1114_s17 + $0x30] sm:$0xff] %v874_v33   ;;  %v483_v38 = vadd.f32 %v1103_v26, %v482_v36  ;;  %v503_v39 = vadd.f32 %v1103_v26, %v502_v37  ;;  %v445_v40 = vpop.f32.mrf.mxu0  ;;  %v465_v41 = vpop.f32.mrf.mxu1 }
  0xda   : > { %v446_v48 = vadd.f32 %v1103_v26, %v445_v40  ;;  %v466_v49 = vadd.f32 %v1103_v26, %v465_v41 }
  0xdb   : > { %v531_v44 = vmax.f32 %v483_v38, 0.0  ;;  %v539_v45 = vmax.f32 %v503_v39, 0.0 }
  0xdc   : > { %v516_v56 = vmax.f32 %v446_v48, 0.0  ;;  %v524_v57 = vmax.f32 %v466_v49, 0.0 }
  0xdd   : > { %v894_v46 = vpack.c.bf16 %v531_v44, %v530_v42  ;;  %v914_v47 = vpack.c.bf16 %v539_v45, %v538_v43 }
  0xdf   : > { %930 = vst [vmem:[%s1114_s17 + $0x50] sm:$0xff] %v894_v46  }
  0xe0   : > { %934 = vst [vmem:[%s1114_s17 + $0x70] sm:$0xff] %v914_v47   ;;  %v485_v50 = vpop.f32.mrf.mxu2  ;;  %v505_v51 = vpop.f32.mrf.mxu3 }
  0xe1   : > { %v447_v52 = vpop.f32.mrf.mxu0  ;;  %v467_v53 = vpop.f32.mrf.mxu1  ;;  %v486_v62 = vadd.f32 %v1103_v26, %v485_v50  ;;  %v506_v63 = vadd.f32 %v1103_v26, %v505_v51 }
  0xe2   : > { %v448_v54 = vadd.f32 %v1103_v26, %v447_v52  ;;  %v468_v55 = vadd.f32 %v1103_v26, %v467_v53 }
  0xe3   : > { %v532_v4 = vmax.f32 %v486_v62, 0.0  ;;  %v540_v5 = vmax.f32 %v506_v63, 0.0 }
  0xe4   : > { %v517_v58 = vmax.f32 %v448_v54, 0.0  ;;  %v525_v59 = vmax.f32 %v468_v55, 0.0 }
  0xe6   : > { %v859_v60 = vpack.c.bf16 %v517_v58, %v516_v56  ;;  %v879_v61 = vpack.c.bf16 %v525_v59, %v524_v57 }
  0xe8   : > { %923 = vst [vmem:[%s1114_s17 + $0x18] sm:$0xff] %v859_v60   ;;  %v487_v0 = vpop.f32.mrf.mxu2  ;;  %v507_v1 = vpop.f32.mrf.mxu3 }
  0xe9   : > { %927 = vst [vmem:[%s1114_s17 + $0x38] sm:$0xff] %v879_v61   ;;  %v488_v2 = vadd.f32 %v1103_v26, %v487_v0  ;;  %v508_v3 = vadd.f32 %v1103_v26, %v507_v1 }
  0xeb   : > { %v533_v6 = vmax.f32 %v488_v2, 0.0  ;;  %v541_v7 = vmax.f32 %v508_v3, 0.0 }
  0xed   : > { %v899_v8 = vpack.c.bf16 %v533_v6, %v532_v4  ;;  %v919_v9 = vpack.c.bf16 %v541_v7, %v540_v5 }
  0xef   : > { %931 = vst [vmem:[%s1114_s17 + $0x58] sm:$0xff] %v899_v8  }
  0xf0   : > { %935 = vst [vmem:[%s1114_s17 + $0x78] sm:$0xff] %v919_v9  }
  0xf1 PF: > { %s13_s14 = sadd.s32 1, %s1007_s14   ;;  %s1173_s12 = smov %s1003_s13 }
  0xf2   : > { %p10_p5 = scmp.ge.s32.totalorder %s13_s14, 10   ;;  %s1174_s13 = smov %s1176_s15 }
  0xf4   :  { %12 = sbr.rel (!%p10_p5) target bundleno = 2 (0x2), region = 68 }

// kernel: forward.9
= control target key start
LH: loop header
LB: loop body
LE: loop exit
PB: predicated region body
PF: predicated region fallthrough
CT: control target
= control target key end

     0   :  { %s1363_s12 = smov 0   ;;  %s1365_s13 = smov 0   ;;  %s1572_s0 = inlined_call_operand.vmem [shape: bf16[512,256], index: 0, kind: input, shape index: {}]   ;;  %s1573_s1 = inlined_call_operand.vmem [shape: bf16[256,128], index: 1, kind: input, shape index: {}]   ;;  %s1574_s2 = inlined_call_operand.vmem [shape: f32[1,128], index: 2, kind: input, shape index: {}]   ;;  %s1575_s3 = inlined_call_operand.vmem [shape: bf16[512,128], index: 3, kind: output, shape index: {}]  }
   0x1   :  { %s1367_s14 = smov 0  }
   0x2 LB: > { %s25_s15 = sadd.s32 1, %s1337_s13  ;;  %p934_p0 = scmp.ge.s32.totalorder %s1341_s14, 1  ;;  %s1341_s14 = sphi %s1367_s14, %s13_s14   ;;  %s1337_s13 = sphi %s1365_s13, %s1577_s13   ;;  %s1333_s12 = sphi %s1363_s12, %s1576_s12  }
   0x3   : > { %p27_p1 = scmp.ge.s32.totalorder %s25_s15, 2  ;;  %p170_p2 = scmp.lt.s32.totalorder %s1341_s14, 3 }
   0x5   : > { %s1579_s15 = smov (%p27_p1, %s25_s15), 0  ;;  %p171_p3 = pnand %p934_p0, %p170_p2 }
   0x6   : > { %s935_s28 = sshll.u32 (!%p171_p3), %s1333_s12, 5 }
   0x7   : > { %174 = sbr.rel (%p171_p3) target bundleno = 305 (0x131), region = 32  ;;  %p206_p4 = scmp.lt.s32.totalorder (!%p171_p3), %s935_s28, 63 }
   0xc   : > { %v1174_v0 = vld [vmem:[%s1573_s1 + $0x38] sm:$0xff]  ;;  %v1173_v2 = vld [vmem:[%s1573_s1 + $0x30] sm:$0xff]  ;;  %v1172_v4 = vld [vmem:[%s1573_s1 + $0x28] sm:$0xff]  ;;  %s1581_s28 = smov (!%p206_p4, %s935_s28), 63 }
   0xd   : > { %v1182_v1 = vld [vmem:[%s1573_s1 + $0x78] sm:$0xff]  ;;  %552 = vmatpush.bf16.msra.mxu0 %v1174_v0  ;;  %1278 = vmatpush.bf16.msra.mxu2 %v1174_v0  ;;  %v1181_v3 = vld [vmem:[%s1573_s1 + $0x70] sm:$0xff]  ;;  %v1180_v5 = vld [vmem:[%s1573_s1 + $0x68] sm:$0xff]  ;;  %s1134_s17 = sshll.u32 %s1581_s28, 3  ;;  %s939_s5 = sshll.u32 %s1581_s28, 2 }
   0xe   : > { %641 = vmatpush.bf16.msra.mxu1 %v1182_v1  ;;  %1286 = vmatpush.bf16.msra.mxu3 %v1182_v1  ;;  %v1171_v6 = vld [vmem:[%s1573_s1 + $0x20] sm:$0xff]  ;;  %v1170_v8 = vld [vmem:[%s1573_s1 + $0x18] sm:$0xff]  ;;  %v1169_v10 = vld [vmem:[%s1573_s1 + $0x10] sm:$0xff]  ;;  %s1429_s22 = scalar_lea.vmem %s1572_s0, %s1134_s17  ;;  %s1516_s8 = scalar_lea.vmem %s1575_s3, %s939_s5 }
   0xf   : > { %v1179_v7 = vld [vmem:[%s1573_s1 + $0x60] sm:$0xff]  ;;  %v1178_v9 = vld [vmem:[%s1573_s1 + $0x58] sm:$0xff]  ;;  %v1177_v11 = vld [vmem:[%s1573_s1 + $0x50] sm:$0xff] }
  0x10   : > { %v1168_v12 = vld [vmem:[%s1573_s1 + $0x8] sm:$0xff]  ;;  %v1167_v14 = vld [vmem:[%s1573_s1] sm:$0xff]  ;;  %v950_v28 = vld [vmem:[%s1429_s22 + $0x10] sm:$0xf] }
  0x11   : > { %553 = vmatpush.bf16.msra.mxu0 %v1173_v2  ;;  %1279 = vmatpush.bf16.msra.mxu2 %v1173_v2  ;;  %v1176_v13 = vld [vmem:[%s1573_s1 + $0x48] sm:$0xff]  ;;  %v1175_v15 = vld [vmem:[%s1573_s1 + $0x40] sm:$0xff]  ;;  %v1138_v29 = vld [vmem:[%s1429_s22 + $0x14] sm:$0xf0] }
  0x12   : > { %642 = vmatpush.bf16.msra.mxu1 %v1181_v3  ;;  %1287 = vmatpush.bf16.msra.mxu3 %v1181_v3  ;;  %v942_v16 = vld [vmem:[%s1429_s22] sm:$0xf]  ;;  %v1136_v17 = vld [vmem:[%s1429_s22 + $0x4] sm:$0xf0]  ;;  %v1135_v20 = vld [vmem:[%s1429_s22 + $0x4] sm:$0xf]  ;;  %v951_v36 = vor.u32 %v1138_v29, %v950_v28 }
  0x13   : > { %v1006_v18 = vld [vmem:[%s1429_s22 + $0x80] sm:$0xf]  ;;  %v1152_v19 = vld [vmem:[%s1429_s22 + $0x84] sm:$0xf0]  ;;  %v944_v21 = vld [vmem:[%s1429_s22 + $0x8] sm:$0xf0]  ;;  %v943_v24 = vor.u32 %v1136_v17, %v942_v16 }
  0x14   : > { %v1151_v22 = vld [vmem:[%s1429_s22 + $0x84] sm:$0xf]  ;;  %v1008_v23 = vld [vmem:[%s1429_s22 + $0x88] sm:$0xf0]  ;;  %v1007_v25 = vor.u32 %v1152_v19, %v1006_v18  ;;  %v947_v26 = vor.u32 %v1135_v20, %v944_v21  ;;  %v1014_v30 = vld [vmem:[%s1429_s22 + $0x90] sm:$0xf] }
  0x15   : > { %554 = vmatpush.bf16.msra.mxu0 %v1172_v4  ;;  %1280 = vmatpush.bf16.msra.mxu2 %v1172_v4  ;;  %v1011_v27 = vor.u32 %v1151_v22, %v1008_v23  ;;  %v1154_v31 = vld [vmem:[%s1429_s22 + $0x94] sm:$0xf0]  ;;  %v1137_v32 = vld [vmem:[%s1429_s22 + $0x14] sm:$0xf]  ;;  %v952_v33 = vld [vmem:[%s1429_s22 + $0x18] sm:$0xf0] }
  0x16   : > { %643 = vmatpush.bf16.msra.mxu1 %v1180_v5  ;;  %1288 = vmatpush.bf16.msra.mxu3 %v1180_v5  ;;  %v1153_v34 = vld [vmem:[%s1429_s22 + $0x94] sm:$0xf]  ;;  %v1016_v35 = vld [vmem:[%s1429_s22 + $0x98] sm:$0xf0]  ;;  %v1015_v37 = vor.u32 %v1154_v31, %v1014_v30  ;;  %v955_v38 = vor.u32 %v1137_v32, %v952_v33  ;;  %v958_v40 = vld [vmem:[%s1429_s22 + $0x20] sm:$0xf] }
  0x17   : > { %v1019_v39 = vor.u32 %v1153_v34, %v1016_v35  ;;  %v1140_v41 = vld [vmem:[%s1429_s22 + $0x24] sm:$0xf0]  ;;  %v1022_v42 = vld [vmem:[%s1429_s22 + $0xa0] sm:$0xf]  ;;  %v1139_v44 = vld [vmem:[%s1429_s22 + $0x24] sm:$0xf] }
  0x18   : > { %v1156_v43 = vld [vmem:[%s1429_s22 + $0xa4] sm:$0xf0]  ;;  %v960_v45 = vld [vmem:[%s1429_s22 + $0x28] sm:$0xf0]  ;;  %v1155_v46 = vld [vmem:[%s1429_s22 + $0xa4] sm:$0xf]  ;;  %v959_v48 = vor.u32 %v1140_v41, %v958_v40 }
  0x19   : > { %555 = vmatpush.bf16.msra.mxu0 %v1171_v6  ;;  %1281 = vmatpush.bf16.msra.mxu2 %v1171_v6  ;;  %v1024_v47 = vld [vmem:[%s1429_s22 + $0xa8] sm:$0xf0]  ;;  %v1023_v49 = vor.u32 %v1156_v43, %v1022_v42  ;;  %v963_v50 = vor.u32 %v1139_v44, %v960_v45  ;;  %v966_v52 = vld [vmem:[%s1429_s22 + $0x30] sm:$0xf]  ;;  %v1142_v53 = vld [vmem:[%s1429_s22 + $0x34] sm:$0xf0] }
  0x1a   : > { %644 = vmatpush.bf16.msra.mxu1 %v1179_v7  ;;  %1289 = vmatpush.bf16.msra.mxu3 %v1179_v7  ;;  %v1027_v51 = vor.u32 %v1155_v46, %v1024_v47  ;;  %v1030_v54 = vld [vmem:[%s1429_s22 + $0xb0] sm:$0xf]  ;;  %v1158_v55 = vld [vmem:[%s1429_s22 + $0xb4] sm:$0xf0]  ;;  %v1141_v56 = vld [vmem:[%s1429_s22 + $0x34] sm:$0xf]  ;;  %v967_v60 = vor.u32 %v1142_v53, %v966_v52 }
  0x1b   : > { %v968_v57 = vld [vmem:[%s1429_s22 + $0x38] sm:$0xf0]  ;;  %v1157_v58 = vld [vmem:[%s1429_s22 + $0xb4] sm:$0xf]  ;;  %v1031_v61 = vor.u32 %v1158_v55, %v1030_v54  ;;  %v974_v0 = vld [vmem:[%s1429_s22 + $0x40] sm:$0xf] }
  0x1c   : > { %v1032_v59 = vld [vmem:[%s1429_s22 + $0xb8] sm:$0xf0]  ;;  %v971_v62 = vor.u32 %v1141_v56, %v968_v57  ;;  %v1144_v1 = vld [vmem:[%s1429_s22 + $0x44] sm:$0xf0]  ;;  %v1038_v2 = vld [vmem:[%s1429_s22 + $0xc0] sm:$0xf] }
  0x1d   : > { %556 = vmatpush.bf16.msra.mxu0 %v1170_v8  ;;  %1282 = vmatpush.bf16.msra.mxu2 %v1170_v8  ;;  %v1035_v63 = vor.u32 %v1157_v58, %v1032_v59  ;;  %v1160_v3 = vld [vmem:[%s1429_s22 + $0xc4] sm:$0xf0]  ;;  %v1143_v4 = vld [vmem:[%s1429_s22 + $0x44] sm:$0xf]  ;;  %v976_v5 = vld [vmem:[%s1429_s22 + $0x48] sm:$0xf0]  ;;  %v975_v8 = vor.u32 %v1144_v1, %v974_v0 }
  0x1e   : > { %645 = vmatpush.bf16.msra.mxu1 %v1178_v9  ;;  %1290 = vmatpush.bf16.msra.mxu3 %v1178_v9  ;;  %v1159_v6 = vld [vmem:[%s1429_s22 + $0xc4] sm:$0xf]  ;;  %v1040_v7 = vld [vmem:[%s1429_s22 + $0xc8] sm:$0xf0]  ;;  %v1039_v9 = vor.u32 %v1160_v3, %v1038_v2  ;;  %v1145_v16 = vld [vmem:[%s1429_s22 + $0x54] sm:$0xf] }
  0x1f   : > { %v984_v17 = vld [vmem:[%s1429_s22 + $0x58] sm:$0xf0]  ;;  %v1161_v18 = vld [vmem:[%s1429_s22 + $0xd4] sm:$0xf]  ;;  %v1147_v28 = vld [vmem:[%s1429_s22 + $0x64] sm:$0xf] }
  0x20   : > { %v1048_v19 = vld [vmem:[%s1429_s22 + $0xd8] sm:$0xf0]  ;;  %v987_v22 = vor.u32 %v1145_v16, %v984_v17  ;;  %v992_v29 = vld [vmem:[%s1429_s22 + $0x68] sm:$0xf0]  ;;  %v1163_v30 = vld [vmem:[%s1429_s22 + $0xe4] sm:$0xf] }
  0x21   : > { %557 = vmatpush.bf16.msra.mxu0 %v1169_v10  ;;  %1283 = vmatpush.bf16.msra.mxu2 %v1169_v10  ;;  %v979_v10 = vor.u32 %v1143_v4, %v976_v5  ;;  %v1051_v23 = vor.u32 %v1161_v18, %v1048_v19  ;;  %v1056_v31 = vld [vmem:[%s1429_s22 + $0xe8] sm:$0xf0]  ;;  %v995_v34 = vor.u32 %v1147_v28, %v992_v29  ;;  %v1149_v40 = vld [vmem:[%s1429_s22 + $0x74] sm:$0xf]  ;;  %v1000_v41 = vld [vmem:[%s1429_s22 + $0x78] sm:$0xf0] }
  0x22   : > { %646 = vmatpush.bf16.msra.mxu1 %v1177_v11  ;;  %1291 = vmatpush.bf16.msra.mxu3 %v1177_v11  ;;  %v1043_v11 = vor.u32 %v1159_v6, %v1040_v7  ;;  %v1059_v35 = vor.u32 %v1163_v30, %v1056_v31  ;;  %v1165_v42 = vld [vmem:[%s1429_s22 + $0xf4] sm:$0xf]  ;;  %v1064_v43 = vld [vmem:[%s1429_s22 + $0xf8] sm:$0xf0]  ;;  %v1003_v46 = vor.u32 %v1149_v40, %v1000_v41 }
  0x23   : > { %v1067_v47 = vor.u32 %v1165_v42, %v1064_v43 }
  0x25   : > { %558 = vmatpush.bf16.msra.mxu0 %v1168_v12  ;;  %1284 = vmatpush.bf16.msra.mxu2 %v1168_v12  ;;  %v982_v12 = vld [vmem:[%s1429_s22 + $0x50] sm:$0xf] }
  0x26   : > { %647 = vmatpush.bf16.msra.mxu1 %v1176_v13  ;;  %1292 = vmatpush.bf16.msra.mxu3 %v1176_v13  ;;  %v1146_v13 = vld [vmem:[%s1429_s22 + $0x54] sm:$0xf0] }
  0x27   : > { %v983_v20 = vor.u32 %v1146_v13, %v982_v12 }
  0x29   : > { %559 = vmatpush.bf16.msra.mxu0 %v1167_v14  ;;  %1285 = vmatpush.bf16.msra.mxu2 %v1167_v14  ;;  %v1046_v14 = vld [vmem:[%s1429_s22 + $0xd0] sm:$0xf] }
  0x2a   : > { %648 = vmatpush.bf16.msra.mxu1 %v1175_v15  ;;  %1293 = vmatpush.bf16.msra.mxu3 %v1175_v15  ;;  %v1162_v15 = vld [vmem:[%s1429_s22 + $0xd4] sm:$0xf0] }
  0x2b   : > { %v1047_v21 = vor.u32 %v1162_v15, %v1046_v14 }
  0x2c   : > { %560 = vmatmul.bf16.vlgmr.msra.gmra.mxu0 %v943_v24  ;;  %600 = vmatmul.bf16.vlgmr.msra.gmra.mxu2 %v1007_v25  ;;  %v990_v24 = vld [vmem:[%s1429_s22 + $0x60] sm:$0xf]  ;;  %v1148_v25 = vld [vmem:[%s1429_s22 + $0x64] sm:$0xf0] }
  0x2d   : > { %649 = vmatmul.bf16.vlgmr.msra.gmra.mxu1 %v947_v26  ;;  %689 = vmatmul.bf16.vlgmr.msra.gmra.mxu3 %v1011_v27  ;;  %v1054_v26 = vld [vmem:[%s1429_s22 + $0xe0] sm:$0xf]  ;;  %v1164_v27 = vld [vmem:[%s1429_s22 + $0xe4] sm:$0xf0]  ;;  %v991_v32 = vor.u32 %v1148_v25, %v990_v24 }
  0x2e   : > { %v1055_v33 = vor.u32 %v1164_v27, %v1054_v26 }
  0x3c   : > { %565 = vmatmul.bf16.gmra.mxu0 %v951_v36  ;;  %605 = vmatmul.bf16.gmra.mxu2 %v1015_v37  ;;  %v998_v36 = vld [vmem:[%s1429_s22 + $0x70] sm:$0xf]  ;;  %v1150_v37 = vld [vmem:[%s1429_s22 + $0x74] sm:$0xf0] }
  0x3d   : > { %654 = vmatmul.bf16.gmra.mxu1 %v955_v38  ;;  %694 = vmatmul.bf16.gmra.mxu3 %v1019_v39  ;;  %v1062_v38 = vld [vmem:[%s1429_s22 + $0xf0] sm:$0xf]  ;;  %v1166_v39 = vld [vmem:[%s1429_s22 + $0xf4] sm:$0xf0]  ;;  %v999_v44 = vor.u32 %v1150_v37, %v998_v36 }
  0x3e   : > { %v1063_v45 = vor.u32 %v1166_v39, %v1062_v38 }
  0x4c   : > { %570 = vmatmul.bf16.gmra.mxu0 %v959_v48  ;;  %610 = vmatmul.bf16.gmra.mxu2 %v1023_v49  ;;  %v1507_v49 = vld [vmem:[%s1574_s2] ss:$0 sm:$0xff] }
  0x4d   : > { %659 = vmatmul.bf16.gmra.mxu1 %v963_v50  ;;  %699 = vmatmul.bf16.gmra.mxu3 %v1027_v51 }
  0x5c   : > { %575 = vmatmul.bf16.gmra.mxu0 %v967_v60  ;;  %615 = vmatmul.bf16.gmra.mxu2 %v1031_v61 }
  0x5d   : > { %664 = vmatmul.bf16.gmra.mxu1 %v971_v62  ;;  %704 = vmatmul.bf16.gmra.mxu3 %v1035_v63 }
  0x6c   : > { %580 = vmatmul.bf16.gmra.mxu0 %v975_v8  ;;  %620 = vmatmul.bf16.gmra.mxu2 %v1039_v9 }
  0x6d   : > { %669 = vmatmul.bf16.gmra.mxu1 %v979_v10  ;;  %709 = vmatmul.bf16.gmra.mxu3 %v1043_v11 }
  0x7c   : > { %585 = vmatmul.bf16.gmra.mxu0 %v983_v20  ;;  %625 = vmatmul.bf16.gmra.mxu2 %v1047_v21 }
  0x7d   : > { %674 = vmatmul.bf16.gmra.mxu1 %v987_v22  ;;  %714 = vmatmul.bf16.gmra.mxu3 %v1051_v23 }
  0x8c   : > { %590 = vmatmul.bf16.gmra.mxu0 %v991_v32  ;;  %630 = vmatmul.bf16.gmra.mxu2 %v1055_v33 }
  0x8d   : > { %679 = vmatmul.bf16.gmra.mxu1 %v995_v34  ;;  %719 = vmatmul.bf16.gmra.mxu3 %v1059_v35 }
  0x9c   : > { %595 = vmatmul.bf16.gmra.mxu0 %v999_v44  ;;  %635 = vmatmul.bf16.gmra.mxu2 %v1063_v45 }
  0x9d   : > { %684 = vmatmul.bf16.gmra.mxu1 %v1003_v46  ;;  %724 = vmatmul.bf16.gmra.mxu3 %v1067_v47 }
  0xa9   : > { %v561_v48 = vpop.f32.mrf.mxu0 }
  0xaa   : > { %v650_v50 = vpop.f32.mrf.mxu1  ;;  %v562_v51 = vadd.f32 %v1507_v49, %v561_v48 }
  0xac   : > { %v651_v55 = vadd.f32 %v650_v50, %v562_v51 }
  0xae   : > { %v730_v60 = vmax.f32 %v651_v55, 0.0 }
  0xaf   : > { %v601_v52 = vpop.f32.mrf.mxu2 }
  0xb0   : > { %v690_v53 = vpop.f32.mrf.mxu3  ;;  %v602_v58 = vadd.f32 %v1507_v49, %v601_v52 }
  0xb1   : > { %v563_v54 = vpop.f32.mrf.mxu0 }
  0xb2   : > { %v564_v56 = vadd.f32 %v1507_v49, %v563_v54  ;;  %v652_v57 = vpop.f32.mrf.mxu1  ;;  %v691_v63 = vadd.f32 %v690_v53, %v602_v58 }
  0xb4   : > { %v653_v59 = vadd.f32 %v652_v57, %v564_v56  ;;  %v746_v6 = vmax.f32 %v691_v63, 0.0 }
  0xb6   : > { %v731_v61 = vmax.f32 %v653_v59, 0.0 }
  0xb7   : > { %v603_v62 = vpop.f32.mrf.mxu2 }
  0xb8   : > { %v1186_v0 = vpack.c.bf16 %v731_v61, %v730_v60  ;;  %v604_v1 = vadd.f32 %v1507_v49, %v603_v62  ;;  %v692_v2 = vpop.f32.mrf.mxu3 }
  0xb9   : > { %v566_v3 = vpop.f32.mrf.mxu0 }
  0xba   : > { %1187 = vst [vmem:[%s1516_s8] sm:$0xff] %v1186_v0   ;;  %v693_v4 = vadd.f32 %v692_v2, %v604_v1  ;;  %v655_v5 = vpop.f32.mrf.mxu1  ;;  %v567_v9 = vadd.f32 %v1507_v49, %v566_v3 }
  0xbc   : > { %v747_v7 = vmax.f32 %v693_v4, 0.0  ;;  %v656_v13 = vadd.f32 %v655_v5, %v567_v9 }
  0xbe   : > { %v1226_v8 = vpack.c.bf16 %v747_v7, %v746_v6  ;;  %v732_v18 = vmax.f32 %v656_v13, 0.0 }
  0xbf   : > { %v606_v10 = vpop.f32.mrf.mxu2 }
  0xc0   : > { %1270 = vst [vmem:[%s1516_s8 + $0x40] sm:$0xff] %v1226_v8   ;;  %v695_v11 = vpop.f32.mrf.mxu3  ;;  %v607_v16 = vadd.f32 %v1507_v49, %v606_v10 }
  0xc1   : > { %v568_v12 = vpop.f32.mrf.mxu0 }
  0xc2   : > { %v569_v14 = vadd.f32 %v1507_v49, %v568_v12  ;;  %v657_v15 = vpop.f32.mrf.mxu1  ;;  %v696_v21 = vadd.f32 %v695_v11, %v607_v16 }
  0xc4   : > { %v658_v17 = vadd.f32 %v657_v15, %v569_v14  ;;  %v748_v28 = vmax.f32 %v696_v21, 0.0 }
  0xc6   : > { %v733_v19 = vmax.f32 %v658_v17, 0.0 }
  0xc7   : > { %v608_v20 = vpop.f32.mrf.mxu2 }
  0xc8   : > { %v1191_v22 = vpack.c.bf16 %v733_v19, %v732_v18  ;;  %v609_v23 = vadd.f32 %v1507_v49, %v608_v20  ;;  %v697_v24 = vpop.f32.mrf.mxu3 }
  0xc9   : > { %v571_v25 = vpop.f32.mrf.mxu0 }
  0xca   : > { %1263 = vst [vmem:[%s1516_s8 + $0x8] sm:$0xff] %v1191_v22   ;;  %v698_v26 = vadd.f32 %v697_v24, %v609_v23  ;;  %v660_v27 = vpop.f32.mrf.mxu1  ;;  %v572_v31 = vadd.f32 %v1507_v49, %v571_v25 }
  0xcc   : > { %v749_v29 = vmax.f32 %v698_v26, 0.0  ;;  %v661_v35 = vadd.f32 %v660_v27, %v572_v31 }
  0xce   : > { %v1231_v30 = vpack.c.bf16 %v749_v29, %v748_v28  ;;  %v734_v40 = vmax.f32 %v661_v35, 0.0 }
  0xcf   : > { %v611_v32 = vpop.f32.mrf.mxu2 }
  0xd0   : > { %1271 = vst [vmem:[%s1516_s8 + $0x48] sm:$0xff] %v1231_v30   ;;  %v700_v33 = vpop.f32.mrf.mxu3  ;;  %v612_v38 = vadd.f32 %v1507_v49, %v611_v32 }
  0xd1   : > { %v573_v34 = vpop.f32.mrf.mxu0 }
  0xd2   : > { %v574_v36 = vadd.f32 %v1507_v49, %v573_v34  ;;  %v662_v37 = vpop.f32.mrf.mxu1  ;;  %v701_v43 = vadd.f32 %v700_v33, %v612_v38 }
  0xd4   : > { %v663_v39 = vadd.f32 %v662_v37, %v574_v36  ;;  %v750_v51 = vmax.f32 %v701_v43, 0.0 }
  0xd6   : > { %v735_v41 = vmax.f32 %v663_v39, 0.0 }
  0xd7   : > { %v613_v42 = vpop.f32.mrf.mxu2 }
  0xd8   : > { %v1196_v44 = vpack.c.bf16 %v735_v41, %v734_v40  ;;  %v614_v45 = vadd.f32 %v1507_v49, %v613_v42  ;;  %v702_v46 = vpop.f32.mrf.mxu3 }
  0xd9   : > { %v576_v47 = vpop.f32.mrf.mxu0 }
  0xda   : > { %1264 = vst [vmem:[%s1516_s8 + $0x10] sm:$0xff] %v1196_v44   ;;  %v703_v48 = vadd.f32 %v702_v46, %v614_v45  ;;  %v665_v50 = vpop.f32.mrf.mxu1  ;;  %v577_v54 = vadd.f32 %v1507_v49, %v576_v47 }
  0xdc   : > { %v751_v52 = vmax.f32 %v703_v48, 0.0  ;;  %v666_v58 = vadd.f32 %v665_v50, %v577_v54 }
  0xde   : > { %v1236_v53 = vpack.c.bf16 %v751_v52, %v750_v51  ;;  %v736_v63 = vmax.f32 %v666_v58, 0.0 }
  0xdf   : > { %v616_v55 = vpop.f32.mrf.mxu2 }
  0xe0   : > { %1272 = vst [vmem:[%s1516_s8 + $0x50] sm:$0xff] %v1236_v53   ;;  %v705_v56 = vpop.f32.mrf.mxu3  ;;  %v617_v61 = vadd.f32 %v1507_v49, %v616_v55 }
  0xe1   : > { %v578_v57 = vpop.f32.mrf.mxu0 }
  0xe2   : > { %v579_v59 = vadd.f32 %v1507_v49, %v578_v57  ;;  %v667_v60 = vpop.f32.mrf.mxu1  ;;  %v706_v2 = vadd.f32 %v705_v56, %v617_v61 }
  0xe4   : > { %v668_v62 = vadd.f32 %v667_v60, %v579_v59  ;;  %v752_v9 = vmax.f32 %v706_v2, 0.0 }
  0xe6   : > { %v737_v0 = vmax.f32 %v668_v62, 0.0 }
  0xe7   : > { %v618_v1 = vpop.f32.mrf.mxu2 }
  0xe8   : > { %v1201_v3 = vpack.c.bf16 %v737_v0, %v736_v63  ;;  %v619_v4 = vadd.f32 %v1507_v49, %v618_v1  ;;  %v707_v5 = vpop.f32.mrf.mxu3 }
  0xe9   : > { %v581_v6 = vpop.f32.mrf.mxu0 }
  0xea   : > { %1265 = vst [vmem:[%s1516_s8 + $0x18] sm:$0xff] %v1201_v3   ;;  %v708_v7 = vadd.f32 %v707_v5, %v619_v4  ;;  %v670_v8 = vpop.f32.mrf.mxu1  ;;  %v582_v12 = vadd.f32 %v1507_v49, %v581_v6 }
  0xec   : > { %v753_v10 = vmax.f32 %v708_v7, 0.0  ;;  %v671_v16 = vadd.f32 %v670_v8, %v582_v12 }
  0xee   : > { %v1241_v11 = vpack.c.bf16 %v753_v10, %v752_v9  ;;  %v738_v21 = vmax.f32 %v671_v16, 0.0 }
  0xef   : > { %v621_v13 = vpop.f32.mrf.mxu2 }
  0xf0   : > { %1273 = vst [vmem:[%s1516_s8 + $0x58] sm:$0xff] %v1241_v11   ;;  %v710_v14 = vpop.f32.mrf.mxu3  ;;  %v622_v19 = vadd.f32 %v1507_v49, %v621_v13 }
  0xf1   : > { %v583_v15 = vpop.f32.mrf.mxu0 }
  0xf2   : > { %v584_v17 = vadd.f32 %v1507_v49, %v583_v15  ;;  %v672_v18 = vpop.f32.mrf.mxu1  ;;  %v711_v24 = vadd.f32 %v710_v14, %v622_v19 }
  0xf4   : > { %v673_v20 = vadd.f32 %v672_v18, %v584_v17  ;;  %v754_v31 = vmax.f32 %v711_v24, 0.0 }
  0xf6   : > { %v739_v22 = vmax.f32 %v673_v20, 0.0 }
  0xf7   : > { %v623_v23 = vpop.f32.mrf.mxu2 }
  0xf8   : > { %v1206_v25 = vpack.c.bf16 %v739_v22, %v738_v21  ;;  %v624_v26 = vadd.f32 %v1507_v49, %v623_v23  ;;  %v712_v27 = vpop.f32.mrf.mxu3 }
  0xf9   : > { %v586_v28 = vpop.f32.mrf.mxu0 }
  0xfa   : > { %1266 = vst [vmem:[%s1516_s8 + $0x20] sm:$0xff] %v1206_v25   ;;  %v713_v29 = vadd.f32 %v712_v27, %v624_v26  ;;  %v675_v30 = vpop.f32.mrf.mxu1  ;;  %v587_v34 = vadd.f32 %v1507_v49, %v586_v28 }
  0xfc   : > { %v755_v32 = vmax.f32 %v713_v29, 0.0  ;;  %v676_v38 = vadd.f32 %v675_v30, %v587_v34 }
  0xfe   : > { %v1246_v33 = vpack.c.bf16 %v755_v32, %v754_v31  ;;  %v740_v43 = vmax.f32 %v676_v38, 0.0 }
  0xff   : > { %v626_v35 = vpop.f32.mrf.mxu2 }
 0x100   : > { %1274 = vst [vmem:[%s1516_s8 + $0x60] sm:$0xff] %v1246_v33   ;;  %v715_v36 = vpop.f32.mrf.mxu3  ;;  %v627_v41 = vadd.f32 %v1507_v49, %v626_v35 }
 0x101   : > { %v588_v37 = vpop.f32.mrf.mxu0 }
 0x102   : > { %v589_v39 = vadd.f32 %v1507_v49, %v588_v37  ;;  %v677_v40 = vpop.f32.mrf.mxu1  ;;  %v716_v46 = vadd.f32 %v715_v36, %v627_v41 }
 0x104   : > { %v678_v42 = vadd.f32 %v677_v40, %v589_v39  ;;  %v756_v54 = vmax.f32 %v716_v46, 0.0 }
 0x106   : > { %v741_v44 = vmax.f32 %v678_v42, 0.0 }
 0x107   : > { %v628_v45 = vpop.f32.mrf.mxu2 }
 0x108   : > { %v1211_v47 = vpack.c.bf16 %v741_v44, %v740_v43  ;;  %v629_v48 = vadd.f32 %v1507_v49, %v628_v45  ;;  %v717_v50 = vpop.f32.mrf.mxu3 }
 0x109   : > { %v591_v51 = vpop.f32.mrf.mxu0 }
 0x10a   : > { %1267 = vst [vmem:[%s1516_s8 + $0x28] sm:$0xff] %v1211_v47   ;;  %v718_v52 = vadd.f32 %v717_v50, %v629_v48  ;;  %v680_v53 = vpop.f32.mrf.mxu1  ;;  %v592_v57 = vadd.f32 %v1507_v49, %v591_v51 }
 0x10c   : > { %v757_v55 = vmax.f32 %v718_v52, 0.0  ;;  %v681_v61 = vadd.f32 %v680_v53, %v592_v57 }
 0x10e   : > { %v1251_v56 = vpack.c.bf16 %v757_v55, %v756_v54  ;;  %v742_v2 = vmax.f32 %v681_v61, 0.0 }
 0x10f   : > { %v631_v58 = vpop.f32.mrf.mxu2 }
 0x110   : > { %1275 = vst [vmem:[%s1516_s8 + $0x68] sm:$0xff] %v1251_v56   ;;  %v720_v59 = vpop.f32.mrf.mxu3  ;;  %v632_v0 = vadd.f32 %v1507_v49, %v631_v58 }
 0x111   : > { %v593_v60 = vpop.f32.mrf.mxu0 }
 0x112   : > { %v594_v62 = vadd.f32 %v1507_v49, %v593_v60  ;;  %v682_v63 = vpop.f32.mrf.mxu1  ;;  %v721_v5 = vadd.f32 %v720_v59, %v632_v0 }
 0x114   : > { %v683_v1 = vadd.f32 %v682_v63, %v594_v62  ;;  %v758_v12 = vmax.f32 %v721_v5, 0.0 }
 0x116   : > { %v743_v3 = vmax.f32 %v683_v1, 0.0 }
 0x117   : > { %v633_v4 = vpop.f32.mrf.mxu2 }
 0x118   : > { %v1216_v6 = vpack.c.bf16 %v743_v3, %v742_v2  ;;  %v634_v7 = vadd.f32 %v1507_v49, %v633_v4  ;;  %v722_v8 = vpop.f32.mrf.mxu3 }
 0x119   : > { %v596_v9 = vpop.f32.mrf.mxu0 }
 0x11a   : > { %1268 = vst [vmem:[%s1516_s8 + $0x30] sm:$0xff] %v1216_v6   ;;  %v723_v10 = vadd.f32 %v722_v8, %v634_v7  ;;  %v685_v11 = vpop.f32.mrf.mxu1  ;;  %v597_v15 = vadd.f32 %v1507_v49, %v596_v9 }
 0x11c   : > { %v759_v13 = vmax.f32 %v723_v10, 0.0  ;;  %v686_v19 = vadd.f32 %v685_v11, %v597_v15 }
 0x11e   : > { %v1256_v14 = vpack.c.bf16 %v759_v13, %v758_v12  ;;  %v744_v24 = vmax.f32 %v686_v19, 0.0 }
 0x11f   : > { %v636_v16 = vpop.f32.mrf.mxu2 }
 0x120   : > { %1276 = vst [vmem:[%s1516_s8 + $0x70] sm:$0xff] %v1256_v14   ;;  %v725_v17 = vpop.f32.mrf.mxu3  ;;  %v637_v22 = vadd.f32 %v1507_v49, %v636_v16 }
 0x121   : > { %v598_v18 = vpop.f32.mrf.mxu0 }
 0x122   : > { %v599_v20 = vadd.f32 %v1507_v49, %v598_v18  ;;  %v687_v21 = vpop.f32.mrf.mxu1  ;;  %v726_v27 = vadd.f32 %v725_v17, %v637_v22 }
 0x124   : > { %v688_v23 = vadd.f32 %v687_v21, %v599_v20  ;;  %v760_v32 = vmax.f32 %v726_v27, 0.0 }
 0x126   : > { %v745_v25 = vmax.f32 %v688_v23, 0.0 }
 0x127   : > { %v638_v26 = vpop.f32.mrf.mxu2 }
 0x128   : > { %v1221_v28 = vpack.c.bf16 %v745_v25, %v744_v24  ;;  %v639_v29 = vadd.f32 %v1507_v49, %v638_v26  ;;  %v727_v30 = vpop.f32.mrf.mxu3 }
 0x12a   : > { %1269 = vst [vmem:[%s1516_s8 + $0x38] sm:$0xff] %v1221_v28   ;;  %v728_v31 = vadd.f32 %v727_v30, %v639_v29 }
 0x12c   : > { %v761_v33 = vmax.f32 %v728_v31, 0.0 }
 0x12e   : > { %v1261_v34 = vpack.c.bf16 %v761_v33, %v760_v32 }
 0x130   : > { %1277 = vst [vmem:[%s1516_s8 + $0x78] sm:$0xff] %v1261_v34  }
 0x131 PF: > { %s13_s14 = sadd.s32 1, %s1341_s14   ;;  %s1576_s12 = smov %s1337_s13 }
 0x132   : > { %p10_p5 = scmp.ge.s32.totalorder %s13_s14, 4   ;;  %s1577_s13 = smov %s1579_s15 }
 0x134   :  { %12 = sbr.rel (!%p10_p5) target bundleno = 2 (0x2), region = 68 }

// kernel: forward.10
= control target key start
LH: loop header
LB: loop body
LE: loop exit
PB: predicated region body
PF: predicated region fallthrough
CT: control target
= control target key end

     0   :  { %s1214_s1 = inlined_call_operand.vmem [shape: bf16[384,128], index: 1, kind: input, shape index: {}]   ;;  %s1215_s2 = inlined_call_operand.vmem [shape: f32[1,128], index: 2, kind: input, shape index: {}]   ;;  %s1216_s0 = inlined_call_operand.vmem [shape: bf16[128,384], index: 0, kind: input, shape index: {}]   ;;  %s1217_s3 = inlined_call_operand.vmem [shape: bf16[128,128], index: 3, kind: output, shape index: {}]  }
   0x1   :  { %v792_v0 = vld [vmem:[%s1214_s1 + $0x38] sm:$0xff]  ;;  %v791_v3 = vld [vmem:[%s1214_s1 + $0x30] sm:$0xff]  ;;  %v790_v6 = vld [vmem:[%s1214_s1 + $0x28] sm:$0xff] }
   0x2   :  { %v907_v1 = vld [vmem:[%s1214_s1 + $0x78] sm:$0xff]  ;;  %370 = vmatpush.bf16.msra.mxu0 %v792_v0  ;;  %856 = vmatpush.bf16.msra.mxu3 %v792_v0  ;;  %v922_v4 = vld [vmem:[%s1214_s1 + $0x70] sm:$0xff]  ;;  %v798_v7 = vld [vmem:[%s1214_s1 + $0x68] sm:$0xff] }
   0x3   :  { %v912_v2 = vld [vmem:[%s1214_s1 + $0xb8] sm:$0xff]  ;;  %419 = vmatpush.bf16.msra.mxu1 %v907_v1  ;;  %v927_v5 = vld [vmem:[%s1214_s1 + $0xb0] sm:$0xff]  ;;  %v940_v8 = vld [vmem:[%s1214_s1 + $0xa8] sm:$0xff] }
   0x4   :  { %468 = vmatpush.bf16.msra.mxu2 %v912_v2  ;;  %v789_v9 = vld [vmem:[%s1214_s1 + $0x20] sm:$0xff]  ;;  %v788_v12 = vld [vmem:[%s1214_s1 + $0x18] sm:$0xff]  ;;  %v787_v15 = vld [vmem:[%s1214_s1 + $0x10] sm:$0xff] }
   0x5   :  { %v797_v10 = vld [vmem:[%s1214_s1 + $0x60] sm:$0xff]  ;;  %v796_v13 = vld [vmem:[%s1214_s1 + $0x58] sm:$0xff]  ;;  %v795_v16 = vld [vmem:[%s1214_s1 + $0x50] sm:$0xff] }
   0x6   :  { %371 = vmatpush.bf16.msra.mxu0 %v791_v3  ;;  %857 = vmatpush.bf16.msra.mxu3 %v791_v3  ;;  %v952_v11 = vld [vmem:[%s1214_s1 + $0xa0] sm:$0xff]  ;;  %v964_v14 = vld [vmem:[%s1214_s1 + $0x98] sm:$0xff]  ;;  %v976_v17 = vld [vmem:[%s1214_s1 + $0x90] sm:$0xff] }
   0x7   :  { %420 = vmatpush.bf16.msra.mxu1 %v922_v4  ;;  %v786_v18 = vld [vmem:[%s1214_s1 + $0x8] sm:$0xff]  ;;  %v785_v21 = vld [vmem:[%s1214_s1] sm:$0xff]  ;;  %v643_v26 = vld [vmem:[%s1216_s0 + $0x90] sm:$0xf] }
   0x8   :  { %469 = vmatpush.bf16.msra.mxu2 %v927_v5  ;;  %v794_v19 = vld [vmem:[%s1214_s1 + $0x48] sm:$0xff]  ;;  %v793_v22 = vld [vmem:[%s1214_s1 + $0x40] sm:$0xff]  ;;  %v780_v27 = vld [vmem:[%s1216_s0 + $0x98] sm:$0xf0] }
   0x9   :  { %v988_v20 = vld [vmem:[%s1214_s1 + $0x88] sm:$0xff]  ;;  %v999_v23 = vld [vmem:[%s1214_s1 + $0x80] sm:$0xff]  ;;  %v573_v29 = vld [vmem:[%s1216_s0 + $0xc] sm:$0xf0]  ;;  %v644_v33 = vor.u32 %v780_v27, %v643_v26 }
   0xa   :  { %372 = vmatpush.bf16.msra.mxu0 %v790_v6  ;;  %858 = vmatpush.bf16.msra.mxu3 %v790_v6  ;;  %v571_v24 = vld [vmem:[%s1216_s0] sm:$0xf]  ;;  %v762_v25 = vld [vmem:[%s1216_s0 + $0x8] sm:$0xf0]  ;;  %v761_v28 = vld [vmem:[%s1216_s0 + $0x4] sm:$0xf] }
   0xb   :  { %421 = vmatpush.bf16.msra.mxu1 %v798_v7  ;;  %v579_v30 = vld [vmem:[%s1216_s0 + $0x8] sm:$0xf]  ;;  %v763_v31 = vld [vmem:[%s1216_s0 + $0x10] sm:$0xf0]  ;;  %v572_v32 = vor.u32 %v762_v25, %v571_v24  ;;  %v576_v34 = vor.u32 %v761_v28, %v573_v29  ;;  %v583_v36 = vld [vmem:[%s1216_s0 + $0x18] sm:$0xf] }
   0xc   :  { %470 = vmatpush.bf16.msra.mxu2 %v940_v8  ;;  %v580_v35 = vor.u32 %v763_v31, %v579_v30  ;;  %v765_v37 = vld [vmem:[%s1216_s0 + $0x20] sm:$0xf0]  ;;  %v655_v38 = vld [vmem:[%s1216_s0 + $0xa8] sm:$0xf]  ;;  %v783_v39 = vld [vmem:[%s1216_s0 + $0xb0] sm:$0xf0] }
   0xd   :  { %v764_v40 = vld [vmem:[%s1216_s0 + $0x1c] sm:$0xf]  ;;  %v585_v41 = vld [vmem:[%s1216_s0 + $0x24] sm:$0xf0]  ;;  %v591_v42 = vld [vmem:[%s1216_s0 + $0x20] sm:$0xf]  ;;  %v584_v44 = vor.u32 %v765_v37, %v583_v36  ;;  %v656_v45 = vor.u32 %v783_v39, %v655_v38 }
   0xe   :  { %373 = vmatpush.bf16.msra.mxu0 %v789_v9  ;;  %859 = vmatpush.bf16.msra.mxu3 %v789_v9  ;;  %v766_v43 = vld [vmem:[%s1216_s0 + $0x28] sm:$0xf0]  ;;  %v588_v46 = vor.u32 %v764_v40, %v585_v41  ;;  %v595_v48 = vld [vmem:[%s1216_s0 + $0x30] sm:$0xf]  ;;  %v768_v49 = vld [vmem:[%s1216_s0 + $0x38] sm:$0xf0] }
   0xf   :  { %422 = vmatpush.bf16.msra.mxu1 %v797_v10  ;;  %v592_v47 = vor.u32 %v766_v43, %v591_v42  ;;  %v767_v50 = vld [vmem:[%s1216_s0 + $0x34] sm:$0xf]  ;;  %v645_v52 = vld [vmem:[%s1216_s0 + $0x9c] sm:$0xf0]  ;;  %v603_v54 = vld [vmem:[%s1216_s0 + $0x38] sm:$0xf]  ;;  %v596_v56 = vor.u32 %v768_v49, %v595_v48 }
  0x10   :  { %471 = vmatpush.bf16.msra.mxu2 %v952_v11  ;;  %v779_v51 = vld [vmem:[%s1216_s0 + $0x94] sm:$0xf]  ;;  %v597_v53 = vld [vmem:[%s1216_s0 + $0x3c] sm:$0xf0]  ;;  %v769_v55 = vld [vmem:[%s1216_s0 + $0x40] sm:$0xf0] }
  0x11   :  { %v648_v57 = vor.u32 %v779_v51, %v645_v52  ;;  %v600_v58 = vor.u32 %v767_v50, %v597_v53  ;;  %v604_v59 = vor.u32 %v769_v55, %v603_v54  ;;  %v607_v60 = vld [vmem:[%s1216_s0 + $0x48] sm:$0xf]  ;;  %v771_v61 = vld [vmem:[%s1216_s0 + $0x50] sm:$0xf0]  ;;  %v770_v62 = vld [vmem:[%s1216_s0 + $0x4c] sm:$0xf] }
  0x12   :  { %374 = vmatpush.bf16.msra.mxu0 %v788_v12  ;;  %860 = vmatpush.bf16.msra.mxu3 %v788_v12  ;;  %v782_v63 = vld [vmem:[%s1216_s0 + $0xac] sm:$0xf]  ;;  %v657_v0 = vld [vmem:[%s1216_s0 + $0xb4] sm:$0xf0]  ;;  %v772_v3 = vld [vmem:[%s1216_s0 + $0x58] sm:$0xf0] }
  0x13   :  { %423 = vmatpush.bf16.msra.mxu1 %v796_v13  ;;  %v774_v9 = vld [vmem:[%s1216_s0 + $0x68] sm:$0xf0]  ;;  %v781_v12 = vld [vmem:[%s1216_s0 + $0xa0] sm:$0xf0]  ;;  %v784_v24 = vld [vmem:[%s1216_s0 + $0xb8] sm:$0xf0] }
  0x14   :  { %472 = vmatpush.bf16.msra.mxu2 %v964_v14  ;;  %v633_v25 = vld [vmem:[%s1216_s0 + $0x84] sm:$0xf0]  ;;  %v639_v26 = vld [vmem:[%s1216_s0 + $0x80] sm:$0xf]  ;;  %v778_v27 = vld [vmem:[%s1216_s0 + $0x88] sm:$0xf0] }
  0x15   :  { %v640_v31 = vor.u32 %v778_v27, %v639_v26 }
  0x16   :  { %375 = vmatpush.bf16.msra.mxu0 %v787_v15  ;;  %861 = vmatpush.bf16.msra.mxu3 %v787_v15  ;;  %v775_v15 = vld [vmem:[%s1216_s0 + $0x70] sm:$0xf0] }
  0x17   :  { %424 = vmatpush.bf16.msra.mxu1 %v795_v16 }
  0x18   :  { %473 = vmatpush.bf16.msra.mxu2 %v976_v17 }
  0x1a   :  { %376 = vmatpush.bf16.msra.mxu0 %v786_v18  ;;  %862 = vmatpush.bf16.msra.mxu3 %v786_v18 }
  0x1b   :  { %425 = vmatpush.bf16.msra.mxu1 %v794_v19 }
  0x1c   :  { %474 = vmatpush.bf16.msra.mxu2 %v988_v20 }
  0x1e   :  { %377 = vmatpush.bf16.msra.mxu0 %v785_v21  ;;  %863 = vmatpush.bf16.msra.mxu3 %v785_v21  ;;  %v777_v21 = vld [vmem:[%s1216_s0 + $0x80] sm:$0xf0] }
  0x1f   :  { %426 = vmatpush.bf16.msra.mxu1 %v793_v22 }
  0x20   :  { %475 = vmatpush.bf16.msra.mxu2 %v999_v23 }
  0x21   :  { %378 = vmatmul.bf16.vlgmr.msra.gmra.mxu0 %v572_v32  ;;  %408 = vmatmul.bf16.vlgmr.msra.gmra.mxu3 %v644_v33 }
  0x22   :  { %864 = vmatpush.bf16.msrb.mxu3 %v907_v1  ;;  %427 = vmatmul.bf16.vlgmr.msra.gmra.mxu1 %v576_v34  ;;  %v609_v1 = vld [vmem:[%s1216_s0 + $0x54] sm:$0xf0]  ;;  %v1160_v34 = vld [vmem:[%s1215_s2] ss:$0 sm:$0xff] }
  0x23   :  { %476 = vmatmul.bf16.vlgmr.msra.gmra.mxu2 %v580_v35  ;;  %v612_v6 = vor.u32 %v770_v62, %v609_v1 }
  0x26   :  { %865 = vmatpush.bf16.msrb.mxu3 %v922_v4  ;;  %v608_v4 = vor.u32 %v771_v61, %v607_v60 }
  0x2a   :  { %866 = vmatpush.bf16.msrb.mxu3 %v798_v7 }
  0x2e   :  { %867 = vmatpush.bf16.msrb.mxu3 %v797_v10  ;;  %v773_v10 = vld [vmem:[%s1216_s0 + $0x64] sm:$0xf] }
  0x31   :  { %383 = vmatmul.bf16.gmra.mxu0 %v584_v44  ;;  %413 = vmatmul.bf16.gmra.mxu3 %v656_v45 }
  0x32   :  { %868 = vmatpush.bf16.msrb.mxu3 %v796_v13  ;;  %432 = vmatmul.bf16.gmra.mxu1 %v588_v46  ;;  %v621_v13 = vld [vmem:[%s1216_s0 + $0x6c] sm:$0xf0] }
  0x33   :  { %481 = vmatmul.bf16.gmra.mxu2 %v592_v47  ;;  %v624_v18 = vor.u32 %v773_v10, %v621_v13 }
  0x36   :  { %869 = vmatpush.bf16.msrb.mxu3 %v795_v16 }
  0x3a   :  { %870 = vmatpush.bf16.msrb.mxu3 %v794_v19 }
  0x3e   :  { %871 = vmatpush.bf16.msrb.mxu3 %v793_v22  ;;  %v776_v22 = vld [vmem:[%s1216_s0 + $0x7c] sm:$0xf] }
  0x3f   :  { %v636_v30 = vor.u32 %v776_v22, %v633_v25 }
  0x41   :  { %388 = vmatmul.bf16.gmra.mxu0 %v596_v56  ;;  %457 = vmatmul.bf16.vlgmr.msrb.gmra.mxu3 %v648_v57 }
  0x42   :  { %872 = vmatpush.bf16.msra.mxu3 %v912_v2  ;;  %437 = vmatmul.bf16.gmra.mxu1 %v600_v58  ;;  %v615_v2 = vld [vmem:[%s1216_s0 + $0x50] sm:$0xf] }
  0x43   :  { %486 = vmatmul.bf16.gmra.mxu2 %v604_v59  ;;  %v616_v7 = vor.u32 %v772_v3, %v615_v2 }
  0x46   :  { %873 = vmatpush.bf16.msra.mxu3 %v927_v5  ;;  %v660_v5 = vor.u32 %v782_v63, %v657_v0 }
  0x4a   :  { %874 = vmatpush.bf16.msra.mxu3 %v940_v8  ;;  %v619_v8 = vld [vmem:[%s1216_s0 + $0x60] sm:$0xf] }
  0x4b   :  { %v620_v16 = vor.u32 %v774_v9, %v619_v8 }
  0x4e   :  { %875 = vmatpush.bf16.msra.mxu3 %v952_v11  ;;  %v651_v11 = vld [vmem:[%s1216_s0 + $0x98] sm:$0xf] }
  0x51   :  { %393 = vmatmul.bf16.gmra.mxu0 %v608_v4  ;;  %462 = vmatmul.bf16.gmra.mxu3 %v660_v5 }
  0x52   :  { %876 = vmatpush.bf16.msra.mxu3 %v964_v14  ;;  %442 = vmatmul.bf16.gmra.mxu1 %v612_v6  ;;  %v627_v14 = vld [vmem:[%s1216_s0 + $0x68] sm:$0xf] }
  0x53   :  { %491 = vmatmul.bf16.gmra.mxu2 %v616_v7  ;;  %v628_v19 = vor.u32 %v775_v15, %v627_v14 }
  0x56   :  { %877 = vmatpush.bf16.msra.mxu3 %v976_v17  ;;  %v652_v17 = vor.u32 %v781_v12, %v651_v11 }
  0x5a   :  { %878 = vmatpush.bf16.msra.mxu3 %v988_v20  ;;  %v631_v20 = vld [vmem:[%s1216_s0 + $0x78] sm:$0xf] }
  0x5b   :  { %v632_v28 = vor.u32 %v777_v21, %v631_v20 }
  0x5e   :  { %879 = vmatpush.bf16.msra.mxu3 %v999_v23  ;;  %v663_v23 = vld [vmem:[%s1216_s0 + $0xb0] sm:$0xf] }
  0x5f   :  { %v664_v29 = vor.u32 %v784_v24, %v663_v23 }
  0x61   :  { %398 = vmatmul.bf16.gmra.mxu0 %v620_v16  ;;  %506 = vmatmul.bf16.vlgmr.msra.gmra.mxu3 %v652_v17 }
  0x62   :  { %447 = vmatmul.bf16.gmra.mxu1 %v624_v18 }
  0x63   :  { %496 = vmatmul.bf16.gmra.mxu2 %v628_v19 }
  0x71   :  { %403 = vmatmul.bf16.gmra.mxu0 %v632_v28  ;;  %511 = vmatmul.bf16.gmra.mxu3 %v664_v29 }
  0x72   :  { %452 = vmatmul.bf16.gmra.mxu1 %v636_v30 }
  0x73   :  { %501 = vmatmul.bf16.gmra.mxu2 %v640_v31 }
  0x9e   :  { %v379_v32 = vpop.f32.mrf.mxu0 }
  0x9f   :  { %v428_v33 = vpop.f32.mrf.mxu1  ;;  %v380_v35 = vadd.f32 %v1160_v34, %v379_v32 }
  0xa1   :  { %v429_v40 = vadd.f32 %v428_v33, %v380_v35 }
  0xa4   :  { %v1163_v36 = vpop.f32.mrf.mxu3 }
  0xa6   :  { %v477_v37 = vpop.f32.mrf.mxu2  ;;  %v381_v38 = vpop.f32.mrf.mxu0 }
  0xa7   :  { %v430_v39 = vpop.f32.mrf.mxu1  ;;  %v382_v41 = vadd.f32 %v1160_v34, %v381_v38  ;;  %v478_v42 = vadd.f32 %v477_v37, %v429_v40 }
  0xa9   :  { %v431_v43 = vadd.f32 %v430_v39, %v382_v41  ;;  %v517_v49 = vmax.f32 %v478_v42, 0.0 }
  0xac   :  { %v1166_v44 = vpop.f32.mrf.mxu3 }
  0xae   :  { %v479_v45 = vpop.f32.mrf.mxu2  ;;  %v384_v47 = vpop.f32.mrf.mxu0 }
  0xaf   :  { %v480_v46 = vadd.f32 %v479_v45, %v431_v43  ;;  %v433_v48 = vpop.f32.mrf.mxu1  ;;  %v385_v52 = vadd.f32 %v1160_v34, %v384_v47 }
  0xb1   :  { %v518_v50 = vmax.f32 %v480_v46, 0.0  ;;  %v434_v57 = vadd.f32 %v433_v48, %v385_v52  ;;  %v410_v46 = vadd.f32 %v1160_v34, %v1163_v36 }
  0xb3   :  { %v812_v51 = vpack.c.bf16 %v518_v50, %v517_v49  ;;  %v412_v50 = vadd.f32 %v1160_v34, %v1166_v44 }
  0xb4   :  { %v1172_v53 = vpop.f32.mrf.mxu3 }
  0xb5   :  { %813 = vst [vmem:[%s1217_s3] sm:$0xff] %v812_v51  }
  0xb6   :  { %v482_v54 = vpop.f32.mrf.mxu2  ;;  %v386_v55 = vpop.f32.mrf.mxu0 }
  0xb7   :  { %v435_v56 = vpop.f32.mrf.mxu1  ;;  %v387_v58 = vadd.f32 %v1160_v34, %v386_v55  ;;  %v483_v59 = vadd.f32 %v482_v54, %v434_v57 }
  0xb9   :  { %v436_v60 = vadd.f32 %v435_v56, %v387_v58  ;;  %v519_v2 = vmax.f32 %v483_v59, 0.0 }
  0xbc   :  { %v1175_v61 = vpop.f32.mrf.mxu3 }
  0xbe   :  { %v484_v62 = vpop.f32.mrf.mxu2  ;;  %v389_v0 = vpop.f32.mrf.mxu0 }
  0xbf   :  { %v485_v63 = vadd.f32 %v484_v62, %v436_v60  ;;  %v438_v1 = vpop.f32.mrf.mxu1  ;;  %v390_v5 = vadd.f32 %v1160_v34, %v389_v0 }
  0xc1   :  { %v520_v3 = vmax.f32 %v485_v63, 0.0  ;;  %v439_v10 = vadd.f32 %v438_v1, %v390_v5 }
  0xc3   :  { %v817_v4 = vpack.c.bf16 %v520_v3, %v519_v2 }
  0xc4   :  { %v458_v6 = vpop.f32.mrf.mxu3 }
  0xc5   :  { %849 = vst [vmem:[%s1217_s3 + $0x8] sm:$0xff] %v817_v4   ;;  %v459_v51 = vadd.f32 %v458_v6, %v410_v46 }
  0xc6   :  { %v487_v7 = vpop.f32.mrf.mxu2  ;;  %v391_v8 = vpop.f32.mrf.mxu0 }
  0xc7   :  { %v440_v9 = vpop.f32.mrf.mxu1  ;;  %v392_v11 = vadd.f32 %v1160_v34, %v391_v8  ;;  %v488_v12 = vadd.f32 %v487_v7, %v439_v10  ;;  %v415_v8 = vadd.f32 %v1160_v34, %v1172_v53 }
  0xc9   :  { %v441_v13 = vadd.f32 %v440_v9, %v392_v11  ;;  %v521_v19 = vmax.f32 %v488_v12, 0.0  ;;  %v417_v11 = vadd.f32 %v1160_v34, %v1175_v61 }
  0xcc   :  { %v460_v14 = vpop.f32.mrf.mxu3 }
  0xcd   :  { %v461_v52 = vadd.f32 %v460_v14, %v412_v50 }
  0xce   :  { %v489_v15 = vpop.f32.mrf.mxu2  ;;  %v394_v17 = vpop.f32.mrf.mxu0 }
  0xcf   :  { %v490_v16 = vadd.f32 %v489_v15, %v441_v13  ;;  %v443_v18 = vpop.f32.mrf.mxu1  ;;  %v395_v22 = vadd.f32 %v1160_v34, %v394_v17 }
  0xd1   :  { %v522_v20 = vmax.f32 %v490_v16, 0.0  ;;  %v444_v27 = vadd.f32 %v443_v18, %v395_v22 }
  0xd3   :  { %v822_v21 = vpack.c.bf16 %v522_v20, %v521_v19 }
  0xd4   :  { %v463_v23 = vpop.f32.mrf.mxu3 }
  0xd5   :  { %850 = vst [vmem:[%s1217_s3 + $0x10] sm:$0xff] %v822_v21   ;;  %v464_v12 = vadd.f32 %v463_v23, %v415_v8 }
  0xd6   :  { %v492_v24 = vpop.f32.mrf.mxu2  ;;  %v396_v25 = vpop.f32.mrf.mxu0 }
  0xd7   :  { %v445_v26 = vpop.f32.mrf.mxu1  ;;  %v397_v28 = vadd.f32 %v1160_v34, %v396_v25  ;;  %v493_v29 = vadd.f32 %v492_v24, %v444_v27 }
  0xd9   :  { %v446_v30 = vadd.f32 %v445_v26, %v397_v28  ;;  %v523_v38 = vmax.f32 %v493_v29, 0.0 }
  0xdc   :  { %v465_v31 = vpop.f32.mrf.mxu3 }
  0xdd   :  { %v466_v13 = vadd.f32 %v465_v31, %v417_v11 }
  0xde   :  { %v494_v32 = vpop.f32.mrf.mxu2  ;;  %v399_v35 = vpop.f32.mrf.mxu0 }
  0xdf   :  { %v495_v33 = vadd.f32 %v494_v32, %v446_v30  ;;  %v448_v37 = vpop.f32.mrf.mxu1  ;;  %v400_v41 = vadd.f32 %v1160_v34, %v399_v35 }
  0xe1   :  { %v524_v39 = vmax.f32 %v495_v33, 0.0  ;;  %v449_v48 = vadd.f32 %v448_v37, %v400_v41 }
  0xe3   :  { %v827_v40 = vpack.c.bf16 %v524_v39, %v523_v38 }
  0xe4   :  { %v507_v42 = vpop.f32.mrf.mxu3 }
  0xe5   :  { %851 = vst [vmem:[%s1217_s3 + $0x18] sm:$0xff] %v827_v40   ;;  %v508_v54 = vadd.f32 %v507_v42, %v459_v51 }
  0xe6   :  { %v497_v43 = vpop.f32.mrf.mxu2  ;;  %v401_v45 = vpop.f32.mrf.mxu0 }
  0xe7   :  { %v450_v47 = vpop.f32.mrf.mxu1  ;;  %v402_v49 = vadd.f32 %v1160_v34, %v401_v45  ;;  %v498_v55 = vadd.f32 %v497_v43, %v449_v48  ;;  %v529_v63 = vmax.f32 %v508_v54, 0.0 }
  0xe9   :  { %v451_v56 = vadd.f32 %v450_v47, %v402_v49  ;;  %v525_v36 = vmax.f32 %v498_v55, 0.0 }
  0xec   :  { %v509_v57 = vpop.f32.mrf.mxu3 }
  0xed   :  { %v510_v59 = vadd.f32 %v509_v57, %v461_v52 }
  0xee   :  { %v499_v58 = vpop.f32.mrf.mxu2  ;;  %v404_v62 = vpop.f32.mrf.mxu0 }
  0xef   :  { %v500_v60 = vadd.f32 %v499_v58, %v451_v56  ;;  %v530_v0 = vmax.f32 %v510_v59, 0.0  ;;  %v453_v3 = vpop.f32.mrf.mxu1  ;;  %v405_v44 = vadd.f32 %v1160_v34, %v404_v62 }
  0xf1   :  { %v526_v1 = vmax.f32 %v500_v60, 0.0  ;;  %v842_v2 = vpack.c.bf16 %v530_v0, %v529_v63  ;;  %v454_v9 = vadd.f32 %v453_v3, %v405_v44 }
  0xf3   :  { %v832_v4 = vpack.c.bf16 %v526_v1, %v525_v36  ;;  %854 = vst [vmem:[%s1217_s3 + $0x30] sm:$0xff] %v842_v2  }
  0xf4   :  { %v512_v5 = vpop.f32.mrf.mxu3 }
  0xf5   :  { %852 = vst [vmem:[%s1217_s3 + $0x20] sm:$0xff] %v832_v4   ;;  %v513_v14 = vadd.f32 %v512_v5, %v464_v12 }
  0xf6   :  { %v502_v6 = vpop.f32.mrf.mxu2  ;;  %v406_v7 = vpop.f32.mrf.mxu0 }
  0xf7   :  { %v407_v10 = vadd.f32 %v1160_v34, %v406_v7  ;;  %v455_v15 = vpop.f32.mrf.mxu1  ;;  %v503_v16 = vadd.f32 %v502_v6, %v454_v9  ;;  %v531_v22 = vmax.f32 %v513_v14, 0.0 }
  0xf9   :  { %v456_v17 = vadd.f32 %v455_v15, %v407_v10  ;;  %v527_v25 = vmax.f32 %v503_v16, 0.0 }
  0xfc   :  { %v514_v18 = vpop.f32.mrf.mxu3 }
  0xfd   :  { %v515_v20 = vadd.f32 %v514_v18, %v466_v13 }
  0xfe   :  { %v504_v19 = vpop.f32.mrf.mxu2 }
  0xff   :  { %v505_v21 = vadd.f32 %v504_v19, %v456_v17  ;;  %v532_v24 = vmax.f32 %v515_v20, 0.0 }
 0x101   :  { %v528_v53 = vmax.f32 %v505_v21, 0.0  ;;  %v847_v26 = vpack.c.bf16 %v532_v24, %v531_v22 }
 0x103   :  { %v837_v27 = vpack.c.bf16 %v528_v53, %v527_v25  ;;  %855 = vst [vmem:[%s1217_s3 + $0x38] sm:$0xff] %v847_v26  }
 0x105   :  { %853 = vst [vmem:[%s1217_s3 + $0x28] sm:$0xff] %v837_v27  }

// kernel: forward.11
= control target key start
LH: loop header
LB: loop body
LE: loop exit
PB: predicated region body
PF: predicated region fallthrough
CT: control target
= control target key end

     0   :  { %s1177_s1 = inlined_call_operand.vmem [shape: bf16[768,128], index: 1, kind: input, shape index: {}]   ;;  %s1178_s2 = inlined_call_operand.vmem [shape: f32[1,128], index: 2, kind: input, shape index: {}]   ;;  %s1179_s0 = inlined_call_operand.vmem [shape: bf16[32,768], index: 0, kind: input, shape index: {}]   ;;  %s1180_s3 = inlined_call_operand.vmem [shape: bf16[32,128], index: 3, kind: output, shape index: {}]  }
   0x1   :  { %v863_v0 = vld [vmem:[%s1177_s1 + $0x38] sm:$0xff]  ;;  %v862_v4 = vld [vmem:[%s1177_s1 + $0x30] sm:$0xff]  ;;  %v861_v8 = vld [vmem:[%s1177_s1 + $0x28] sm:$0xff] }
   0x2   :  { %v871_v1 = vld [vmem:[%s1177_s1 + $0x78] sm:$0xff]  ;;  %474 = vmatpush.bf16.msra.mxu0 %v863_v0  ;;  %v870_v5 = vld [vmem:[%s1177_s1 + $0x70] sm:$0xff]  ;;  %v869_v9 = vld [vmem:[%s1177_s1 + $0x68] sm:$0xff] }
   0x3   :  { %v879_v2 = vld [vmem:[%s1177_s1 + $0xb8] sm:$0xff]  ;;  %493 = vmatpush.bf16.msra.mxu1 %v871_v1  ;;  %v878_v6 = vld [vmem:[%s1177_s1 + $0xb0] sm:$0xff]  ;;  %v877_v10 = vld [vmem:[%s1177_s1 + $0xa8] sm:$0xff] }
   0x4   :  { %v887_v3 = vld [vmem:[%s1177_s1 + $0xf8] sm:$0xff]  ;;  %512 = vmatpush.bf16.msra.mxu2 %v879_v2  ;;  %v886_v7 = vld [vmem:[%s1177_s1 + $0xf0] sm:$0xff]  ;;  %v885_v11 = vld [vmem:[%s1177_s1 + $0xe8] sm:$0xff] }
   0x5   :  { %531 = vmatpush.bf16.msra.mxu3 %v887_v3  ;;  %v860_v12 = vld [vmem:[%s1177_s1 + $0x20] sm:$0xff]  ;;  %v859_v16 = vld [vmem:[%s1177_s1 + $0x18] sm:$0xff]  ;;  %v858_v20 = vld [vmem:[%s1177_s1 + $0x10] sm:$0xff] }
   0x6   :  { %475 = vmatpush.bf16.msra.mxu0 %v862_v4  ;;  %v868_v13 = vld [vmem:[%s1177_s1 + $0x60] sm:$0xff]  ;;  %v867_v17 = vld [vmem:[%s1177_s1 + $0x58] sm:$0xff]  ;;  %v866_v21 = vld [vmem:[%s1177_s1 + $0x50] sm:$0xff] }
   0x7   :  { %494 = vmatpush.bf16.msra.mxu1 %v870_v5  ;;  %v876_v14 = vld [vmem:[%s1177_s1 + $0xa0] sm:$0xff]  ;;  %v875_v18 = vld [vmem:[%s1177_s1 + $0x98] sm:$0xff]  ;;  %v874_v22 = vld [vmem:[%s1177_s1 + $0x90] sm:$0xff] }
   0x8   :  { %513 = vmatpush.bf16.msra.mxu2 %v878_v6  ;;  %v884_v15 = vld [vmem:[%s1177_s1 + $0xe0] sm:$0xff]  ;;  %v883_v19 = vld [vmem:[%s1177_s1 + $0xd8] sm:$0xff]  ;;  %v882_v23 = vld [vmem:[%s1177_s1 + $0xd0] sm:$0xff] }
   0x9   :  { %532 = vmatpush.bf16.msra.mxu3 %v886_v7  ;;  %v857_v24 = vld [vmem:[%s1177_s1 + $0x8] sm:$0xff]  ;;  %v856_v28 = vld [vmem:[%s1177_s1] sm:$0xff]  ;;  %v847_v33 = vld [vmem:[%s1179_s0 + $0x14] sm:$0xf0] }
   0xa   :  { %476 = vmatpush.bf16.msra.mxu0 %v861_v8  ;;  %v865_v25 = vld [vmem:[%s1177_s1 + $0x48] sm:$0xff]  ;;  %v864_v29 = vld [vmem:[%s1177_s1 + $0x40] sm:$0xff]  ;;  %v608_v35 = vld [vmem:[%s1179_s0 + $0x18] sm:$0xf0] }
   0xb   :  { %495 = vmatpush.bf16.msra.mxu1 %v869_v9  ;;  %v873_v26 = vld [vmem:[%s1177_s1 + $0x88] sm:$0xff]  ;;  %v872_v30 = vld [vmem:[%s1177_s1 + $0x80] sm:$0xff]  ;;  %v895_v40 = vld [vmem:[%s1177_s1 + $0x138] sm:$0xff] }
   0xc   :  { %514 = vmatpush.bf16.msra.mxu2 %v877_v10  ;;  %v881_v27 = vld [vmem:[%s1177_s1 + $0xc8] sm:$0xff]  ;;  %v880_v31 = vld [vmem:[%s1177_s1 + $0xc0] sm:$0xff]  ;;  %v903_v45 = vld [vmem:[%s1177_s1 + $0x178] sm:$0xff] }
   0xd   :  { %533 = vmatpush.bf16.msra.mxu3 %v885_v11  ;;  %v606_v32 = vld [vmem:[%s1179_s0] sm:$0xf]  ;;  %v844_v34 = vld [vmem:[%s1179_s0 + $0x4] sm:$0xf]  ;;  %v614_v36 = vld [vmem:[%s1179_s0 + $0x8] sm:$0xf] }
   0xe   :  { %477 = vmatpush.bf16.msra.mxu0 %v860_v12  ;;  %v848_v37 = vld [vmem:[%s1179_s0 + $0x1c] sm:$0xf0]  ;;  %v845_v38 = vld [vmem:[%s1179_s0 + $0xc] sm:$0xf]  ;;  %v616_v39 = vld [vmem:[%s1179_s0 + $0x20] sm:$0xf0]  ;;  %v607_v41 = vor.u32 %v847_v33, %v606_v32  ;;  %v611_v42 = vor.u32 %v844_v34, %v608_v35 }
   0xf   :  { %496 = vmatpush.bf16.msra.mxu1 %v868_v13  ;;  %v615_v43 = vor.u32 %v848_v37, %v614_v36  ;;  %v619_v44 = vor.u32 %v845_v38, %v616_v39  ;;  %v894_v46 = vld [vmem:[%s1177_s1 + $0x130] sm:$0xff]  ;;  %v893_v48 = vld [vmem:[%s1177_s1 + $0x128] sm:$0xff]  ;;  %v892_v50 = vld [vmem:[%s1177_s1 + $0x120] sm:$0xff] }
  0x10   :  { %515 = vmatpush.bf16.msra.mxu2 %v876_v14  ;;  %v902_v47 = vld [vmem:[%s1177_s1 + $0x170] sm:$0xff]  ;;  %v901_v49 = vld [vmem:[%s1177_s1 + $0x168] sm:$0xff]  ;;  %v900_v51 = vld [vmem:[%s1177_s1 + $0x160] sm:$0xff] }
  0x11   :  { %534 = vmatpush.bf16.msra.mxu3 %v884_v15  ;;  %v630_v52 = vld [vmem:[%s1179_s0 + $0x30] sm:$0xf]  ;;  %v853_v53 = vld [vmem:[%s1179_s0 + $0x44] sm:$0xf0]  ;;  %v850_v54 = vld [vmem:[%s1179_s0 + $0x34] sm:$0xf] }
  0x12   :  { %478 = vmatpush.bf16.msra.mxu0 %v859_v16  ;;  %v632_v55 = vld [vmem:[%s1179_s0 + $0x48] sm:$0xf0]  ;;  %v638_v56 = vld [vmem:[%s1179_s0 + $0x38] sm:$0xf]  ;;  %v854_v57 = vld [vmem:[%s1179_s0 + $0x4c] sm:$0xf0]  ;;  %v631_v61 = vor.u32 %v853_v53, %v630_v52 }
  0x13   :  { %497 = vmatpush.bf16.msra.mxu1 %v867_v17  ;;  %v851_v58 = vld [vmem:[%s1179_s0 + $0x3c] sm:$0xf]  ;;  %v640_v59 = vld [vmem:[%s1179_s0 + $0x50] sm:$0xf0]  ;;  %v635_v62 = vor.u32 %v850_v54, %v632_v55  ;;  %v639_v63 = vor.u32 %v854_v57, %v638_v56  ;;  %v889_v4 = vld [vmem:[%s1177_s1 + $0x108] sm:$0xff] }
  0x14   :  { %516 = vmatpush.bf16.msra.mxu2 %v875_v18  ;;  %v891_v60 = vld [vmem:[%s1177_s1 + $0x118] sm:$0xff]  ;;  %v643_v0 = vor.u32 %v851_v58, %v640_v59  ;;  %v890_v2 = vld [vmem:[%s1177_s1 + $0x110] sm:$0xff]  ;;  %v897_v5 = vld [vmem:[%s1177_s1 + $0x148] sm:$0xff] }
  0x15   :  { %535 = vmatpush.bf16.msra.mxu3 %v883_v19  ;;  %v899_v1 = vld [vmem:[%s1177_s1 + $0x158] sm:$0xff]  ;;  %v898_v3 = vld [vmem:[%s1177_s1 + $0x150] sm:$0xff]  ;;  %v888_v6 = vld [vmem:[%s1177_s1 + $0x100] sm:$0xff] }
  0x16   :  { %479 = vmatpush.bf16.msra.mxu0 %v858_v20  ;;  %v896_v7 = vld [vmem:[%s1177_s1 + $0x140] sm:$0xff]  ;;  %v622_v8 = vld [vmem:[%s1179_s0 + $0x10] sm:$0xf]  ;;  %v849_v9 = vld [vmem:[%s1179_s0 + $0x24] sm:$0xf0] }
  0x17   :  { %498 = vmatpush.bf16.msra.mxu1 %v866_v21  ;;  %v646_v10 = vld [vmem:[%s1179_s0 + $0x40] sm:$0xf]  ;;  %v855_v11 = vld [vmem:[%s1179_s0 + $0x54] sm:$0xf0]  ;;  %v846_v12 = vld [vmem:[%s1179_s0 + $0x14] sm:$0xf]  ;;  %v623_v16 = vor.u32 %v849_v9, %v622_v8 }
  0x18   :  { %517 = vmatpush.bf16.msra.mxu2 %v874_v22  ;;  %v624_v13 = vld [vmem:[%s1179_s0 + $0x28] sm:$0xf0]  ;;  %v852_v14 = vld [vmem:[%s1179_s0 + $0x44] sm:$0xf]  ;;  %v648_v15 = vld [vmem:[%s1179_s0 + $0x58] sm:$0xf0]  ;;  %v647_v17 = vor.u32 %v855_v11, %v646_v10 }
  0x19   :  { %536 = vmatpush.bf16.msra.mxu3 %v882_v23  ;;  %v627_v18 = vor.u32 %v846_v12, %v624_v13  ;;  %v651_v19 = vor.u32 %v852_v14, %v648_v15 }
  0x1a   :  { %480 = vmatpush.bf16.msra.mxu0 %v857_v24 }
  0x1b   :  { %499 = vmatpush.bf16.msra.mxu1 %v865_v25 }
  0x1c   :  { %518 = vmatpush.bf16.msra.mxu2 %v873_v26 }
  0x1d   :  { %537 = vmatpush.bf16.msra.mxu3 %v881_v27 }
  0x1e   :  { %481 = vmatpush.bf16.msra.mxu0 %v856_v28 }
  0x1f   :  { %500 = vmatpush.bf16.msra.mxu1 %v864_v29 }
  0x20   :  { %519 = vmatpush.bf16.msra.mxu2 %v872_v30  ;;  %v931_v30 = vld [vmem:[%s1178_s2] ss:$0 sm:$0xff] }
  0x21   :  { %538 = vmatpush.bf16.msra.mxu3 %v880_v31  ;;  %482 = vmatmul.bf16.vlgmr.msra.gmra.mxu0 %v607_v41 }
  0x22   :  { %550 = vmatpush.bf16.msrb.mxu0 %v895_v40  ;;  %501 = vmatmul.bf16.vlgmr.msra.gmra.mxu1 %v611_v42 }
  0x23   :  { %520 = vmatmul.bf16.vlgmr.msra.gmra.mxu2 %v615_v43  ;;  %569 = vmatpush.bf16.msrb.mxu1 %v903_v45 }
  0x24   :  { %915 = vmatpush.bf16.msrb.mxu2 %v895_v40  ;;  %539 = vmatmul.bf16.vlgmr.msra.gmra.mxu3 %v619_v44 }
  0x25   :  { %923 = vmatpush.bf16.msrb.mxu3 %v903_v45 }
  0x26   :  { %551 = vmatpush.bf16.msrb.mxu0 %v894_v46 }
  0x27   :  { %570 = vmatpush.bf16.msrb.mxu1 %v902_v47 }
  0x28   :  { %916 = vmatpush.bf16.msrb.mxu2 %v894_v46 }
  0x29   :  { %924 = vmatpush.bf16.msrb.mxu3 %v902_v47 }
  0x2a   :  { %552 = vmatpush.bf16.msrb.mxu0 %v893_v48 }
  0x2b   :  { %571 = vmatpush.bf16.msrb.mxu1 %v901_v49 }
  0x2c   :  { %917 = vmatpush.bf16.msrb.mxu2 %v893_v48 }
  0x2d   :  { %925 = vmatpush.bf16.msrb.mxu3 %v901_v49 }
  0x2e   :  { %553 = vmatpush.bf16.msrb.mxu0 %v892_v50 }
  0x2f   :  { %572 = vmatpush.bf16.msrb.mxu1 %v900_v51 }
  0x30   :  { %918 = vmatpush.bf16.msrb.mxu2 %v892_v50 }
  0x31   :  { %926 = vmatpush.bf16.msrb.mxu3 %v900_v51  ;;  %487 = vmatmul.bf16.gmra.mxu0 %v631_v61 }
  0x32   :  { %554 = vmatpush.bf16.msrb.mxu0 %v891_v60  ;;  %506 = vmatmul.bf16.gmra.mxu1 %v635_v62 }
  0x33   :  { %525 = vmatmul.bf16.gmra.mxu2 %v639_v63  ;;  %573 = vmatpush.bf16.msrb.mxu1 %v899_v1 }
  0x34   :  { %919 = vmatpush.bf16.msrb.mxu2 %v891_v60  ;;  %544 = vmatmul.bf16.gmra.mxu3 %v643_v0 }
  0x35   :  { %927 = vmatpush.bf16.msrb.mxu3 %v899_v1 }
  0x36   :  { %555 = vmatpush.bf16.msrb.mxu0 %v890_v2 }
  0x37   :  { %574 = vmatpush.bf16.msrb.mxu1 %v898_v3 }
  0x38   :  { %920 = vmatpush.bf16.msrb.mxu2 %v890_v2 }
  0x39   :  { %928 = vmatpush.bf16.msrb.mxu3 %v898_v3 }
  0x3a   :  { %556 = vmatpush.bf16.msrb.mxu0 %v889_v4 }
  0x3b   :  { %575 = vmatpush.bf16.msrb.mxu1 %v897_v5 }
  0x3c   :  { %921 = vmatpush.bf16.msrb.mxu2 %v889_v4 }
  0x3d   :  { %929 = vmatpush.bf16.msrb.mxu3 %v897_v5 }
  0x3e   :  { %557 = vmatpush.bf16.msrb.mxu0 %v888_v6 }
  0x3f   :  { %576 = vmatpush.bf16.msrb.mxu1 %v896_v7 }
  0x40   :  { %922 = vmatpush.bf16.msrb.mxu2 %v888_v6 }
  0x41   :  { %930 = vmatpush.bf16.msrb.mxu3 %v896_v7  ;;  %558 = vmatmul.bf16.vlgmr.msrb.gmra.mxu0 %v623_v16 }
  0x42   :  { %577 = vmatmul.bf16.vlgmr.msrb.gmra.mxu1 %v627_v18 }
  0x43   :  { %563 = vmatmul.bf16.vlgmr.msrb.gmra.mxu2 %v647_v17 }
  0x44   :  { %582 = vmatmul.bf16.vlgmr.msrb.gmra.mxu3 %v651_v19 }
  0x9e   :  { %v483_v20 = vpop.f32.mrf.mxu0 }
  0x9f   :  { %v502_v21 = vpop.f32.mrf.mxu1  ;;  %v484_v31 = vadd.f32 %v931_v30, %v483_v20 }
  0xa1   :  { %v503_v36 = vadd.f32 %v502_v21, %v484_v31 }
  0xa6   :  { %v521_v22 = vpop.f32.mrf.mxu2  ;;  %v485_v24 = vpop.f32.mrf.mxu0 }
  0xa7   :  { %v540_v23 = vpop.f32.mrf.mxu3  ;;  %v504_v25 = vpop.f32.mrf.mxu1  ;;  %v486_v37 = vadd.f32 %v931_v30, %v485_v24  ;;  %v522_v39 = vadd.f32 %v521_v22, %v503_v36 }
  0xa9   :  { %v505_v43 = vadd.f32 %v504_v25, %v486_v37  ;;  %v541_v46 = vadd.f32 %v540_v23, %v522_v39 }
  0xae   :  { %v523_v26 = vpop.f32.mrf.mxu2  ;;  %v488_v28 = vpop.f32.mrf.mxu0 }
  0xaf   :  { %v542_v27 = vpop.f32.mrf.mxu3  ;;  %v507_v29 = vpop.f32.mrf.mxu1  ;;  %v489_v38 = vadd.f32 %v931_v30, %v488_v28  ;;  %v524_v47 = vadd.f32 %v523_v26, %v505_v43 }
  0xb1   :  { %v508_v45 = vadd.f32 %v507_v29, %v489_v38  ;;  %v543_v51 = vadd.f32 %v542_v27, %v524_v47 }
  0xb6   :  { %v526_v32 = vpop.f32.mrf.mxu2  ;;  %v490_v34 = vpop.f32.mrf.mxu0 }
  0xb7   :  { %v545_v33 = vpop.f32.mrf.mxu3  ;;  %v509_v35 = vpop.f32.mrf.mxu1  ;;  %v491_v48 = vadd.f32 %v931_v30, %v490_v34  ;;  %v527_v50 = vadd.f32 %v526_v32, %v508_v45 }
  0xb9   :  { %v510_v53 = vadd.f32 %v509_v35, %v491_v48  ;;  %v546_v58 = vadd.f32 %v545_v33, %v527_v50 }
  0xbe   :  { %v528_v40 = vpop.f32.mrf.mxu2  ;;  %v559_v42 = vpop.f32.mrf.mxu0 }
  0xbf   :  { %v547_v41 = vpop.f32.mrf.mxu3  ;;  %v578_v44 = vpop.f32.mrf.mxu1  ;;  %v560_v49 = vadd.f32 %v559_v42, %v541_v46  ;;  %v529_v59 = vadd.f32 %v528_v40, %v510_v53 }
  0xc1   :  { %v579_v56 = vadd.f32 %v578_v44, %v560_v49  ;;  %v548_v1 = vadd.f32 %v547_v41, %v529_v59 }
  0xc3   :  { %v588_v63 = vmax.f32 %v579_v56, 0.0 }
  0xc6   :  { %v564_v52 = vpop.f32.mrf.mxu2  ;;  %v561_v55 = vpop.f32.mrf.mxu0 }
  0xc7   :  { %v583_v54 = vpop.f32.mrf.mxu3  ;;  %v562_v57 = vadd.f32 %v561_v55, %v543_v51  ;;  %v580_v60 = vpop.f32.mrf.mxu1  ;;  %v565_v62 = vadd.f32 %v564_v52, %v546_v58 }
  0xc9   :  { %v581_v61 = vadd.f32 %v580_v60, %v562_v57  ;;  %v584_v4 = vadd.f32 %v583_v54, %v565_v62 }
  0xcb   :  { %v589_v0 = vmax.f32 %v581_v61, 0.0  ;;  %v590_v8 = vmax.f32 %v584_v4, 0.0 }
  0xcd   :  { %v907_v2 = vpack.c.bf16 %v589_v0, %v588_v63 }
  0xce   :  { %v566_v3 = vpop.f32.mrf.mxu2 }
  0xcf   :  { %v567_v5 = vadd.f32 %v566_v3, %v548_v1  ;;  %908 = vst [vmem:[%s1180_s3] sm:$0xff] %v907_v2   ;;  %v585_v6 = vpop.f32.mrf.mxu3 }
  0xd1   :  { %v586_v7 = vadd.f32 %v585_v6, %v567_v5 }
  0xd3   :  { %v591_v9 = vmax.f32 %v586_v7, 0.0 }
  0xd5   :  { %v912_v10 = vpack.c.bf16 %v591_v9, %v590_v8 }
  0xd7   :  { %914 = vst [vmem:[%s1180_s3 + $0x8] sm:$0xff] %v912_v10  }

// kernel: forward.12
= control target key start
LH: loop header
LB: loop body
LE: loop exit
PB: predicated region body
PF: predicated region fallthrough
CT: control target
= control target key end

     0   :  { %s2574_s1 = inlined_call_operand.vmem [shape: bf16[896,256], index: 1, kind: input, shape index: {}]   ;;  %s2575_s0 = inlined_call_operand.vmem [shape: bf16[32,896], index: 0, kind: input, shape index: {}]   ;;  %s2576_s2 = inlined_call_operand.vmem [shape: f32[1,256], index: 2, kind: input, shape index: {}]   ;;  %s2577_s3 = inlined_call_operand.vmem [shape: bf16[32,256], index: 3, kind: output, shape index: {}]  }
   0x1   :  { %v1180_v0 = vld [vmem:[%s2574_s1 + $0x70] sm:$0xf]  ;;  %v1599_v1 = vld [vmem:[%s2574_s1 + $0x74] sm:$0xf0]  ;;  %v1172_v11 = vld [vmem:[%s2574_s1 + $0x60] sm:$0xf] }
   0x2   :  { %v1244_v2 = vld [vmem:[%s2574_s1 + $0xf0] sm:$0xf]  ;;  %v1181_v3 = vor.u32 %v1599_v1, %v1180_v0  ;;  %v1615_v4 = vld [vmem:[%s2574_s1 + $0xf4] sm:$0xf0]  ;;  %v1597_v13 = vld [vmem:[%s2574_s1 + $0x64] sm:$0xf0] }
   0x3   :  { %v1308_v5 = vld [vmem:[%s2574_s1 + $0x170] sm:$0xf]  ;;  %v1631_v6 = vld [vmem:[%s2574_s1 + $0x174] sm:$0xf0]  ;;  %v1245_v7 = vor.u32 %v1615_v4, %v1244_v2  ;;  %v1236_v14 = vld [vmem:[%s2574_s1 + $0xe0] sm:$0xf]  ;;  %v1173_v16 = vor.u32 %v1597_v13, %v1172_v11 }
   0x4   :  { %v1309_v8 = vor.u32 %v1631_v6, %v1308_v5  ;;  %v1372_v9 = vld [vmem:[%s2574_s1 + $0x1f0] sm:$0xf]  ;;  %v1647_v10 = vld [vmem:[%s2574_s1 + $0x1f4] sm:$0xf0]  ;;  %780 = vmatpush.bf16.msra.mxu0 %v1181_v3  ;;  %v1613_v15 = vld [vmem:[%s2574_s1 + $0xe4] sm:$0xf0] }
   0x5   :  { %v1373_v12 = vor.u32 %v1647_v10, %v1372_v9  ;;  %799 = vmatpush.bf16.msra.mxu1 %v1245_v7  ;;  %v1237_v17 = vor.u32 %v1613_v15, %v1236_v14  ;;  %v1300_v18 = vld [vmem:[%s2574_s1 + $0x160] sm:$0xf]  ;;  %v1629_v19 = vld [vmem:[%s2574_s1 + $0x164] sm:$0xf0]  ;;  %v1164_v23 = vld [vmem:[%s2574_s1 + $0x50] sm:$0xf] }
   0x6   :  { %818 = vmatpush.bf16.msra.mxu2 %v1309_v8  ;;  %v1364_v20 = vld [vmem:[%s2574_s1 + $0x1e0] sm:$0xf]  ;;  %v1301_v21 = vor.u32 %v1629_v19, %v1300_v18  ;;  %v1645_v22 = vld [vmem:[%s2574_s1 + $0x1e4] sm:$0xf0]  ;;  %v1595_v24 = vld [vmem:[%s2574_s1 + $0x54] sm:$0xf0] }
   0x7   :  { %837 = vmatpush.bf16.msra.mxu3 %v1373_v12  ;;  %v1365_v25 = vor.u32 %v1645_v22, %v1364_v20  ;;  %v1228_v26 = vld [vmem:[%s2574_s1 + $0xd0] sm:$0xf]  ;;  %v1611_v27 = vld [vmem:[%s2574_s1 + $0xd4] sm:$0xf0]  ;;  %v1165_v29 = vor.u32 %v1595_v24, %v1164_v23  ;;  %v1156_v35 = vld [vmem:[%s2574_s1 + $0x40] sm:$0xf] }
   0x8   :  { %v1292_v28 = vld [vmem:[%s2574_s1 + $0x150] sm:$0xf]  ;;  %781 = vmatpush.bf16.msra.mxu0 %v1173_v16  ;;  %v1627_v30 = vld [vmem:[%s2574_s1 + $0x154] sm:$0xf0]  ;;  %v1229_v33 = vor.u32 %v1611_v27, %v1228_v26  ;;  %v1593_v36 = vld [vmem:[%s2574_s1 + $0x44] sm:$0xf0] }
   0x9   :  { %v1356_v31 = vld [vmem:[%s2574_s1 + $0x1d0] sm:$0xf]  ;;  %v1643_v32 = vld [vmem:[%s2574_s1 + $0x1d4] sm:$0xf0]  ;;  %800 = vmatpush.bf16.msra.mxu1 %v1237_v17  ;;  %v1293_v34 = vor.u32 %v1627_v30, %v1292_v28  ;;  %v1220_v37 = vld [vmem:[%s2574_s1 + $0xc0] sm:$0xf]  ;;  %v1157_v44 = vor.u32 %v1593_v36, %v1156_v35 }
   0xa   :  { %819 = vmatpush.bf16.msra.mxu2 %v1301_v21  ;;  %v1357_v38 = vor.u32 %v1643_v32, %v1356_v31  ;;  %v1609_v39 = vld [vmem:[%s2574_s1 + $0xc4] sm:$0xf0]  ;;  %v1284_v40 = vld [vmem:[%s2574_s1 + $0x140] sm:$0xf]  ;;  %v1148_v47 = vld [vmem:[%s2574_s1 + $0x30] sm:$0xf] }
   0xb   :  { %838 = vmatpush.bf16.msra.mxu3 %v1365_v25  ;;  %v1625_v41 = vld [vmem:[%s2574_s1 + $0x144] sm:$0xf0]  ;;  %v1348_v42 = vld [vmem:[%s2574_s1 + $0x1c0] sm:$0xf]  ;;  %v1221_v45 = vor.u32 %v1609_v39, %v1220_v37  ;;  %v1591_v48 = vld [vmem:[%s2574_s1 + $0x34] sm:$0xf0] }
   0xc   :  { %v1641_v43 = vld [vmem:[%s2574_s1 + $0x1c4] sm:$0xf0]  ;;  %782 = vmatpush.bf16.msra.mxu0 %v1165_v29  ;;  %v1285_v46 = vor.u32 %v1625_v41, %v1284_v40  ;;  %v1212_v49 = vld [vmem:[%s2574_s1 + $0xb0] sm:$0xf]  ;;  %v1607_v51 = vld [vmem:[%s2574_s1 + $0xb4] sm:$0xf0]  ;;  %v1149_v56 = vor.u32 %v1591_v48, %v1148_v47 }
   0xd   :  { %801 = vmatpush.bf16.msra.mxu1 %v1229_v33  ;;  %v1349_v50 = vor.u32 %v1641_v43, %v1348_v42  ;;  %v1276_v52 = vld [vmem:[%s2574_s1 + $0x130] sm:$0xf]  ;;  %v1623_v53 = vld [vmem:[%s2574_s1 + $0x134] sm:$0xf0]  ;;  %v1213_v57 = vor.u32 %v1607_v51, %v1212_v49  ;;  %v1140_v59 = vld [vmem:[%s2574_s1 + $0x20] sm:$0xf] }
   0xe   :  { %820 = vmatpush.bf16.msra.mxu2 %v1293_v34  ;;  %v1340_v54 = vld [vmem:[%s2574_s1 + $0x1b0] sm:$0xf]  ;;  %v1639_v55 = vld [vmem:[%s2574_s1 + $0x1b4] sm:$0xf0]  ;;  %v1277_v58 = vor.u32 %v1623_v53, %v1276_v52  ;;  %v1589_v60 = vld [vmem:[%s2574_s1 + $0x24] sm:$0xf0] }
   0xf   :  { %839 = vmatpush.bf16.msra.mxu3 %v1357_v38  ;;  %v1204_v61 = vld [vmem:[%s2574_s1 + $0xa0] sm:$0xf]  ;;  %v1341_v62 = vor.u32 %v1639_v55, %v1340_v54  ;;  %v1605_v63 = vld [vmem:[%s2574_s1 + $0xa4] sm:$0xf0]  ;;  %v1141_v4 = vor.u32 %v1589_v60, %v1140_v59  ;;  %v1132_v7 = vld [vmem:[%s2574_s1 + $0x10] sm:$0xf] }
  0x10   :  { %783 = vmatpush.bf16.msra.mxu0 %v1157_v44  ;;  %v1268_v0 = vld [vmem:[%s2574_s1 + $0x120] sm:$0xf]  ;;  %v1621_v1 = vld [vmem:[%s2574_s1 + $0x124] sm:$0xf0]  ;;  %v1205_v5 = vor.u32 %v1605_v63, %v1204_v61  ;;  %v1587_v8 = vld [vmem:[%s2574_s1 + $0x14] sm:$0xf0] }
  0x11   :  { %802 = vmatpush.bf16.msra.mxu1 %v1221_v45  ;;  %v1332_v2 = vld [vmem:[%s2574_s1 + $0x1a0] sm:$0xf]  ;;  %v1637_v3 = vld [vmem:[%s2574_s1 + $0x1a4] sm:$0xf0]  ;;  %v1269_v6 = vor.u32 %v1621_v1, %v1268_v0  ;;  %v1196_v9 = vld [vmem:[%s2574_s1 + $0x90] sm:$0xf]  ;;  %v1133_v17 = vor.u32 %v1587_v8, %v1132_v7 }
  0x12   :  { %821 = vmatpush.bf16.msra.mxu2 %v1285_v46  ;;  %v1333_v10 = vor.u32 %v1637_v3, %v1332_v2  ;;  %v1603_v11 = vld [vmem:[%s2574_s1 + $0x94] sm:$0xf0]  ;;  %v1260_v12 = vld [vmem:[%s2574_s1 + $0x110] sm:$0xf]  ;;  %v1124_v16 = vld [vmem:[%s2574_s1] sm:$0xf] }
  0x13   :  { %840 = vmatpush.bf16.msra.mxu3 %v1349_v50  ;;  %v1619_v13 = vld [vmem:[%s2574_s1 + $0x114] sm:$0xf0]  ;;  %v1324_v14 = vld [vmem:[%s2574_s1 + $0x190] sm:$0xf]  ;;  %v1585_v18 = vld [vmem:[%s2574_s1 + $0x4] sm:$0xf0]  ;;  %v1197_v21 = vor.u32 %v1603_v11, %v1196_v9 }
  0x14   :  { %784 = vmatpush.bf16.msra.mxu0 %v1149_v56  ;;  %v1635_v15 = vld [vmem:[%s2574_s1 + $0x194] sm:$0xf0]  ;;  %v1188_v19 = vld [vmem:[%s2574_s1 + $0x80] sm:$0xf]  ;;  %v1601_v20 = vld [vmem:[%s2574_s1 + $0x84] sm:$0xf0]  ;;  %v1261_v22 = vor.u32 %v1619_v13, %v1260_v12  ;;  %v1125_v34 = vor.u32 %v1585_v18, %v1124_v16 }
  0x15   :  { %803 = vmatpush.bf16.msra.mxu1 %v1213_v57  ;;  %v1252_v23 = vld [vmem:[%s2574_s1 + $0x100] sm:$0xf]  ;;  %v1617_v24 = vld [vmem:[%s2574_s1 + $0x104] sm:$0xf0]  ;;  %v1325_v26 = vor.u32 %v1635_v15, %v1324_v14  ;;  %v1573_v29 = vld [vmem:[%s2575_s0 + $0x18] sm:$0xf0]  ;;  %v1189_v38 = vor.u32 %v1601_v20, %v1188_v19 }
  0x16   :  { %822 = vmatpush.bf16.msra.mxu2 %v1277_v58  ;;  %v1316_v25 = vld [vmem:[%s2574_s1 + $0x180] sm:$0xf]  ;;  %v1633_v27 = vld [vmem:[%s2574_s1 + $0x184] sm:$0xf0]  ;;  %v1570_v30 = vld [vmem:[%s2575_s0 + $0x4] sm:$0xf]  ;;  %v1253_v39 = vor.u32 %v1617_v24, %v1252_v23 }
  0x17   :  { %841 = vmatpush.bf16.msra.mxu3 %v1341_v62  ;;  %v1068_v28 = vld [vmem:[%s2575_s0] sm:$0xf]  ;;  %v1564_v32 = vld [vmem:[%s2574_s1 + $0x370] sm:$0xf]  ;;  %v1695_v33 = vld [vmem:[%s2574_s1 + $0x374] sm:$0xf0]  ;;  %v1317_v43 = vor.u32 %v1633_v27, %v1316_v25 }
  0x18   :  { %785 = vmatpush.bf16.msra.mxu0 %v1141_v4  ;;  %v1070_v31 = vld [vmem:[%s2575_s0 + $0x1c] sm:$0xf0]  ;;  %v1076_v35 = vld [vmem:[%s2575_s0 + $0x8] sm:$0xf]  ;;  %v1500_v36 = vld [vmem:[%s2574_s1 + $0x2f0] sm:$0xf]  ;;  %v1565_v44 = vor.u32 %v1695_v33, %v1564_v32  ;;  %v1969_v48 = vor.u32 %v1573_v29, %v1068_v28 }
  0x19   :  { %804 = vmatpush.bf16.msra.mxu1 %v1205_v5  ;;  %v1679_v37 = vld [vmem:[%s2574_s1 + $0x2f4] sm:$0xf0]  ;;  %v1574_v40 = vld [vmem:[%s2575_s0 + $0x20] sm:$0xf0]  ;;  %v1571_v41 = vld [vmem:[%s2575_s0 + $0xc] sm:$0xf]  ;;  %v1980_v53 = vor.u32 %v1570_v30, %v1070_v31 }
  0x1a   :  { %823 = vmatpush.bf16.msra.mxu2 %v1269_v6  ;;  %v1078_v42 = vld [vmem:[%s2575_s0 + $0x24] sm:$0xf0]  ;;  %v1436_v45 = vld [vmem:[%s2574_s1 + $0x270] sm:$0xf]  ;;  %v1663_v46 = vld [vmem:[%s2574_s1 + $0x274] sm:$0xf0]  ;;  %v1501_v49 = vor.u32 %v1679_v37, %v1500_v36  ;;  %v1982_v54 = vor.u32 %v1574_v40, %v1076_v35 }
  0x1b   :  { %842 = vmatpush.bf16.msra.mxu3 %v1333_v10  ;;  %v1598_v47 = vld [vmem:[%s2574_s1 + $0x74] sm:$0xf]  ;;  %v1182_v50 = vld [vmem:[%s2574_s1 + $0x78] sm:$0xf0]  ;;  %v1556_v51 = vld [vmem:[%s2574_s1 + $0x360] sm:$0xf]  ;;  %v1990_v57 = vor.u32 %v1571_v41, %v1078_v42  ;;  %v1437_v58 = vor.u32 %v1663_v46, %v1436_v45 }
  0x1c   :  { %786 = vmatpush.bf16.msra.mxu0 %v1133_v17  ;;  %v1693_v52 = vld [vmem:[%s2574_s1 + $0x364] sm:$0xf0]  ;;  %v1492_v55 = vld [vmem:[%s2574_s1 + $0x2e0] sm:$0xf]  ;;  %v1185_v59 = vor.u32 %v1598_v47, %v1182_v50  ;;  %v1596_v63 = vld [vmem:[%s2574_s1 + $0x64] sm:$0xf] }
  0x1d   :  { %805 = vmatpush.bf16.msra.mxu1 %v1197_v21  ;;  %v1677_v56 = vld [vmem:[%s2574_s1 + $0x2e4] sm:$0xf0]  ;;  %v1557_v60 = vor.u32 %v1693_v52, %v1556_v51  ;;  %v1428_v61 = vld [vmem:[%s2574_s1 + $0x260] sm:$0xf]  ;;  %v1174_v1 = vld [vmem:[%s2574_s1 + $0x68] sm:$0xf0] }
  0x1e   :  { %824 = vmatpush.bf16.msra.mxu2 %v1261_v22  ;;  %v1661_v62 = vld [vmem:[%s2574_s1 + $0x264] sm:$0xf0]  ;;  %v1493_v0 = vor.u32 %v1677_v56, %v1492_v55  ;;  %v1548_v2 = vld [vmem:[%s2574_s1 + $0x350] sm:$0xf]  ;;  %v1691_v3 = vld [vmem:[%s2574_s1 + $0x354] sm:$0xf0]  ;;  %v1177_v7 = vor.u32 %v1596_v63, %v1174_v1 }
  0x1f   :  { %843 = vmatpush.bf16.msra.mxu3 %v1325_v26  ;;  %v1484_v4 = vld [vmem:[%s2574_s1 + $0x2d0] sm:$0xf]  ;;  %v1675_v5 = vld [vmem:[%s2574_s1 + $0x2d4] sm:$0xf0]  ;;  %v1429_v6 = vor.u32 %v1661_v62, %v1428_v61  ;;  %v1549_v8 = vor.u32 %v1691_v3, %v1548_v2  ;;  %v1594_v11 = vld [vmem:[%s2574_s1 + $0x54] sm:$0xf] }
  0x20   :  { %787 = vmatpush.bf16.msra.mxu0 %v1125_v34  ;;  %v1420_v9 = vld [vmem:[%s2574_s1 + $0x250] sm:$0xf]  ;;  %v1659_v10 = vld [vmem:[%s2574_s1 + $0x254] sm:$0xf0]  ;;  %v1485_v12 = vor.u32 %v1675_v5, %v1484_v4  ;;  %v1166_v13 = vld [vmem:[%s2574_s1 + $0x58] sm:$0xf0] }
  0x21   :  { %806 = vmatpush.bf16.msra.mxu1 %v1189_v38  ;;  %v1540_v14 = vld [vmem:[%s2574_s1 + $0x340] sm:$0xf]  ;;  %v1689_v15 = vld [vmem:[%s2574_s1 + $0x344] sm:$0xf0]  ;;  %v1421_v18 = vor.u32 %v1659_v10, %v1420_v9  ;;  %v1592_v21 = vld [vmem:[%s2574_s1 + $0x44] sm:$0xf]  ;;  %v1169_v22 = vor.u32 %v1594_v11, %v1166_v13 }
  0x22   :  { %825 = vmatpush.bf16.msra.mxu2 %v1253_v39  ;;  %v1476_v16 = vld [vmem:[%s2574_s1 + $0x2c0] sm:$0xf]  ;;  %v1673_v17 = vld [vmem:[%s2574_s1 + $0x2c4] sm:$0xf0]  ;;  %v1541_v23 = vor.u32 %v1689_v15, %v1540_v14  ;;  %v1158_v24 = vld [vmem:[%s2574_s1 + $0x48] sm:$0xf0] }
  0x23   :  { %844 = vmatpush.bf16.msra.mxu3 %v1317_v43  ;;  %788 = vmatmul.bf16.vlgmr.msra.gmra.mxu0 %v1969_v48  ;;  %v1412_v19 = vld [vmem:[%s2574_s1 + $0x240] sm:$0xf]  ;;  %v1657_v20 = vld [vmem:[%s2574_s1 + $0x244] sm:$0xf0]  ;;  %v1096_v25 = vld [vmem:[%s2575_s0 + $0x38] sm:$0xf]  ;;  %v1477_v27 = vor.u32 %v1673_v17, %v1476_v16  ;;  %v1161_v39 = vor.u32 %v1592_v21, %v1158_v24 }
  0x24   :  { %807 = vmatmul.bf16.vlgmr.msra.gmra.mxu1 %v1980_v53  ;;  %856 = vmatpush.bf16.msrb.mxu0 %v1437_v58  ;;  %v1580_v26 = vld [vmem:[%s2575_s0 + $0x50] sm:$0xf0]  ;;  %v1577_v28 = vld [vmem:[%s2575_s0 + $0x3c] sm:$0xf]  ;;  %v1098_v29 = vld [vmem:[%s2575_s0 + $0x54] sm:$0xf0]  ;;  %v1413_v35 = vor.u32 %v1657_v20, %v1412_v19 }
  0x25   :  { %875 = vmatpush.bf16.msrb.mxu1 %v1501_v49  ;;  %826 = vmatmul.bf16.vlgmr.msra.gmra.mxu2 %v1982_v54  ;;  %v1532_v30 = vld [vmem:[%s2574_s1 + $0x330] sm:$0xf]  ;;  %v1687_v31 = vld [vmem:[%s2574_s1 + $0x334] sm:$0xf0]  ;;  %v1104_v32 = vld [vmem:[%s2575_s0 + $0x40] sm:$0xf]  ;;  %v2112_v50 = vor.u32 %v1577_v28, %v1098_v29 }
  0x26   :  { %894 = vmatpush.bf16.msrb.mxu2 %v1565_v44  ;;  %845 = vmatmul.bf16.vlgmr.msra.gmra.mxu3 %v1990_v57  ;;  %v1468_v33 = vld [vmem:[%s2574_s1 + $0x2b0] sm:$0xf]  ;;  %v1671_v34 = vld [vmem:[%s2574_s1 + $0x2b4] sm:$0xf0]  ;;  %v1581_v36 = vld [vmem:[%s2575_s0 + $0x58] sm:$0xf0]  ;;  %v1533_v40 = vor.u32 %v1687_v31, %v1532_v30  ;;  %v2101_v44 = vor.u32 %v1580_v26, %v1096_v25 }
  0x27   :  { %913 = vmatpush.bf16.msrb.mxu3 %v1185_v59  ;;  %v1578_v37 = vld [vmem:[%s2575_s0 + $0x44] sm:$0xf]  ;;  %v1106_v38 = vld [vmem:[%s2575_s0 + $0x5c] sm:$0xf0]  ;;  %v1404_v41 = vld [vmem:[%s2574_s1 + $0x230] sm:$0xf]  ;;  %v1469_v45 = vor.u32 %v1671_v34, %v1468_v33  ;;  %v2114_v51 = vor.u32 %v1581_v36, %v1104_v32 }
  0x28   :  { %857 = vmatpush.bf16.msrb.mxu0 %v1429_v6  ;;  %v1655_v42 = vld [vmem:[%s2574_s1 + $0x234] sm:$0xf0]  ;;  %v1590_v43 = vld [vmem:[%s2574_s1 + $0x34] sm:$0xf]  ;;  %v1150_v46 = vld [vmem:[%s2574_s1 + $0x38] sm:$0xf0]  ;;  %v2122_v56 = vor.u32 %v1578_v37, %v1106_v38 }
  0x29   :  { %876 = vmatpush.bf16.msrb.mxu1 %v1493_v0  ;;  %v1524_v47 = vld [vmem:[%s2574_s1 + $0x320] sm:$0xf]  ;;  %v1685_v49 = vld [vmem:[%s2574_s1 + $0x324] sm:$0xf0]  ;;  %v1405_v58 = vor.u32 %v1655_v42, %v1404_v41  ;;  %v1153_v59 = vor.u32 %v1590_v43, %v1150_v46  ;;  %v1588_v63 = vld [vmem:[%s2574_s1 + $0x24] sm:$0xf] }
  0x2a   :  { %895 = vmatpush.bf16.msrb.mxu2 %v1557_v60  ;;  %v1460_v52 = vld [vmem:[%s2574_s1 + $0x2a0] sm:$0xf]  ;;  %v1669_v55 = vld [vmem:[%s2574_s1 + $0x2a4] sm:$0xf0]  ;;  %v1525_v60 = vor.u32 %v1685_v49, %v1524_v47  ;;  %v1142_v1 = vld [vmem:[%s2574_s1 + $0x28] sm:$0xf0] }
  0x2b   :  { %914 = vmatpush.bf16.msrb.mxu3 %v1177_v7  ;;  %v1396_v61 = vld [vmem:[%s2574_s1 + $0x220] sm:$0xf]  ;;  %v1653_v62 = vld [vmem:[%s2574_s1 + $0x224] sm:$0xf0]  ;;  %v1461_v0 = vor.u32 %v1669_v55, %v1460_v52  ;;  %v1516_v2 = vld [vmem:[%s2574_s1 + $0x310] sm:$0xf] }
  0x2c   :  { %858 = vmatpush.bf16.msrb.mxu0 %v1421_v18  ;;  %v1683_v3 = vld [vmem:[%s2574_s1 + $0x314] sm:$0xf0]  ;;  %v1452_v4 = vld [vmem:[%s2574_s1 + $0x290] sm:$0xf]  ;;  %v1397_v6 = vor.u32 %v1653_v62, %v1396_v61  ;;  %v1586_v11 = vld [vmem:[%s2574_s1 + $0x14] sm:$0xf] }
  0x2d   :  { %877 = vmatpush.bf16.msrb.mxu1 %v1485_v12  ;;  %v1667_v5 = vld [vmem:[%s2574_s1 + $0x294] sm:$0xf0]  ;;  %v1388_v7 = vld [vmem:[%s2574_s1 + $0x210] sm:$0xf]  ;;  %v1517_v9 = vor.u32 %v1683_v3, %v1516_v2  ;;  %v1134_v12 = vld [vmem:[%s2574_s1 + $0x18] sm:$0xf0] }
  0x2e   :  { %896 = vmatpush.bf16.msrb.mxu2 %v1549_v8  ;;  %v1145_v8 = vor.u32 %v1588_v63, %v1142_v1  ;;  %v1651_v10 = vld [vmem:[%s2574_s1 + $0x214] sm:$0xf0]  ;;  %v1453_v13 = vor.u32 %v1667_v5, %v1452_v4  ;;  %v1508_v14 = vld [vmem:[%s2574_s1 + $0x300] sm:$0xf]  ;;  %v1681_v15 = vld [vmem:[%s2574_s1 + $0x304] sm:$0xf0]  ;;  %v1137_v24 = vor.u32 %v1586_v11, %v1134_v12 }
  0x2f   :  { %915 = vmatpush.bf16.msrb.mxu3 %v1169_v22  ;;  %v1444_v16 = vld [vmem:[%s2574_s1 + $0x280] sm:$0xf]  ;;  %v1665_v17 = vld [vmem:[%s2574_s1 + $0x284] sm:$0xf0]  ;;  %v1646_v18 = vld [vmem:[%s2574_s1 + $0x1f4] sm:$0xf]  ;;  %v1389_v20 = vor.u32 %v1651_v10, %v1388_v7  ;;  %v1509_v25 = vor.u32 %v1681_v15, %v1508_v14 }
  0x30   :  { %859 = vmatpush.bf16.msrb.mxu0 %v1413_v35  ;;  %v1374_v19 = vld [vmem:[%s2574_s1 + $0x1f8] sm:$0xf0]  ;;  %v1380_v21 = vld [vmem:[%s2574_s1 + $0x200] sm:$0xf]  ;;  %v1630_v22 = vld [vmem:[%s2574_s1 + $0x174] sm:$0xf]  ;;  %v1445_v29 = vor.u32 %v1665_v17, %v1444_v16 }
  0x31   :  { %878 = vmatpush.bf16.msrb.mxu1 %v1477_v27  ;;  %v1649_v26 = vld [vmem:[%s2574_s1 + $0x204] sm:$0xf0]  ;;  %v1584_v27 = vld [vmem:[%s2574_s1 + $0x4] sm:$0xf]  ;;  %v1126_v28 = vld [vmem:[%s2574_s1 + $0x8] sm:$0xf0]  ;;  %v1377_v32 = vor.u32 %v1646_v18, %v1374_v19 }
  0x32   :  { %897 = vmatpush.bf16.msrb.mxu2 %v1541_v23  ;;  %v1310_v23 = vld [vmem:[%s2574_s1 + $0x178] sm:$0xf0]  ;;  %v1084_v30 = vld [vmem:[%s2575_s0 + $0x10] sm:$0xf]  ;;  %v1575_v31 = vld [vmem:[%s2575_s0 + $0x28] sm:$0xf0] }
  0x33   :  { %916 = vmatpush.bf16.msrb.mxu3 %v1161_v39  ;;  %793 = vmatmul.bf16.gmra.mxu0 %v2101_v44  ;;  %v1614_v33 = vld [vmem:[%s2574_s1 + $0xf4] sm:$0xf]  ;;  %v1246_v34 = vld [vmem:[%s2574_s1 + $0xf8] sm:$0xf0]  ;;  %v1313_v36 = vor.u32 %v1630_v22, %v1310_v23  ;;  %v1644_v38 = vld [vmem:[%s2574_s1 + $0x1e4] sm:$0xf]  ;;  %v2251_v62 = vor.u32 %v1575_v31, %v1084_v30 }
  0x34   :  { %812 = vmatmul.bf16.gmra.mxu1 %v2112_v50  ;;  %860 = vmatpush.bf16.msrb.mxu0 %v1405_v58  ;;  %v1662_v35 = vld [vmem:[%s2574_s1 + $0x274] sm:$0xf]  ;;  %v1438_v37 = vld [vmem:[%s2574_s1 + $0x278] sm:$0xf0]  ;;  %v1366_v39 = vld [vmem:[%s2574_s1 + $0x1e8] sm:$0xf0]  ;;  %v1249_v47 = vor.u32 %v1614_v33, %v1246_v34 }
  0x35   :  { %879 = vmatpush.bf16.msrb.mxu1 %v1469_v45  ;;  %831 = vmatmul.bf16.gmra.mxu2 %v2114_v51  ;;  %v1572_v41 = vld [vmem:[%s2575_s0 + $0x14] sm:$0xf]  ;;  %v1086_v42 = vld [vmem:[%s2575_s0 + $0x2c] sm:$0xf0]  ;;  %v1092_v43 = vld [vmem:[%s2575_s0 + $0x18] sm:$0xf]  ;;  %v1129_v45 = vor.u32 %v1584_v27, %v1126_v28  ;;  %v1441_v55 = vor.u32 %v1662_v35, %v1438_v37  ;;  %v1369_v58 = vor.u32 %v1644_v38, %v1366_v39 }
  0x36   :  { %898 = vmatpush.bf16.msrb.mxu2 %v1533_v40  ;;  %850 = vmatmul.bf16.gmra.mxu3 %v2122_v56  ;;  %v1381_v40 = vor.u32 %v1649_v26, %v1380_v21  ;;  %v1576_v46 = vld [vmem:[%s2575_s0 + $0x30] sm:$0xf0]  ;;  %v1612_v49 = vld [vmem:[%s2574_s1 + $0xe4] sm:$0xf]  ;;  %v1238_v52 = vld [vmem:[%s2574_s1 + $0xe8] sm:$0xf0]  ;;  %v2253_v63 = vor.u32 %v1572_v41, %v1086_v42 }
  0x37   :  { %917 = vmatpush.bf16.msrb.mxu3 %v1153_v59  ;;  %v1628_v59 = vld [vmem:[%s2574_s1 + $0x164] sm:$0xf]  ;;  %v1642_v1 = vld [vmem:[%s2574_s1 + $0x1d4] sm:$0xf]  ;;  %v1358_v2 = vld [vmem:[%s2574_s1 + $0x1d8] sm:$0xf0]  ;;  %v2264_v3 = vor.u32 %v1576_v46, %v1092_v43  ;;  %v1241_v4 = vor.u32 %v1612_v49, %v1238_v52 }
  0x38   :  { %861 = vmatpush.bf16.msrb.mxu0 %v1397_v6  ;;  %v1660_v61 = vld [vmem:[%s2574_s1 + $0x264] sm:$0xf]  ;;  %v1610_v6 = vld [vmem:[%s2574_s1 + $0xd4] sm:$0xf]  ;;  %v1230_v7 = vld [vmem:[%s2574_s1 + $0xd8] sm:$0xf0] }
  0x39   :  { %880 = vmatpush.bf16.msrb.mxu1 %v1461_v0  ;;  %v1430_v0 = vld [vmem:[%s2574_s1 + $0x268] sm:$0xf0]  ;;  %v1626_v10 = vld [vmem:[%s2574_s1 + $0x154] sm:$0xf]  ;;  %v1294_v11 = vld [vmem:[%s2574_s1 + $0x158] sm:$0xf0]  ;;  %v1233_v16 = vor.u32 %v1610_v6, %v1230_v7 }
  0x3a   :  { %899 = vmatpush.bf16.msrb.mxu2 %v1525_v60  ;;  %v1302_v60 = vld [vmem:[%s2574_s1 + $0x168] sm:$0xf0]  ;;  %v1658_v12 = vld [vmem:[%s2574_s1 + $0x254] sm:$0xf]  ;;  %v1640_v14 = vld [vmem:[%s2574_s1 + $0x1c4] sm:$0xf]  ;;  %v1297_v17 = vor.u32 %v1626_v10, %v1294_v11 }
  0x3b   :  { %918 = vmatpush.bf16.msrb.mxu3 %v1145_v8  ;;  %v1305_v5 = vor.u32 %v1628_v59, %v1302_v60  ;;  %v1433_v8 = vor.u32 %v1660_v61, %v1430_v0  ;;  %v1350_v15 = vld [vmem:[%s2574_s1 + $0x1c8] sm:$0xf0]  ;;  %v1608_v18 = vld [vmem:[%s2574_s1 + $0xc4] sm:$0xf]  ;;  %v1342_v26 = vld [vmem:[%s2574_s1 + $0x1b8] sm:$0xf0] }
  0x3c   :  { %862 = vmatpush.bf16.msrb.mxu0 %v1389_v20  ;;  %v1222_v19 = vld [vmem:[%s2574_s1 + $0xc8] sm:$0xf0]  ;;  %v1353_v21 = vor.u32 %v1640_v14, %v1350_v15  ;;  %v1656_v23 = vld [vmem:[%s2574_s1 + $0x244] sm:$0xf]  ;;  %v1214_v30 = vld [vmem:[%s2574_s1 + $0xb8] sm:$0xf0] }
  0x3d   :  { %881 = vmatpush.bf16.msrb.mxu1 %v1453_v13  ;;  %v1422_v13 = vld [vmem:[%s2574_s1 + $0x258] sm:$0xf0]  ;;  %v1286_v22 = vld [vmem:[%s2574_s1 + $0x148] sm:$0xf0]  ;;  %v1225_v27 = vor.u32 %v1608_v18, %v1222_v19  ;;  %v1582_v33 = vld [vmem:[%s2575_s0 + $0x60] sm:$0xf0] }
  0x3e   :  { %900 = vmatpush.bf16.msrb.mxu2 %v1517_v9  ;;  %v1361_v9 = vor.u32 %v1642_v1, %v1358_v2  ;;  %v1425_v20 = vor.u32 %v1658_v12, %v1422_v13  ;;  %v1622_v35 = vld [vmem:[%s2574_s1 + $0x134] sm:$0xf]  ;;  %v1406_v38 = vld [vmem:[%s2574_s1 + $0x238] sm:$0xf0]  ;;  %v1636_v39 = vld [vmem:[%s2574_s1 + $0x1a4] sm:$0xf] }
  0x3f   :  { %919 = vmatpush.bf16.msrb.mxu3 %v1137_v24  ;;  %v1414_v24 = vld [vmem:[%s2574_s1 + $0x248] sm:$0xf0]  ;;  %v1654_v37 = vld [vmem:[%s2574_s1 + $0x234] sm:$0xf]  ;;  %v1114_v42 = vld [vmem:[%s2575_s0 + $0x64] sm:$0xf0] }
  0x40   :  { %863 = vmatpush.bf16.msrb.mxu0 %v1381_v40  ;;  %v1417_v31 = vor.u32 %v1656_v23, %v1414_v24  ;;  %v1334_v40 = vld [vmem:[%s2574_s1 + $0x1a8] sm:$0xf0]  ;;  %v1120_v43 = vld [vmem:[%s2575_s0 + $0x50] sm:$0xf]  ;;  %v1604_v49 = vld [vmem:[%s2574_s1 + $0xa4] sm:$0xf] }
  0x41   :  { %882 = vmatpush.bf16.msrb.mxu1 %v1445_v29  ;;  %v1606_v29 = vld [vmem:[%s2574_s1 + $0xb4] sm:$0xf]  ;;  %v1579_v41 = vld [vmem:[%s2575_s0 + $0x4c] sm:$0xf]  ;;  %v1620_v59 = vld [vmem:[%s2574_s1 + $0x124] sm:$0xf] }
  0x42   :  { %901 = vmatpush.bf16.msrb.mxu2 %v1509_v25  ;;  %v1638_v25 = vld [vmem:[%s2574_s1 + $0x1b4] sm:$0xf]  ;;  %v1217_v46 = vor.u32 %v1606_v29, %v1214_v30  ;;  %v1206_v52 = vld [vmem:[%s2574_s1 + $0xa8] sm:$0xf0]  ;;  %v1652_v61 = vld [vmem:[%s2574_s1 + $0x224] sm:$0xf]  ;;  %v2377_v1 = vor.u32 %v1579_v41, %v1114_v42 }
  0x43   :  { %920 = vmatpush.bf16.msrb.mxu3 %v1129_v45  ;;  %864 = vmatmul.bf16.vlgmr.msrb.gmra.mxu0 %v2251_v62  ;;  %v1345_v34 = vor.u32 %v1638_v25, %v1342_v26  ;;  %v1583_v45 = vld [vmem:[%s2575_s0 + $0x68] sm:$0xf0]  ;;  %v1209_v7 = vor.u32 %v1604_v49, %v1206_v52  ;;  %v1198_v10 = vld [vmem:[%s2574_s1 + $0x98] sm:$0xf0]  ;;  %v1618_v13 = vld [vmem:[%s2574_s1 + $0x114] sm:$0xf] }
  0x44   :  { %932 = vmatpush.bf16.msra.mxu0 %v1249_v47  ;;  %883 = vmatmul.bf16.vlgmr.msrb.gmra.mxu1 %v2253_v63  ;;  %v1270_v60 = vld [vmem:[%s2574_s1 + $0x128] sm:$0xf0]  ;;  %v2388_v6 = vor.u32 %v1583_v45, %v1120_v43  ;;  %v1262_v14 = vld [vmem:[%s2574_s1 + $0x118] sm:$0xf0]  ;;  %v1650_v15 = vld [vmem:[%s2574_s1 + $0x214] sm:$0xf] }
  0x45   :  { %951 = vmatpush.bf16.msra.mxu1 %v1313_v36  ;;  %902 = vmatmul.bf16.vlgmr.msrb.gmra.mxu2 %v2264_v3  ;;  %v1278_v36 = vld [vmem:[%s2574_s1 + $0x138] sm:$0xf0]  ;;  %v1398_v2 = vld [vmem:[%s2574_s1 + $0x228] sm:$0xf0]  ;;  %v1678_v19 = vld [vmem:[%s2574_s1 + $0x2f4] sm:$0xf] }
  0x46   :  { %970 = vmatpush.bf16.msra.mxu2 %v1377_v32  ;;  %921 = vmatmul.bf16.vlgmr.msrb.gmra.mxu3 %v1969_v48  ;;  %v1624_v48 = vld [vmem:[%s2574_s1 + $0x144] sm:$0xf]  ;;  %v1112_v32 = vld [vmem:[%s2575_s0 + $0x48] sm:$0xf]  ;;  %v1281_v47 = vor.u32 %v1622_v35, %v1278_v36  ;;  %v1401_v11 = vor.u32 %v1652_v61, %v1398_v2  ;;  %v1318_v18 = vld [vmem:[%s2574_s1 + $0x188] sm:$0xf0] }
  0x47   :  { %989 = vmatpush.bf16.msra.mxu3 %v1441_v55  ;;  %v1289_v28 = vor.u32 %v1624_v48, %v1286_v22  ;;  %v1409_v55 = vor.u32 %v1654_v37, %v1406_v38  ;;  %v2375_v0 = vor.u32 %v1582_v33, %v1112_v32  ;;  %v1265_v48 = vor.u32 %v1618_v13, %v1262_v14  ;;  %v1600_v22 = vld [vmem:[%s2574_s1 + $0x84] sm:$0xf]  ;;  %v1190_v24 = vld [vmem:[%s2574_s1 + $0x88] sm:$0xf0]  ;;  %v1694_v30 = vld [vmem:[%s2574_s1 + $0x374] sm:$0xf] }
  0x48   :  { %933 = vmatpush.bf16.msra.mxu0 %v1241_v4  ;;  %v1634_v4 = vld [vmem:[%s2574_s1 + $0x194] sm:$0xf]  ;;  %v1616_v25 = vld [vmem:[%s2574_s1 + $0x104] sm:$0xf]  ;;  %v1254_v26 = vld [vmem:[%s2574_s1 + $0x108] sm:$0xf0]  ;;  %v1193_v32 = vor.u32 %v1600_v22, %v1190_v24 }
  0x49   :  { %952 = vmatpush.bf16.msra.mxu1 %v1305_v5  ;;  %v1326_v5 = vld [vmem:[%s2574_s1 + $0x198] sm:$0xf0]  ;;  %v1257_v33 = vor.u32 %v1616_v25, %v1254_v26  ;;  %v1494_v35 = vld [vmem:[%s2574_s1 + $0x2e8] sm:$0xf0]  ;;  %v1674_v41 = vld [vmem:[%s2574_s1 + $0x2d4] sm:$0xf] }
  0x4a   :  { %971 = vmatpush.bf16.msra.mxu2 %v1369_v58  ;;  %v1337_v58 = vor.u32 %v1636_v39, %v1334_v40  ;;  %v1329_v12 = vor.u32 %v1634_v4, %v1326_v5  ;;  %v1692_v39 = vld [vmem:[%s2574_s1 + $0x364] sm:$0xf]  ;;  %v1558_v40 = vld [vmem:[%s2574_s1 + $0x368] sm:$0xf0]  ;;  %v1486_v42 = vld [vmem:[%s2574_s1 + $0x2d8] sm:$0xf0] }
  0x4b   :  { %990 = vmatpush.bf16.msra.mxu3 %v1433_v8  ;;  %v1273_v8 = vor.u32 %v1620_v59, %v1270_v60  ;;  %v1561_v43 = vor.u32 %v1692_v39, %v1558_v40  ;;  %v1489_v45 = vor.u32 %v1674_v41, %v1486_v42  ;;  %v1672_v49 = vld [vmem:[%s2574_s1 + $0x2c4] sm:$0xf]  ;;  %v1478_v52 = vld [vmem:[%s2574_s1 + $0x2c8] sm:$0xf0]  ;;  %v1686_v61 = vld [vmem:[%s2574_s1 + $0x334] sm:$0xf] }
  0x4c   :  { %934 = vmatpush.bf16.msra.mxu0 %v1233_v16  ;;  %v1390_v16 = vld [vmem:[%s2574_s1 + $0x218] sm:$0xf0]  ;;  %v1668_v4 = vld [vmem:[%s2574_s1 + $0x2a4] sm:$0xf]  ;;  %v1462_v5 = vld [vmem:[%s2574_s1 + $0x2a8] sm:$0xf0] }
  0x4d   :  { %953 = vmatpush.bf16.msra.mxu1 %v1297_v17  ;;  %v1632_v17 = vld [vmem:[%s2574_s1 + $0x184] sm:$0xf]  ;;  %v1393_v23 = vor.u32 %v1650_v15, %v1390_v16  ;;  %v1534_v2 = vld [vmem:[%s2574_s1 + $0x338] sm:$0xf0]  ;;  %v1682_v15 = vld [vmem:[%s2574_s1 + $0x314] sm:$0xf] }
  0x4e   :  { %972 = vmatpush.bf16.msra.mxu2 %v1361_v9  ;;  %v1602_v9 = vld [vmem:[%s2574_s1 + $0x94] sm:$0xf]  ;;  %v1518_v16 = vld [vmem:[%s2574_s1 + $0x318] sm:$0xf0] }
  0x4f   :  { %991 = vmatpush.bf16.msra.mxu3 %v1425_v20  ;;  %v1502_v20 = vld [vmem:[%s2574_s1 + $0x2f8] sm:$0xf0] }
  0x50   :  { %935 = vmatpush.bf16.msra.mxu0 %v1225_v27  ;;  %v1648_v27 = vld [vmem:[%s2574_s1 + $0x204] sm:$0xf]  ;;  %v1505_v29 = vor.u32 %v1678_v19, %v1502_v20  ;;  %v1521_v19 = vor.u32 %v1682_v15, %v1518_v16  ;;  %v1510_v20 = vld [vmem:[%s2574_s1 + $0x308] sm:$0xf0] }
  0x51   :  { %954 = vmatpush.bf16.msra.mxu1 %v1289_v28  ;;  %v1382_v28 = vld [vmem:[%s2574_s1 + $0x208] sm:$0xf0] }
  0x52   :  { %973 = vmatpush.bf16.msra.mxu2 %v1353_v21  ;;  %v1201_v21 = vor.u32 %v1602_v9, %v1198_v10  ;;  %v1385_v36 = vor.u32 %v1648_v27, %v1382_v28  ;;  %v1684_v9 = vld [vmem:[%s2574_s1 + $0x324] sm:$0xf]  ;;  %v1526_v10 = vld [vmem:[%s2574_s1 + $0x328] sm:$0xf0] }
  0x53   :  { %992 = vmatpush.bf16.msra.mxu3 %v1417_v31  ;;  %869 = vmatmul.bf16.gmra.mxu0 %v2375_v0  ;;  %v1566_v31 = vld [vmem:[%s2574_s1 + $0x378] sm:$0xf0]  ;;  %v1529_v13 = vor.u32 %v1684_v9, %v1526_v10 }
  0x54   :  { %936 = vmatpush.bf16.msra.mxu0 %v1217_v46  ;;  %888 = vmatmul.bf16.gmra.mxu1 %v2377_v1  ;;  %v1569_v37 = vor.u32 %v1694_v30, %v1566_v31  ;;  %v1690_v46 = vld [vmem:[%s2574_s1 + $0x354] sm:$0xf] }
  0x55   :  { %955 = vmatpush.bf16.msra.mxu1 %v1281_v47  ;;  %907 = vmatmul.bf16.gmra.mxu2 %v2388_v6  ;;  %v1550_v47 = vld [vmem:[%s2574_s1 + $0x358] sm:$0xf0] }
  0x56   :  { %974 = vmatpush.bf16.msra.mxu2 %v1345_v34  ;;  %926 = vmatmul.bf16.gmra.mxu3 %v2101_v44  ;;  %v1321_v44 = vor.u32 %v1632_v17, %v1318_v18  ;;  %v1676_v34 = vld [vmem:[%s2574_s1 + $0x2e4] sm:$0xf]  ;;  %v1446_v18 = vld [vmem:[%s2574_s1 + $0x288] sm:$0xf0] }
  0x57   :  { %993 = vmatpush.bf16.msra.mxu3 %v1409_v55  ;;  %v1497_v38 = vor.u32 %v1676_v34, %v1494_v35  ;;  %v1553_v55 = vor.u32 %v1690_v46, %v1550_v47  ;;  %v1664_v17 = vld [vmem:[%s2574_s1 + $0x284] sm:$0xf] }
  0x58   :  { %937 = vmatpush.bf16.msra.mxu0 %v1209_v7  ;;  %v1537_v7 = vor.u32 %v1686_v61, %v1534_v2 }
  0x59   :  { %956 = vmatpush.bf16.msra.mxu1 %v1273_v8  ;;  %v1465_v8 = vor.u32 %v1668_v4, %v1462_v5 }
  0x5a   :  { %975 = vmatpush.bf16.msra.mxu2 %v1337_v58  ;;  %v1542_v58 = vld [vmem:[%s2574_s1 + $0x348] sm:$0xf0] }
  0x5b   :  { %994 = vmatpush.bf16.msra.mxu3 %v1401_v11  ;;  %v1666_v11 = vld [vmem:[%s2574_s1 + $0x294] sm:$0xf] }
  0x5c   :  { %938 = vmatpush.bf16.msra.mxu0 %v1201_v21 }
  0x5d   :  { %957 = vmatpush.bf16.msra.mxu1 %v1265_v48 }
  0x5e   :  { %976 = vmatpush.bf16.msra.mxu2 %v1329_v12  ;;  %v1454_v12 = vld [vmem:[%s2574_s1 + $0x298] sm:$0xf0] }
  0x5f   :  { %995 = vmatpush.bf16.msra.mxu3 %v1393_v23  ;;  %v1457_v14 = vor.u32 %v1666_v11, %v1454_v12 }
  0x60   :  { %939 = vmatpush.bf16.msra.mxu0 %v1193_v32 }
  0x61   :  { %958 = vmatpush.bf16.msra.mxu1 %v1257_v33 }
  0x62   :  { %977 = vmatpush.bf16.msra.mxu2 %v1321_v44 }
  0x63   :  { %996 = vmatpush.bf16.msra.mxu3 %v1385_v36  ;;  %940 = vmatmul.bf16.vlgmr.msra.gmra.mxu0 %v1980_v53  ;;  %v1481_v53 = vor.u32 %v1672_v49, %v1478_v52 }
  0x64   :  { %1008 = vmatpush.bf16.msrb.mxu0 %v1505_v29  ;;  %959 = vmatmul.bf16.vlgmr.msra.gmra.mxu1 %v1982_v54  ;;  %v1688_v54 = vld [vmem:[%s2574_s1 + $0x344] sm:$0xf] }
  0x65   :  { %1027 = vmatpush.bf16.msrb.mxu1 %v1569_v37  ;;  %978 = vmatmul.bf16.vlgmr.msra.gmra.mxu2 %v1990_v57  ;;  %v1670_v57 = vld [vmem:[%s2574_s1 + $0x2b4] sm:$0xf]  ;;  %v1545_v59 = vor.u32 %v1688_v54, %v1542_v58 }
  0x66   :  { %1696 = vmatpush.bf16.msrb.mxu2 %v1505_v29  ;;  %997 = vmatmul.bf16.vlgmr.msra.gmra.mxu3 %v2251_v62  ;;  %v1470_v62 = vld [vmem:[%s2574_s1 + $0x2b8] sm:$0xf0] }
  0x67   :  { %1704 = vmatpush.bf16.msrb.mxu3 %v1569_v37  ;;  %v1473_v60 = vor.u32 %v1670_v57, %v1470_v62 }
  0x68   :  { %1009 = vmatpush.bf16.msrb.mxu0 %v1497_v38 }
  0x69   :  { %1028 = vmatpush.bf16.msrb.mxu1 %v1561_v43 }
  0x6a   :  { %1697 = vmatpush.bf16.msrb.mxu2 %v1497_v38 }
  0x6b   :  { %1705 = vmatpush.bf16.msrb.mxu3 %v1561_v43 }
  0x6c   :  { %1010 = vmatpush.bf16.msrb.mxu0 %v1489_v45 }
  0x6d   :  { %1029 = vmatpush.bf16.msrb.mxu1 %v1553_v55 }
  0x6e   :  { %1698 = vmatpush.bf16.msrb.mxu2 %v1489_v45 }
  0x6f   :  { %1706 = vmatpush.bf16.msrb.mxu3 %v1553_v55 }
  0x70   :  { %1011 = vmatpush.bf16.msrb.mxu0 %v1481_v53 }
  0x71   :  { %1030 = vmatpush.bf16.msrb.mxu1 %v1545_v59 }
  0x72   :  { %1699 = vmatpush.bf16.msrb.mxu2 %v1481_v53 }
  0x73   :  { %1707 = vmatpush.bf16.msrb.mxu3 %v1545_v59  ;;  %945 = vmatmul.bf16.gmra.mxu0 %v2112_v50  ;;  %v1449_v50 = vor.u32 %v1664_v17, %v1446_v18 }
  0x74   :  { %1012 = vmatpush.bf16.msrb.mxu0 %v1473_v60  ;;  %964 = vmatmul.bf16.gmra.mxu1 %v2114_v51  ;;  %v1680_v51 = vld [vmem:[%s2574_s1 + $0x304] sm:$0xf] }
  0x75   :  { %1031 = vmatpush.bf16.msrb.mxu1 %v1537_v7  ;;  %983 = vmatmul.bf16.gmra.mxu2 %v2122_v56  ;;  %v1513_v21 = vor.u32 %v1680_v51, %v1510_v20  ;;  %v142_v56 = vld [vmem:[%s2576_s2] sm:$0x3] }
  0x76   :  { %1700 = vmatpush.bf16.msrb.mxu2 %v1473_v60  ;;  %1002 = vmatmul.bf16.gmra.mxu3 %v2375_v0  ;;  %v144_v0 = vperm.slane %v142_v56, 0  ;;  %v145_v16 = vperm.slane %v142_v56, 1 }
  0x77   :  { %1708 = vmatpush.bf16.msrb.mxu3 %v1537_v7 }
  0x78   :  { %1013 = vmatpush.bf16.msrb.mxu0 %v1465_v8 }
  0x79   :  { %1032 = vmatpush.bf16.msrb.mxu1 %v1529_v13 }
  0x7a   :  { %1701 = vmatpush.bf16.msrb.mxu2 %v1465_v8 }
  0x7b   :  { %1709 = vmatpush.bf16.msrb.mxu3 %v1529_v13 }
  0x7c   :  { %1014 = vmatpush.bf16.msrb.mxu0 %v1457_v14 }
  0x7d   :  { %1033 = vmatpush.bf16.msrb.mxu1 %v1521_v19 }
  0x7e   :  { %1702 = vmatpush.bf16.msrb.mxu2 %v1457_v14 }
  0x7f   :  { %1710 = vmatpush.bf16.msrb.mxu3 %v1521_v19 }
  0x80   :  { %1015 = vmatpush.bf16.msrb.mxu0 %v1449_v50 }
  0x81   :  { %1034 = vmatpush.bf16.msrb.mxu1 %v1513_v21 }
  0x82   :  { %1703 = vmatpush.bf16.msrb.mxu2 %v1449_v50 }
  0x83   :  { %1711 = vmatpush.bf16.msrb.mxu3 %v1513_v21  ;;  %1016 = vmatmul.bf16.vlgmr.msrb.gmra.mxu0 %v2253_v63 }
  0x84   :  { %1035 = vmatmul.bf16.vlgmr.msrb.gmra.mxu1 %v2264_v3 }
  0x85   :  { %1021 = vmatmul.bf16.vlgmr.msrb.gmra.mxu2 %v2377_v1 }
  0x86   :  { %1040 = vmatmul.bf16.vlgmr.msrb.gmra.mxu3 %v2388_v6 }
  0xa0   :  { %v789_v48 = vpop.f32.mrf.mxu0 }
  0xa1   :  { %v790_v22 = vadd.f32 %v789_v48, %v144_v0  ;;  %v808_v23 = vpop.f32.mrf.mxu1 }
  0xa3   :  { %v809_v44 = vadd.f32 %v808_v23, %v790_v22 }
  0xa8   :  { %v827_v24 = vpop.f32.mrf.mxu2  ;;  %v791_v27 = vpop.f32.mrf.mxu0 }
  0xa9   :  { %v828_v25 = vadd.f32 %v827_v24, %v809_v44  ;;  %v846_v26 = vpop.f32.mrf.mxu3  ;;  %v792_v63 = vadd.f32 %v791_v27, %v144_v0  ;;  %v810_v28 = vpop.f32.mrf.mxu1 }
  0xab   :  { %v847_v3 = vadd.f32 %v846_v26, %v828_v25  ;;  %v811_v29 = vadd.f32 %v810_v28, %v792_v63 }
  0xb0   :  { %v829_v1 = vpop.f32.mrf.mxu2  ;;  %v794_v31 = vpop.f32.mrf.mxu0 }
  0xb1   :  { %v830_v30 = vadd.f32 %v829_v1, %v811_v29  ;;  %v848_v6 = vpop.f32.mrf.mxu3  ;;  %v795_v32 = vadd.f32 %v794_v31, %v144_v0  ;;  %v813_v33 = vpop.f32.mrf.mxu1 }
  0xb3   :  { %v2547_v34 = vadd.f32 %v848_v6, %v830_v30  ;;  %v814_v35 = vadd.f32 %v813_v33, %v795_v32 }
  0xb8   :  { %v832_v36 = vpop.f32.mrf.mxu2  ;;  %v796_v39 = vpop.f32.mrf.mxu0 }
  0xb9   :  { %v833_v37 = vadd.f32 %v832_v36, %v814_v35  ;;  %v851_v38 = vpop.f32.mrf.mxu3  ;;  %v797_v40 = vadd.f32 %v796_v39, %v144_v0  ;;  %v815_v41 = vpop.f32.mrf.mxu1 }
  0xbb   :  { %v852_v42 = vadd.f32 %v851_v38, %v833_v37  ;;  %v816_v43 = vadd.f32 %v815_v41, %v797_v40 }
  0xc0   :  { %v834_v45 = vpop.f32.mrf.mxu2  ;;  %v865_v49 = vpop.f32.mrf.mxu0 }
  0xc1   :  { %v835_v46 = vadd.f32 %v834_v45, %v816_v43  ;;  %v853_v47 = vpop.f32.mrf.mxu3  ;;  %v884_v52 = vpop.f32.mrf.mxu1  ;;  %v866_v24 = vadd.f32 %v865_v49, %v847_v3 }
  0xc3   :  { %v2549_v55 = vadd.f32 %v853_v47, %v835_v46  ;;  %v885_v28 = vadd.f32 %v884_v52, %v866_v24 }
  0xc8   :  { %v903_v53 = vpop.f32.mrf.mxu2  ;;  %v867_v58 = vpop.f32.mrf.mxu0 }
  0xc9   :  { %v922_v54 = vpop.f32.mrf.mxu3  ;;  %v886_v57 = vpop.f32.mrf.mxu1  ;;  %v904_v32 = vadd.f32 %v903_v53, %v885_v28  ;;  %v868_v39 = vadd.f32 %v867_v58, %v2547_v34 }
  0xca   :  { %v923_v51 = vadd.f32 %v922_v54, %v145_v16 }
  0xcb   :  { %v1046_v43 = vmax.f32 %v904_v32, 0.0  ;;  %v887_v49 = vadd.f32 %v886_v57, %v868_v39 }
  0xd0   :  { %v2551_v62 = vpop.f32.mrf.mxu2  ;;  %v870_v60 = vpop.f32.mrf.mxu0 }
  0xd1   :  { %v924_v59 = vpop.f32.mrf.mxu3  ;;  %v889_v61 = vpop.f32.mrf.mxu1  ;;  %v871_v36 = vadd.f32 %v870_v60, %v852_v42  ;;  %v906_v60 = vadd.f32 %v2551_v62, %v887_v49 }
  0xd2   :  { %v925_v25 = vadd.f32 %v924_v59, %v145_v16 }
  0xd3   :  { %v890_v46 = vadd.f32 %v889_v61, %v871_v36 }
  0xd8   :  { %v908_v2 = vpop.f32.mrf.mxu2  ;;  %v872_v5 = vpop.f32.mrf.mxu0 }
  0xd9   :  { %v927_v4 = vpop.f32.mrf.mxu3  ;;  %v2553_v7 = vpop.f32.mrf.mxu1  ;;  %v909_v53 = vadd.f32 %v908_v2, %v890_v46  ;;  %v873_v58 = vadd.f32 %v872_v5, %v2549_v55 }
  0xda   :  { %v928_v44 = vadd.f32 %v927_v4, %v145_v16 }
  0xe0   :  { %v2555_v8 = vpop.f32.mrf.mxu2  ;;  %v941_v10 = vpop.f32.mrf.mxu0 }
  0xe1   :  { %v929_v9 = vpop.f32.mrf.mxu3  ;;  %v960_v11 = vpop.f32.mrf.mxu1  ;;  %v942_v20 = vadd.f32 %v941_v10, %v923_v51 }
  0xe2   :  { %v930_v37 = vadd.f32 %v929_v9, %v145_v16  ;;  %v892_v16 = vadd.f32 %v2553_v7, %v873_v58 }
  0xe3   :  { %v961_v23 = vadd.f32 %v960_v11, %v942_v20 }
  0xe8   :  { %v979_v12 = vpop.f32.mrf.mxu2  ;;  %v943_v14 = vpop.f32.mrf.mxu0 }
  0xe9   :  { %v998_v13 = vpop.f32.mrf.mxu3  ;;  %v962_v15 = vpop.f32.mrf.mxu1  ;;  %v980_v26 = vadd.f32 %v979_v12, %v961_v23  ;;  %v944_v63 = vadd.f32 %v943_v14, %v925_v25 }
  0xeb   :  { %v999_v29 = vadd.f32 %v998_v13, %v980_v26  ;;  %v963_v33 = vadd.f32 %v962_v15, %v944_v63  ;;  %v1050_v13 = vmax.f32 %v909_v53, 0.0  ;;  %v1048_v15 = vmax.f32 %v906_v60, 0.0 }
  0xf0   :  { %v981_v17 = vpop.f32.mrf.mxu2  ;;  %v946_v19 = vpop.f32.mrf.mxu0 }
  0xf1   :  { %v1000_v18 = vpop.f32.mrf.mxu3  ;;  %v965_v50 = vpop.f32.mrf.mxu1  ;;  %v947_v27 = vadd.f32 %v946_v19, %v928_v44  ;;  %v982_v3 = vadd.f32 %v981_v17, %v963_v33 }
  0xf3   :  { %v966_v30 = vadd.f32 %v965_v50, %v947_v27  ;;  %v1001_v52 = vadd.f32 %v1000_v18, %v982_v3  ;;  %v911_v50 = vadd.f32 %v2555_v8, %v892_v16 }
  0xf5   :  { %v1052_v20 = vmax.f32 %v911_v50, 0.0 }
  0xf8   :  { %v984_v21 = vpop.f32.mrf.mxu2  ;;  %v948_v48 = vpop.f32.mrf.mxu0 }
  0xf9   :  { %v1003_v0 = vpop.f32.mrf.mxu3  ;;  %v967_v22 = vpop.f32.mrf.mxu1  ;;  %v985_v38 = vadd.f32 %v984_v21, %v966_v30  ;;  %v949_v41 = vadd.f32 %v948_v48, %v930_v37 }
  0xfb   :  { %v1004_v47 = vadd.f32 %v1003_v0, %v985_v38  ;;  %v968_v10 = vadd.f32 %v967_v22, %v949_v41 }
 0x100   :  { %v986_v56 = vpop.f32.mrf.mxu2  ;;  %v1017_v6 = vpop.f32.mrf.mxu0 }
 0x101   :  { %v1005_v1 = vpop.f32.mrf.mxu3  ;;  %v1036_v31 = vpop.f32.mrf.mxu1  ;;  %v1018_v35 = vadd.f32 %v1017_v6, %v999_v29  ;;  %v987_v61 = vadd.f32 %v986_v56, %v968_v10 }
 0x103   :  { %v1037_v40 = vadd.f32 %v1036_v31, %v1018_v35  ;;  %v1006_v17 = vadd.f32 %v1005_v1, %v987_v61 }
 0x105   :  { %v1047_v45 = vmax.f32 %v1037_v40, 0.0 }
 0x107   :  { %v1054_v54 = vpack.c.bf16 %v1047_v45, %v1046_v43 }
 0x108   :  { %v1022_v59 = vpop.f32.mrf.mxu2  ;;  %v1019_v42 = vpop.f32.mrf.mxu0 }
 0x109   :  { %v1041_v4 = vpop.f32.mrf.mxu3  ;;  %v1023_v11 = vadd.f32 %v1022_v59, %v1004_v47  ;;  %1058 = vst [vmem:[%s2577_s3] sm:$0xff] %v1054_v54  ;;  %v1020_v34 = vadd.f32 %v1019_v42, %v1001_v52  ;;  %v1038_v57 = vpop.f32.mrf.mxu1 }
 0x10b   :  { %v1042_v9 = vadd.f32 %v1041_v4, %v1023_v11  ;;  %v1039_v12 = vadd.f32 %v1038_v57, %v1020_v34 }
 0x10d   :  { %v1051_v14 = vmax.f32 %v1042_v9, 0.0  ;;  %v1049_v2 = vmax.f32 %v1039_v12, 0.0 }
 0x10f   :  { %v1056_v18 = vpack.c.bf16 %v1051_v14, %v1050_v13  ;;  %v1055_v62 = vpack.c.bf16 %v1049_v2, %v1048_v15 }
 0x110   :  { %v1024_v19 = vpop.f32.mrf.mxu2 }
 0x111   :  { %1060 = vst [vmem:[%s2577_s3 + $0x10] sm:$0xff] %v1056_v18  ;;  %v1025_v55 = vadd.f32 %v1024_v19, %v1006_v17  ;;  %v1043_v5 = vpop.f32.mrf.mxu3 }
 0x112   :  { %1059 = vst [vmem:[%s2577_s3 + $0x8] sm:$0xff] %v1055_v62 }
 0x113   :  { %v1044_v51 = vadd.f32 %v1043_v5, %v1025_v55 }
 0x115   :  { %v1053_v21 = vmax.f32 %v1044_v51, 0.0 }
 0x117   :  { %v1057_v7 = vpack.c.bf16 %v1053_v21, %v1052_v20 }
 0x119   :  { %1061 = vst [vmem:[%s2577_s3 + $0x18] sm:$0xff] %v1057_v7 }

// kernel: forward.13
= control target key start
LH: loop header
LB: loop body
LE: loop exit
PB: predicated region body
PF: predicated region fallthrough
CT: control target
= control target key end

     0   :  { %s1435_s1 = inlined_call_operand.vmem [shape: bf16[512,128], index: 1, kind: input, shape index: {}]   ;;  %s1436_s2 = inlined_call_operand.vmem [shape: f32[1,128], index: 2, kind: input, shape index: {}]   ;;  %s1437_s0 = inlined_call_operand.vmem [shape: bf16[128,512], index: 0, kind: input, shape index: {}]   ;;  %s1438_s3 = inlined_call_operand.vmem [shape: bf16[128,128], index: 3, kind: output, shape index: {}]  }
   0x1   :  { %v1009_v0 = vld [vmem:[%s1435_s1 + $0x38] sm:$0xff]  ;;  %v1008_v4 = vld [vmem:[%s1435_s1 + $0x30] sm:$0xff]  ;;  %v1007_v8 = vld [vmem:[%s1435_s1 + $0x28] sm:$0xff] }
   0x2   :  { %v1017_v1 = vld [vmem:[%s1435_s1 + $0x78] sm:$0xff]  ;;  %466 = vmatpush.bf16.msra.mxu0 %v1009_v0  ;;  %v1016_v5 = vld [vmem:[%s1435_s1 + $0x70] sm:$0xff]  ;;  %v1015_v9 = vld [vmem:[%s1435_s1 + $0x68] sm:$0xff] }
   0x3   :  { %v1025_v2 = vld [vmem:[%s1435_s1 + $0xb8] sm:$0xff]  ;;  %515 = vmatpush.bf16.msra.mxu1 %v1017_v1  ;;  %v1024_v6 = vld [vmem:[%s1435_s1 + $0xb0] sm:$0xff]  ;;  %v1023_v10 = vld [vmem:[%s1435_s1 + $0xa8] sm:$0xff] }
   0x4   :  { %v1033_v3 = vld [vmem:[%s1435_s1 + $0xf8] sm:$0xff]  ;;  %564 = vmatpush.bf16.msra.mxu2 %v1025_v2  ;;  %v1032_v7 = vld [vmem:[%s1435_s1 + $0xf0] sm:$0xff]  ;;  %v1031_v11 = vld [vmem:[%s1435_s1 + $0xe8] sm:$0xff] }
   0x5   :  { %613 = vmatpush.bf16.msra.mxu3 %v1033_v3  ;;  %v1006_v12 = vld [vmem:[%s1435_s1 + $0x20] sm:$0xff]  ;;  %v1005_v16 = vld [vmem:[%s1435_s1 + $0x18] sm:$0xff]  ;;  %v1004_v20 = vld [vmem:[%s1435_s1 + $0x10] sm:$0xff] }
   0x6   :  { %467 = vmatpush.bf16.msra.mxu0 %v1008_v4  ;;  %v1014_v13 = vld [vmem:[%s1435_s1 + $0x60] sm:$0xff]  ;;  %v1013_v17 = vld [vmem:[%s1435_s1 + $0x58] sm:$0xff]  ;;  %v1012_v21 = vld [vmem:[%s1435_s1 + $0x50] sm:$0xff] }
   0x7   :  { %516 = vmatpush.bf16.msra.mxu1 %v1016_v5  ;;  %v1022_v14 = vld [vmem:[%s1435_s1 + $0xa0] sm:$0xff]  ;;  %v1021_v18 = vld [vmem:[%s1435_s1 + $0x98] sm:$0xff]  ;;  %v1020_v22 = vld [vmem:[%s1435_s1 + $0x90] sm:$0xff] }
   0x8   :  { %565 = vmatpush.bf16.msra.mxu2 %v1024_v6  ;;  %v1030_v15 = vld [vmem:[%s1435_s1 + $0xe0] sm:$0xff]  ;;  %v1029_v19 = vld [vmem:[%s1435_s1 + $0xd8] sm:$0xff]  ;;  %v1028_v23 = vld [vmem:[%s1435_s1 + $0xd0] sm:$0xff] }
   0x9   :  { %614 = vmatpush.bf16.msra.mxu3 %v1032_v7  ;;  %v1003_v24 = vld [vmem:[%s1435_s1 + $0x8] sm:$0xff]  ;;  %v1002_v28 = vld [vmem:[%s1435_s1] sm:$0xff]  ;;  %v972_v33 = vld [vmem:[%s1437_s0 + $0xc] sm:$0xf0] }
   0xa   :  { %468 = vmatpush.bf16.msra.mxu0 %v1007_v8  ;;  %v1011_v25 = vld [vmem:[%s1435_s1 + $0x48] sm:$0xff]  ;;  %v1010_v29 = vld [vmem:[%s1435_s1 + $0x40] sm:$0xff]  ;;  %v718_v35 = vld [vmem:[%s1437_s0 + $0x10] sm:$0xf0] }
   0xb   :  { %517 = vmatpush.bf16.msra.mxu1 %v1015_v9  ;;  %v1019_v26 = vld [vmem:[%s1435_s1 + $0x88] sm:$0xff]  ;;  %v1018_v30 = vld [vmem:[%s1435_s1 + $0x80] sm:$0xff]  ;;  %v973_v37 = vld [vmem:[%s1437_s0 + $0x14] sm:$0xf0] }
   0xc   :  { %566 = vmatpush.bf16.msra.mxu2 %v1023_v10  ;;  %v1027_v27 = vld [vmem:[%s1435_s1 + $0xc8] sm:$0xff]  ;;  %v1026_v31 = vld [vmem:[%s1435_s1 + $0xc0] sm:$0xff]  ;;  %v726_v39 = vld [vmem:[%s1437_s0 + $0x18] sm:$0xf0] }
   0xd   :  { %615 = vmatpush.bf16.msra.mxu3 %v1031_v11  ;;  %v716_v32 = vld [vmem:[%s1437_s0] sm:$0xf]  ;;  %v970_v34 = vld [vmem:[%s1437_s0 + $0x4] sm:$0xf]  ;;  %v724_v36 = vld [vmem:[%s1437_s0 + $0x8] sm:$0xf] }
   0xe   :  { %469 = vmatpush.bf16.msra.mxu0 %v1006_v12  ;;  %v971_v38 = vld [vmem:[%s1437_s0 + $0xc] sm:$0xf]  ;;  %v717_v40 = vor.u32 %v972_v33, %v716_v32  ;;  %v721_v41 = vor.u32 %v970_v34, %v718_v35  ;;  %v725_v42 = vor.u32 %v973_v37, %v724_v36  ;;  %v732_v44 = vld [vmem:[%s1437_s0 + $0x20] sm:$0xf]  ;;  %v976_v45 = vld [vmem:[%s1437_s0 + $0x2c] sm:$0xf0] }
   0xf   :  { %518 = vmatpush.bf16.msra.mxu1 %v1014_v13  ;;  %v729_v43 = vor.u32 %v971_v38, %v726_v39  ;;  %v974_v46 = vld [vmem:[%s1437_s0 + $0x24] sm:$0xf]  ;;  %v734_v47 = vld [vmem:[%s1437_s0 + $0x30] sm:$0xf0]  ;;  %v740_v48 = vld [vmem:[%s1437_s0 + $0x28] sm:$0xf]  ;;  %v733_v52 = vor.u32 %v976_v45, %v732_v44 }
  0x10   :  { %567 = vmatpush.bf16.msra.mxu2 %v1022_v14  ;;  %v977_v49 = vld [vmem:[%s1437_s0 + $0x34] sm:$0xf0]  ;;  %v975_v50 = vld [vmem:[%s1437_s0 + $0x2c] sm:$0xf]  ;;  %v742_v51 = vld [vmem:[%s1437_s0 + $0x38] sm:$0xf0]  ;;  %v737_v53 = vor.u32 %v974_v46, %v734_v47 }
  0x11   :  { %616 = vmatpush.bf16.msra.mxu3 %v1030_v15  ;;  %v741_v54 = vor.u32 %v977_v49, %v740_v48  ;;  %v745_v55 = vor.u32 %v975_v50, %v742_v51  ;;  %v748_v56 = vld [vmem:[%s1437_s0 + $0x40] sm:$0xf]  ;;  %v980_v57 = vld [vmem:[%s1437_s0 + $0x4c] sm:$0xf0]  ;;  %v978_v58 = vld [vmem:[%s1437_s0 + $0x44] sm:$0xf] }
  0x12   :  { %470 = vmatpush.bf16.msra.mxu0 %v1005_v16  ;;  %v750_v59 = vld [vmem:[%s1437_s0 + $0x50] sm:$0xf0]  ;;  %v756_v60 = vld [vmem:[%s1437_s0 + $0x48] sm:$0xf]  ;;  %v981_v61 = vld [vmem:[%s1437_s0 + $0x54] sm:$0xf0]  ;;  %v749_v0 = vor.u32 %v980_v57, %v748_v56 }
  0x13   :  { %519 = vmatpush.bf16.msra.mxu1 %v1013_v17  ;;  %v979_v62 = vld [vmem:[%s1437_s0 + $0x4c] sm:$0xf]  ;;  %v758_v63 = vld [vmem:[%s1437_s0 + $0x58] sm:$0xf0]  ;;  %v753_v1 = vor.u32 %v978_v58, %v750_v59  ;;  %v757_v2 = vor.u32 %v981_v61, %v756_v60  ;;  %v764_v4 = vld [vmem:[%s1437_s0 + $0x60] sm:$0xf] }
  0x14   :  { %568 = vmatpush.bf16.msra.mxu2 %v1021_v18  ;;  %v761_v3 = vor.u32 %v979_v62, %v758_v63  ;;  %v984_v5 = vld [vmem:[%s1437_s0 + $0x6c] sm:$0xf0]  ;;  %v982_v6 = vld [vmem:[%s1437_s0 + $0x64] sm:$0xf]  ;;  %v766_v7 = vld [vmem:[%s1437_s0 + $0x70] sm:$0xf0] }
  0x15   :  { %617 = vmatpush.bf16.msra.mxu3 %v1029_v19  ;;  %v772_v8 = vld [vmem:[%s1437_s0 + $0x68] sm:$0xf]  ;;  %v985_v9 = vld [vmem:[%s1437_s0 + $0x74] sm:$0xf0]  ;;  %v983_v10 = vld [vmem:[%s1437_s0 + $0x6c] sm:$0xf]  ;;  %v765_v12 = vor.u32 %v984_v5, %v764_v4  ;;  %v769_v13 = vor.u32 %v982_v6, %v766_v7 }
  0x16   :  { %471 = vmatpush.bf16.msra.mxu0 %v1004_v20  ;;  %v774_v11 = vld [vmem:[%s1437_s0 + $0x78] sm:$0xf0]  ;;  %v773_v14 = vor.u32 %v985_v9, %v772_v8  ;;  %v780_v16 = vld [vmem:[%s1437_s0 + $0x80] sm:$0xf]  ;;  %v988_v17 = vld [vmem:[%s1437_s0 + $0x8c] sm:$0xf0] }
  0x17   :  { %520 = vmatpush.bf16.msra.mxu1 %v1012_v21  ;;  %v777_v15 = vor.u32 %v983_v10, %v774_v11  ;;  %v986_v18 = vld [vmem:[%s1437_s0 + $0x84] sm:$0xf]  ;;  %v782_v19 = vld [vmem:[%s1437_s0 + $0x90] sm:$0xf0]  ;;  %v788_v20 = vld [vmem:[%s1437_s0 + $0x88] sm:$0xf] }
  0x18   :  { %569 = vmatpush.bf16.msra.mxu2 %v1020_v22  ;;  %v989_v21 = vld [vmem:[%s1437_s0 + $0x94] sm:$0xf0]  ;;  %v987_v22 = vld [vmem:[%s1437_s0 + $0x8c] sm:$0xf]  ;;  %v804_v32 = vld [vmem:[%s1437_s0 + $0xa8] sm:$0xf] }
  0x19   :  { %618 = vmatpush.bf16.msra.mxu3 %v1028_v23  ;;  %v790_v23 = vld [vmem:[%s1437_s0 + $0x98] sm:$0xf0]  ;;  %v993_v33 = vld [vmem:[%s1437_s0 + $0xb4] sm:$0xf0]  ;;  %v991_v34 = vld [vmem:[%s1437_s0 + $0xac] sm:$0xf] }
  0x1a   :  { %472 = vmatpush.bf16.msra.mxu0 %v1003_v24  ;;  %v781_v24 = vor.u32 %v988_v17, %v780_v16  ;;  %v806_v35 = vld [vmem:[%s1437_s0 + $0xb8] sm:$0xf0]  ;;  %v805_v38 = vor.u32 %v993_v33, %v804_v32  ;;  %v820_v44 = vld [vmem:[%s1437_s0 + $0xc8] sm:$0xf]  ;;  %v997_v45 = vld [vmem:[%s1437_s0 + $0xd4] sm:$0xf0] }
  0x1b   :  { %521 = vmatpush.bf16.msra.mxu1 %v1011_v25  ;;  %v785_v25 = vor.u32 %v986_v18, %v782_v19  ;;  %v809_v39 = vor.u32 %v991_v34, %v806_v35  ;;  %v995_v46 = vld [vmem:[%s1437_s0 + $0xcc] sm:$0xf]  ;;  %v822_v47 = vld [vmem:[%s1437_s0 + $0xd8] sm:$0xf0]  ;;  %v821_v50 = vor.u32 %v997_v45, %v820_v44  ;;  %v836_v56 = vld [vmem:[%s1437_s0 + $0xe8] sm:$0xf] }
  0x1c   :  { %570 = vmatpush.bf16.msra.mxu2 %v1019_v26  ;;  %v789_v26 = vor.u32 %v989_v21, %v788_v20  ;;  %v825_v51 = vor.u32 %v995_v46, %v822_v47  ;;  %v1001_v57 = vld [vmem:[%s1437_s0 + $0xf4] sm:$0xf0]  ;;  %v999_v58 = vld [vmem:[%s1437_s0 + $0xec] sm:$0xf]  ;;  %v838_v59 = vld [vmem:[%s1437_s0 + $0xf8] sm:$0xf0] }
  0x1d   :  { %619 = vmatpush.bf16.msra.mxu3 %v1027_v27  ;;  %v793_v27 = vor.u32 %v987_v22, %v790_v23  ;;  %v837_v62 = vor.u32 %v1001_v57, %v836_v56  ;;  %v841_v63 = vor.u32 %v999_v58, %v838_v59 }
  0x1e   :  { %473 = vmatpush.bf16.msra.mxu0 %v1002_v28  ;;  %v796_v28 = vld [vmem:[%s1437_s0 + $0xa0] sm:$0xf] }
  0x1f   :  { %522 = vmatpush.bf16.msra.mxu1 %v1010_v29  ;;  %v992_v29 = vld [vmem:[%s1437_s0 + $0xac] sm:$0xf0] }
  0x20   :  { %571 = vmatpush.bf16.msra.mxu2 %v1018_v30  ;;  %v990_v30 = vld [vmem:[%s1437_s0 + $0xa4] sm:$0xf]  ;;  %v797_v36 = vor.u32 %v992_v29, %v796_v28 }
  0x21   :  { %620 = vmatpush.bf16.msra.mxu3 %v1026_v31  ;;  %474 = vmatmul.bf16.vlgmr.msra.gmra.mxu0 %v717_v40  ;;  %v798_v31 = vld [vmem:[%s1437_s0 + $0xb0] sm:$0xf0]  ;;  %v812_v40 = vld [vmem:[%s1437_s0 + $0xc0] sm:$0xf] }
  0x22   :  { %523 = vmatmul.bf16.vlgmr.msra.gmra.mxu1 %v721_v41  ;;  %v801_v37 = vor.u32 %v990_v30, %v798_v31  ;;  %v996_v41 = vld [vmem:[%s1437_s0 + $0xcc] sm:$0xf0] }
  0x23   :  { %572 = vmatmul.bf16.vlgmr.msra.gmra.mxu2 %v725_v42  ;;  %v994_v42 = vld [vmem:[%s1437_s0 + $0xc4] sm:$0xf]  ;;  %v813_v48 = vor.u32 %v996_v41, %v812_v40 }
  0x24   :  { %621 = vmatmul.bf16.vlgmr.msra.gmra.mxu3 %v729_v43  ;;  %v814_v43 = vld [vmem:[%s1437_s0 + $0xd0] sm:$0xf0] }
  0x25   :  { %v817_v49 = vor.u32 %v994_v42, %v814_v43 }
  0x31   :  { %479 = vmatmul.bf16.gmra.mxu0 %v733_v52  ;;  %v828_v52 = vld [vmem:[%s1437_s0 + $0xe0] sm:$0xf] }
  0x32   :  { %528 = vmatmul.bf16.gmra.mxu1 %v737_v53  ;;  %v1000_v53 = vld [vmem:[%s1437_s0 + $0xec] sm:$0xf0] }
  0x33   :  { %577 = vmatmul.bf16.gmra.mxu2 %v741_v54  ;;  %v998_v54 = vld [vmem:[%s1437_s0 + $0xe4] sm:$0xf]  ;;  %v829_v60 = vor.u32 %v1000_v53, %v828_v52 }
  0x34   :  { %626 = vmatmul.bf16.gmra.mxu3 %v745_v55  ;;  %v830_v55 = vld [vmem:[%s1437_s0 + $0xf0] sm:$0xf0] }
  0x35   :  { %v833_v61 = vor.u32 %v998_v54, %v830_v55 }
  0x41   :  { %484 = vmatmul.bf16.gmra.mxu0 %v749_v0  ;;  %v1393_v0 = vld [vmem:[%s1436_s2] ss:$0 sm:$0xff] }
  0x42   :  { %533 = vmatmul.bf16.gmra.mxu1 %v753_v1 }
  0x43   :  { %582 = vmatmul.bf16.gmra.mxu2 %v757_v2 }
  0x44   :  { %631 = vmatmul.bf16.gmra.mxu3 %v761_v3 }
  0x51   :  { %489 = vmatmul.bf16.gmra.mxu0 %v765_v12 }
  0x52   :  { %538 = vmatmul.bf16.gmra.mxu1 %v769_v13 }
  0x53   :  { %587 = vmatmul.bf16.gmra.mxu2 %v773_v14 }
  0x54   :  { %636 = vmatmul.bf16.gmra.mxu3 %v777_v15 }
  0x61   :  { %494 = vmatmul.bf16.gmra.mxu0 %v781_v24 }
  0x62   :  { %543 = vmatmul.bf16.gmra.mxu1 %v785_v25 }
  0x63   :  { %592 = vmatmul.bf16.gmra.mxu2 %v789_v26 }
  0x64   :  { %641 = vmatmul.bf16.gmra.mxu3 %v793_v27 }
  0x71   :  { %499 = vmatmul.bf16.gmra.mxu0 %v797_v36 }
  0x72   :  { %548 = vmatmul.bf16.gmra.mxu1 %v801_v37 }
  0x73   :  { %597 = vmatmul.bf16.gmra.mxu2 %v805_v38 }
  0x74   :  { %646 = vmatmul.bf16.gmra.mxu3 %v809_v39 }
  0x81   :  { %504 = vmatmul.bf16.gmra.mxu0 %v813_v48 }
  0x82   :  { %553 = vmatmul.bf16.gmra.mxu1 %v817_v49 }
  0x83   :  { %602 = vmatmul.bf16.gmra.mxu2 %v821_v50 }
  0x84   :  { %651 = vmatmul.bf16.gmra.mxu3 %v825_v51 }
  0x91   :  { %509 = vmatmul.bf16.gmra.mxu0 %v829_v60 }
  0x92   :  { %558 = vmatmul.bf16.gmra.mxu1 %v833_v61 }
  0x93   :  { %607 = vmatmul.bf16.gmra.mxu2 %v837_v62 }
  0x94   :  { %656 = vmatmul.bf16.gmra.mxu3 %v841_v63 }
  0x9e   :  { %v475_v1 = vpop.f32.mrf.mxu0 }
  0x9f   :  { %v524_v2 = vpop.f32.mrf.mxu1  ;;  %v476_v3 = vadd.f32 %v1393_v0, %v475_v1 }
  0xa1   :  { %v525_v6 = vadd.f32 %v524_v2, %v476_v3 }
  0xa6   :  { %v573_v4 = vpop.f32.mrf.mxu2  ;;  %v477_v7 = vpop.f32.mrf.mxu0 }
  0xa7   :  { %v622_v5 = vpop.f32.mrf.mxu3  ;;  %v526_v8 = vpop.f32.mrf.mxu1  ;;  %v478_v9 = vadd.f32 %v1393_v0, %v477_v7  ;;  %v574_v10 = vadd.f32 %v573_v4, %v525_v6 }
  0xa9   :  { %v527_v11 = vadd.f32 %v526_v8, %v478_v9  ;;  %v623_v14 = vadd.f32 %v622_v5, %v574_v10 }
  0xab   :  { %v662_v19 = vmax.f32 %v623_v14, 0.0 }
  0xae   :  { %v575_v12 = vpop.f32.mrf.mxu2  ;;  %v480_v16 = vpop.f32.mrf.mxu0 }
  0xaf   :  { %v624_v13 = vpop.f32.mrf.mxu3  ;;  %v576_v15 = vadd.f32 %v575_v12, %v527_v11  ;;  %v529_v17 = vpop.f32.mrf.mxu1  ;;  %v481_v21 = vadd.f32 %v1393_v0, %v480_v16 }
  0xb1   :  { %v625_v18 = vadd.f32 %v624_v13, %v576_v15  ;;  %v530_v25 = vadd.f32 %v529_v17, %v481_v21 }
  0xb3   :  { %v663_v20 = vmax.f32 %v625_v18, 0.0 }
  0xb5   :  { %v1037_v22 = vpack.c.bf16 %v663_v20, %v662_v19 }
  0xb6   :  { %v578_v23 = vpop.f32.mrf.mxu2  ;;  %v482_v26 = vpop.f32.mrf.mxu0 }
  0xb7   :  { %v627_v24 = vpop.f32.mrf.mxu3  ;;  %1038 = vst [vmem:[%s1438_s3] sm:$0xff] %v1037_v22   ;;  %v531_v27 = vpop.f32.mrf.mxu1  ;;  %v483_v28 = vadd.f32 %v1393_v0, %v482_v26  ;;  %v579_v29 = vadd.f32 %v578_v23, %v530_v25 }
  0xb9   :  { %v532_v30 = vadd.f32 %v531_v27, %v483_v28  ;;  %v628_v33 = vadd.f32 %v627_v24, %v579_v29 }
  0xbb   :  { %v664_v38 = vmax.f32 %v628_v33, 0.0 }
  0xbe   :  { %v580_v31 = vpop.f32.mrf.mxu2  ;;  %v485_v35 = vpop.f32.mrf.mxu0 }
  0xbf   :  { %v629_v32 = vpop.f32.mrf.mxu3  ;;  %v581_v34 = vadd.f32 %v580_v31, %v532_v30  ;;  %v534_v36 = vpop.f32.mrf.mxu1  ;;  %v486_v40 = vadd.f32 %v1393_v0, %v485_v35 }
  0xc1   :  { %v630_v37 = vadd.f32 %v629_v32, %v581_v34  ;;  %v535_v44 = vadd.f32 %v534_v36, %v486_v40 }
  0xc3   :  { %v665_v39 = vmax.f32 %v630_v37, 0.0 }
  0xc5   :  { %v1042_v41 = vpack.c.bf16 %v665_v39, %v664_v38 }
  0xc6   :  { %v583_v42 = vpop.f32.mrf.mxu2  ;;  %v487_v45 = vpop.f32.mrf.mxu0 }
  0xc7   :  { %v632_v43 = vpop.f32.mrf.mxu3  ;;  %1074 = vst [vmem:[%s1438_s3 + $0x8] sm:$0xff] %v1042_v41   ;;  %v536_v46 = vpop.f32.mrf.mxu1  ;;  %v488_v47 = vadd.f32 %v1393_v0, %v487_v45  ;;  %v584_v48 = vadd.f32 %v583_v42, %v535_v44 }
  0xc9   :  { %v537_v49 = vadd.f32 %v536_v46, %v488_v47  ;;  %v633_v52 = vadd.f32 %v632_v43, %v584_v48 }
  0xcb   :  { %v666_v57 = vmax.f32 %v633_v52, 0.0 }
  0xce   :  { %v585_v50 = vpop.f32.mrf.mxu2  ;;  %v490_v54 = vpop.f32.mrf.mxu0 }
  0xcf   :  { %v634_v51 = vpop.f32.mrf.mxu3  ;;  %v586_v53 = vadd.f32 %v585_v50, %v537_v49  ;;  %v539_v55 = vpop.f32.mrf.mxu1  ;;  %v491_v59 = vadd.f32 %v1393_v0, %v490_v54 }
  0xd1   :  { %v635_v56 = vadd.f32 %v634_v51, %v586_v53  ;;  %v540_v63 = vadd.f32 %v539_v55, %v491_v59 }
  0xd3   :  { %v667_v58 = vmax.f32 %v635_v56, 0.0 }
  0xd5   :  { %v1047_v60 = vpack.c.bf16 %v667_v58, %v666_v57 }
  0xd6   :  { %v588_v61 = vpop.f32.mrf.mxu2  ;;  %v492_v1 = vpop.f32.mrf.mxu0 }
  0xd7   :  { %v637_v62 = vpop.f32.mrf.mxu3  ;;  %1075 = vst [vmem:[%s1438_s3 + $0x10] sm:$0xff] %v1047_v60   ;;  %v541_v2 = vpop.f32.mrf.mxu1  ;;  %v493_v3 = vadd.f32 %v1393_v0, %v492_v1  ;;  %v589_v4 = vadd.f32 %v588_v61, %v540_v63 }
  0xd9   :  { %v542_v5 = vadd.f32 %v541_v2, %v493_v3  ;;  %v638_v8 = vadd.f32 %v637_v62, %v589_v4 }
  0xdb   :  { %v668_v13 = vmax.f32 %v638_v8, 0.0 }
  0xde   :  { %v590_v6 = vpop.f32.mrf.mxu2  ;;  %v495_v10 = vpop.f32.mrf.mxu0 }
  0xdf   :  { %v639_v7 = vpop.f32.mrf.mxu3  ;;  %v591_v9 = vadd.f32 %v590_v6, %v542_v5  ;;  %v544_v11 = vpop.f32.mrf.mxu1  ;;  %v496_v15 = vadd.f32 %v1393_v0, %v495_v10 }
  0xe1   :  { %v640_v12 = vadd.f32 %v639_v7, %v591_v9  ;;  %v545_v19 = vadd.f32 %v544_v11, %v496_v15 }
  0xe3   :  { %v669_v14 = vmax.f32 %v640_v12, 0.0 }
  0xe5   :  { %v1052_v16 = vpack.c.bf16 %v669_v14, %v668_v13 }
  0xe6   :  { %v593_v17 = vpop.f32.mrf.mxu2  ;;  %v497_v20 = vpop.f32.mrf.mxu0 }
  0xe7   :  { %v642_v18 = vpop.f32.mrf.mxu3  ;;  %1076 = vst [vmem:[%s1438_s3 + $0x18] sm:$0xff] %v1052_v16   ;;  %v546_v21 = vpop.f32.mrf.mxu1  ;;  %v498_v22 = vadd.f32 %v1393_v0, %v497_v20  ;;  %v594_v23 = vadd.f32 %v593_v17, %v545_v19 }
  0xe9   :  { %v547_v24 = vadd.f32 %v546_v21, %v498_v22  ;;  %v643_v27 = vadd.f32 %v642_v18, %v594_v23 }
  0xeb   :  { %v670_v32 = vmax.f32 %v643_v27, 0.0 }
  0xee   :  { %v595_v25 = vpop.f32.mrf.mxu2  ;;  %v500_v29 = vpop.f32.mrf.mxu0 }
  0xef   :  { %v644_v26 = vpop.f32.mrf.mxu3  ;;  %v596_v28 = vadd.f32 %v595_v25, %v547_v24  ;;  %v549_v30 = vpop.f32.mrf.mxu1  ;;  %v501_v34 = vadd.f32 %v1393_v0, %v500_v29 }
  0xf1   :  { %v645_v31 = vadd.f32 %v644_v26, %v596_v28  ;;  %v550_v38 = vadd.f32 %v549_v30, %v501_v34 }
  0xf3   :  { %v671_v33 = vmax.f32 %v645_v31, 0.0 }
  0xf5   :  { %v1057_v35 = vpack.c.bf16 %v671_v33, %v670_v32 }
  0xf6   :  { %v598_v36 = vpop.f32.mrf.mxu2  ;;  %v502_v39 = vpop.f32.mrf.mxu0 }
  0xf7   :  { %v647_v37 = vpop.f32.mrf.mxu3  ;;  %1077 = vst [vmem:[%s1438_s3 + $0x20] sm:$0xff] %v1057_v35   ;;  %v551_v40 = vpop.f32.mrf.mxu1  ;;  %v503_v41 = vadd.f32 %v1393_v0, %v502_v39  ;;  %v599_v42 = vadd.f32 %v598_v36, %v550_v38 }
  0xf9   :  { %v552_v43 = vadd.f32 %v551_v40, %v503_v41  ;;  %v648_v46 = vadd.f32 %v647_v37, %v599_v42 }
  0xfb   :  { %v672_v51 = vmax.f32 %v648_v46, 0.0 }
  0xfe   :  { %v600_v44 = vpop.f32.mrf.mxu2  ;;  %v505_v48 = vpop.f32.mrf.mxu0 }
  0xff   :  { %v649_v45 = vpop.f32.mrf.mxu3  ;;  %v601_v47 = vadd.f32 %v600_v44, %v552_v43  ;;  %v554_v49 = vpop.f32.mrf.mxu1  ;;  %v506_v53 = vadd.f32 %v1393_v0, %v505_v48 }
 0x101   :  { %v650_v50 = vadd.f32 %v649_v45, %v601_v47  ;;  %v555_v57 = vadd.f32 %v554_v49, %v506_v53 }
 0x103   :  { %v673_v52 = vmax.f32 %v650_v50, 0.0 }
 0x105   :  { %v1062_v54 = vpack.c.bf16 %v673_v52, %v672_v51 }
 0x106   :  { %v603_v55 = vpop.f32.mrf.mxu2  ;;  %v507_v58 = vpop.f32.mrf.mxu0 }
 0x107   :  { %v652_v56 = vpop.f32.mrf.mxu3  ;;  %1078 = vst [vmem:[%s1438_s3 + $0x28] sm:$0xff] %v1062_v54   ;;  %v556_v59 = vpop.f32.mrf.mxu1  ;;  %v508_v60 = vadd.f32 %v1393_v0, %v507_v58  ;;  %v604_v61 = vadd.f32 %v603_v55, %v555_v57 }
 0x109   :  { %v557_v62 = vadd.f32 %v556_v59, %v508_v60  ;;  %v653_v2 = vadd.f32 %v652_v56, %v604_v61 }
 0x10b   :  { %v674_v7 = vmax.f32 %v653_v2, 0.0 }
 0x10e   :  { %v605_v63 = vpop.f32.mrf.mxu2  ;;  %v510_v4 = vpop.f32.mrf.mxu0 }
 0x10f   :  { %v654_v1 = vpop.f32.mrf.mxu3  ;;  %v606_v3 = vadd.f32 %v605_v63, %v557_v62  ;;  %v559_v6 = vpop.f32.mrf.mxu1  ;;  %v511_v9 = vadd.f32 %v1393_v0, %v510_v4 }
 0x111   :  { %v655_v5 = vadd.f32 %v654_v1, %v606_v3  ;;  %v560_v13 = vadd.f32 %v559_v6, %v511_v9 }
 0x113   :  { %v675_v8 = vmax.f32 %v655_v5, 0.0 }
 0x115   :  { %v1067_v10 = vpack.c.bf16 %v675_v8, %v674_v7 }
 0x116   :  { %v608_v11 = vpop.f32.mrf.mxu2  ;;  %v512_v14 = vpop.f32.mrf.mxu0 }
 0x117   :  { %v657_v12 = vpop.f32.mrf.mxu3  ;;  %1079 = vst [vmem:[%s1438_s3 + $0x30] sm:$0xff] %v1067_v10   ;;  %v513_v15 = vadd.f32 %v1393_v0, %v512_v14  ;;  %v609_v16 = vadd.f32 %v608_v11, %v560_v13  ;;  %v561_v17 = vpop.f32.mrf.mxu1 }
 0x119   :  { %v562_v18 = vadd.f32 %v561_v17, %v513_v15  ;;  %v658_v20 = vadd.f32 %v657_v12, %v609_v16 }
 0x11b   :  { %v676_v24 = vmax.f32 %v658_v20, 0.0 }
 0x11e   :  { %v610_v19 = vpop.f32.mrf.mxu2 }
 0x11f   :  { %v611_v21 = vadd.f32 %v610_v19, %v562_v18  ;;  %v659_v22 = vpop.f32.mrf.mxu3 }
 0x121   :  { %v660_v23 = vadd.f32 %v659_v22, %v611_v21 }
 0x123   :  { %v677_v25 = vmax.f32 %v660_v23, 0.0 }
 0x125   :  { %v1072_v26 = vpack.c.bf16 %v677_v25, %v676_v24 }
 0x127   :  { %1080 = vst [vmem:[%s1438_s3 + $0x38] sm:$0xff] %v1072_v26  }

// kernel: forward.15
= control target key start
LH: loop header
LB: loop body
LE: loop exit
PB: predicated region body
PF: predicated region fallthrough
CT: control target
= control target key end

     0   :  { %s966_s12 = smov 0   ;;  %s968_s13 = smov 0   ;;  %s1119_s0 = inlined_call_operand.vmem [shape: bf16[2048,128], index: 0, kind: input, shape index: {}]   ;;  %s1120_s1 = inlined_call_operand.vmem [shape: bf16[128,128], index: 1, kind: input, shape index: {}]   ;;  %s1121_s2 = inlined_call_operand.vmem [shape: f32[1,128], index: 2, kind: input, shape index: {}]   ;;  %s1122_s3 = inlined_call_operand.vmem [shape: f32[2048,128], index: 3, kind: output, shape index: {}]  }
   0x1   :  { %s970_s14 = smov 0  }
   0x2 LB: > { %s25_s15 = sadd.s32 1, %s940_s13  ;;  %p682_p0 = scmp.ge.s32.totalorder %s944_s14, 1  ;;  %s944_s14 = sphi %s970_s14, %s13_s14   ;;  %s940_s13 = sphi %s968_s13, %s1124_s13   ;;  %s936_s12 = sphi %s966_s12, %s1123_s12  }
   0x3   : > { %p27_p1 = scmp.ge.s32.totalorder %s25_s15, 8  ;;  %p169_p2 = scmp.lt.s32.totalorder %s944_s14, 9 }
   0x5   : > { %s1126_s15 = smov (%p27_p1, %s25_s15), 0  ;;  %p170_p3 = pnand %p682_p0, %p169_p2 }
   0x6   : > { %s683_s24 = sshll.u32 (!%p170_p3), %s936_s12, 5 }
   0x7   : > { %173 = sbr.rel (%p170_p3) target bundleno = 244 (0xf4), region = 32  ;;  %p204_p4 = scmp.lt.s32.totalorder (!%p170_p3), %s683_s24, 255 }
   0xc   : > { %v808_v0 = vld [vmem:[%s1120_s1 + $0x38] sm:$0xff]  ;;  %v807_v1 = vld [vmem:[%s1120_s1 + $0x30] sm:$0xff]  ;;  %v806_v2 = vld [vmem:[%s1120_s1 + $0x28] sm:$0xff]  ;;  %s1128_s24 = smov (!%p204_p4, %s683_s24), 255 }
   0xd   : > { %421 = vmatpush.bf16.msra.mxu0 %v808_v0  ;;  %809 = vmatpush.bf16.msra.mxu1 %v808_v0  ;;  %v805_v3 = vld [vmem:[%s1120_s1 + $0x20] sm:$0xff]  ;;  %v804_v4 = vld [vmem:[%s1120_s1 + $0x18] sm:$0xff]  ;;  %v803_v5 = vld [vmem:[%s1120_s1 + $0x10] sm:$0xff]  ;;  %s684_s4 = sshll.u32 %s1128_s24, 2  ;;  %s686_s12 = sshll.u32 %s1128_s24, 3 }
   0xe   : > { %810 = vmatpush.bf16.msra.mxu2 %v808_v0  ;;  %811 = vmatpush.bf16.msra.mxu3 %v808_v0  ;;  %v802_v6 = vld [vmem:[%s1120_s1 + $0x8] sm:$0xff]  ;;  %v801_v7 = vld [vmem:[%s1120_s1] sm:$0xff]  ;;  %s1017_s9 = scalar_lea.vmem %s1119_s0, %s684_s4  ;;  %s1046_s18 = scalar_lea.vmem %s1122_s3, %s686_s12 }
   0xf   : > { %v785_v8 = vld [vmem:[%s1017_s9] sm:$0xff]  ;;  %v786_v12 = vld [vmem:[%s1017_s9 + $0x8] sm:$0xff]  ;;  %v787_v16 = vld [vmem:[%s1017_s9 + $0x10] sm:$0xff] }
  0x10   : > { %v789_v9 = vld [vmem:[%s1017_s9 + $0x20] sm:$0xff]  ;;  %v790_v13 = vld [vmem:[%s1017_s9 + $0x28] sm:$0xff]  ;;  %v791_v17 = vld [vmem:[%s1017_s9 + $0x30] sm:$0xff] }
  0x11   : > { %422 = vmatpush.bf16.msra.mxu0 %v807_v1  ;;  %812 = vmatpush.bf16.msra.mxu1 %v807_v1  ;;  %v793_v10 = vld [vmem:[%s1017_s9 + $0x40] sm:$0xff]  ;;  %v794_v14 = vld [vmem:[%s1017_s9 + $0x48] sm:$0xff]  ;;  %v795_v18 = vld [vmem:[%s1017_s9 + $0x50] sm:$0xff] }
  0x12   : > { %813 = vmatpush.bf16.msra.mxu2 %v807_v1  ;;  %814 = vmatpush.bf16.msra.mxu3 %v807_v1  ;;  %v797_v11 = vld [vmem:[%s1017_s9 + $0x60] sm:$0xff]  ;;  %v798_v15 = vld [vmem:[%s1017_s9 + $0x68] sm:$0xff]  ;;  %v799_v19 = vld [vmem:[%s1017_s9 + $0x70] sm:$0xff] }
  0x13   : > { %v788_v20 = vld [vmem:[%s1017_s9 + $0x18] sm:$0xff]  ;;  %v1038_v24 = vld [vmem:[%s1121_s2] ss:$0 sm:$0xff] }
  0x14   : > { %v792_v21 = vld [vmem:[%s1017_s9 + $0x38] sm:$0xff] }
  0x15   : > { %423 = vmatpush.bf16.msra.mxu0 %v806_v2  ;;  %815 = vmatpush.bf16.msra.mxu1 %v806_v2  ;;  %v796_v22 = vld [vmem:[%s1017_s9 + $0x58] sm:$0xff] }
  0x16   : > { %816 = vmatpush.bf16.msra.mxu2 %v806_v2  ;;  %817 = vmatpush.bf16.msra.mxu3 %v806_v2  ;;  %v800_v23 = vld [vmem:[%s1017_s9 + $0x78] sm:$0xff] }
  0x19   : > { %424 = vmatpush.bf16.msra.mxu0 %v805_v3  ;;  %818 = vmatpush.bf16.msra.mxu1 %v805_v3 }
  0x1a   : > { %819 = vmatpush.bf16.msra.mxu2 %v805_v3  ;;  %820 = vmatpush.bf16.msra.mxu3 %v805_v3 }
  0x1d   : > { %425 = vmatpush.bf16.msra.mxu0 %v804_v4  ;;  %821 = vmatpush.bf16.msra.mxu1 %v804_v4 }
  0x1e   : > { %822 = vmatpush.bf16.msra.mxu2 %v804_v4  ;;  %823 = vmatpush.bf16.msra.mxu3 %v804_v4 }
  0x21   : > { %426 = vmatpush.bf16.msra.mxu0 %v803_v5  ;;  %824 = vmatpush.bf16.msra.mxu1 %v803_v5 }
  0x22   : > { %825 = vmatpush.bf16.msra.mxu2 %v803_v5  ;;  %826 = vmatpush.bf16.msra.mxu3 %v803_v5 }
  0x25   : > { %427 = vmatpush.bf16.msra.mxu0 %v802_v6  ;;  %827 = vmatpush.bf16.msra.mxu1 %v802_v6 }
  0x26   : > { %828 = vmatpush.bf16.msra.mxu2 %v802_v6  ;;  %829 = vmatpush.bf16.msra.mxu3 %v802_v6 }
  0x29   : > { %428 = vmatpush.bf16.msra.mxu0 %v801_v7  ;;  %830 = vmatpush.bf16.msra.mxu1 %v801_v7 }
  0x2a   : > { %831 = vmatpush.bf16.msra.mxu2 %v801_v7  ;;  %832 = vmatpush.bf16.msra.mxu3 %v801_v7 }
  0x2c   : > { %429 = vmatmul.bf16.vlgmr.msra.gmra.mxu0 %v785_v8  ;;  %449 = vmatmul.bf16.vlgmr.msra.gmra.mxu1 %v789_v9 }
  0x2d   : > { %469 = vmatmul.bf16.vlgmr.msra.gmra.mxu2 %v793_v10  ;;  %489 = vmatmul.bf16.vlgmr.msra.gmra.mxu3 %v797_v11 }
  0x3c   : > { %434 = vmatmul.bf16.gmra.mxu0 %v786_v12  ;;  %454 = vmatmul.bf16.gmra.mxu1 %v790_v13 }
  0x3d   : > { %474 = vmatmul.bf16.gmra.mxu2 %v794_v14  ;;  %494 = vmatmul.bf16.gmra.mxu3 %v798_v15 }
  0x4c   : > { %439 = vmatmul.bf16.gmra.mxu0 %v787_v16  ;;  %459 = vmatmul.bf16.gmra.mxu1 %v791_v17 }
  0x4d   : > { %479 = vmatmul.bf16.gmra.mxu2 %v795_v18  ;;  %499 = vmatmul.bf16.gmra.mxu3 %v799_v19 }
  0x5c   : > { %444 = vmatmul.bf16.gmra.mxu0 %v788_v20  ;;  %464 = vmatmul.bf16.gmra.mxu1 %v792_v21 }
  0x5d   : > { %484 = vmatmul.bf16.gmra.mxu2 %v796_v22  ;;  %504 = vmatmul.bf16.gmra.mxu3 %v800_v23 }
  0xa9   : > { %v430_v25 = vpop.f32.mrf.mxu0  ;;  %v450_v26 = vpop.f32.mrf.mxu1 }
  0xaa   : > { %v431_v27 = vadd.f32 %v1038_v24, %v430_v25  ;;  %v451_v28 = vadd.f32 %v1038_v24, %v450_v26 }
  0xac   : > { %858 = vtanh.f32 %v431_v27 }
  0xad   : > { %860 = vtanh.f32 %v451_v28 }
  0xb0   : > { %v470_v29 = vpop.f32.mrf.mxu2  ;;  %v490_v30 = vpop.f32.mrf.mxu3 }
  0xb1   : > { %v471_v31 = vadd.f32 %v1038_v24, %v470_v29  ;;  %v491_v32 = vadd.f32 %v1038_v24, %v490_v30  ;;  %v432_v33 = vpop.f32.mrf.mxu0  ;;  %v452_v34 = vpop.f32.mrf.mxu1 }
  0xb2   : > { %v859_v35 = vpop.eup %858  ;;  %v433_v36 = vadd.f32 %v1038_v24, %v432_v33  ;;  %v453_v37 = vadd.f32 %v1038_v24, %v452_v34 }
  0xb3   : > { %v861_v38 = vpop.eup %860  ;;  %542 = vst [vmem:[%s1046_s18] sm:$0xff] %v859_v35  ;;  %862 = vtanh.f32 %v471_v31 }
  0xb4   : > { %550 = vst [vmem:[%s1046_s18 + $0x40] sm:$0xff] %v861_v38  ;;  %864 = vtanh.f32 %v491_v32 }
  0xb5   : > { %866 = vtanh.f32 %v433_v36 }
  0xb6   : > { %868 = vtanh.f32 %v453_v37 }
  0xb8   : > { %v472_v39 = vpop.f32.mrf.mxu2  ;;  %v492_v40 = vpop.f32.mrf.mxu3 }
  0xb9   : > { %v863_v41 = vpop.eup %862  ;;  %v473_v42 = vadd.f32 %v1038_v24, %v472_v39  ;;  %v493_v43 = vadd.f32 %v1038_v24, %v492_v40  ;;  %v435_v44 = vpop.f32.mrf.mxu0 }
  0xba   : > { %v455_v45 = vpop.f32.mrf.mxu1  ;;  %v865_v46 = vpop.eup %864  ;;  %558 = vst [vmem:[%s1046_s18 + $0x80] sm:$0xff] %v863_v41  ;;  %v436_v47 = vadd.f32 %v1038_v24, %v435_v44 }
  0xbb   : > { %v456_v48 = vadd.f32 %v1038_v24, %v455_v45  ;;  %v867_v49 = vpop.eup %866  ;;  %566 = vst [vmem:[%s1046_s18 + $0xc0] sm:$0xff] %v865_v46  ;;  %870 = vtanh.f32 %v473_v42 }
  0xbc   : > { %v869_v50 = vpop.eup %868  ;;  %543 = vst [vmem:[%s1046_s18 + $0x8] sm:$0xff] %v867_v49  ;;  %872 = vtanh.f32 %v493_v43 }
  0xbd   : > { %551 = vst [vmem:[%s1046_s18 + $0x48] sm:$0xff] %v869_v50  ;;  %874 = vtanh.f32 %v436_v47 }
  0xbe   : > { %876 = vtanh.f32 %v456_v48 }
  0xc0   : > { %v475_v51 = vpop.f32.mrf.mxu2  ;;  %v495_v52 = vpop.f32.mrf.mxu3 }
  0xc1   : > { %v871_v53 = vpop.eup %870  ;;  %v476_v54 = vadd.f32 %v1038_v24, %v475_v51  ;;  %v496_v55 = vadd.f32 %v1038_v24, %v495_v52  ;;  %v437_v56 = vpop.f32.mrf.mxu0 }
  0xc2   : > { %v457_v57 = vpop.f32.mrf.mxu1  ;;  %v873_v58 = vpop.eup %872  ;;  %559 = vst [vmem:[%s1046_s18 + $0x88] sm:$0xff] %v871_v53  ;;  %v438_v59 = vadd.f32 %v1038_v24, %v437_v56 }
  0xc3   : > { %v458_v60 = vadd.f32 %v1038_v24, %v457_v57  ;;  %v875_v61 = vpop.eup %874  ;;  %567 = vst [vmem:[%s1046_s18 + $0xc8] sm:$0xff] %v873_v58  ;;  %878 = vtanh.f32 %v476_v54 }
  0xc4   : > { %v877_v62 = vpop.eup %876  ;;  %544 = vst [vmem:[%s1046_s18 + $0x10] sm:$0xff] %v875_v61  ;;  %880 = vtanh.f32 %v496_v55 }
  0xc5   : > { %552 = vst [vmem:[%s1046_s18 + $0x50] sm:$0xff] %v877_v62  ;;  %882 = vtanh.f32 %v438_v59 }
  0xc6   : > { %884 = vtanh.f32 %v458_v60 }
  0xc8   : > { %v477_v63 = vpop.f32.mrf.mxu2  ;;  %v497_v0 = vpop.f32.mrf.mxu3 }
  0xc9   : > { %v879_v1 = vpop.eup %878  ;;  %v478_v2 = vadd.f32 %v1038_v24, %v477_v63  ;;  %v498_v3 = vadd.f32 %v1038_v24, %v497_v0  ;;  %v440_v4 = vpop.f32.mrf.mxu0 }
  0xca   : > { %v460_v5 = vpop.f32.mrf.mxu1  ;;  %v881_v6 = vpop.eup %880  ;;  %560 = vst [vmem:[%s1046_s18 + $0x90] sm:$0xff] %v879_v1  ;;  %v441_v7 = vadd.f32 %v1038_v24, %v440_v4 }
  0xcb   : > { %v461_v8 = vadd.f32 %v1038_v24, %v460_v5  ;;  %v883_v9 = vpop.eup %882  ;;  %568 = vst [vmem:[%s1046_s18 + $0xd0] sm:$0xff] %v881_v6  ;;  %886 = vtanh.f32 %v478_v2 }
  0xcc   : > { %v885_v10 = vpop.eup %884  ;;  %545 = vst [vmem:[%s1046_s18 + $0x18] sm:$0xff] %v883_v9  ;;  %888 = vtanh.f32 %v498_v3 }
  0xcd   : > { %553 = vst [vmem:[%s1046_s18 + $0x58] sm:$0xff] %v885_v10  ;;  %890 = vtanh.f32 %v441_v7 }
  0xce   : > { %892 = vtanh.f32 %v461_v8 }
  0xd0   : > { %v480_v11 = vpop.f32.mrf.mxu2  ;;  %v500_v12 = vpop.f32.mrf.mxu3 }
  0xd1   : > { %v887_v13 = vpop.eup %886  ;;  %v481_v14 = vadd.f32 %v1038_v24, %v480_v11  ;;  %v501_v15 = vadd.f32 %v1038_v24, %v500_v12  ;;  %v442_v16 = vpop.f32.mrf.mxu0 }
  0xd2   : > { %v462_v17 = vpop.f32.mrf.mxu1  ;;  %v889_v18 = vpop.eup %888  ;;  %561 = vst [vmem:[%s1046_s18 + $0x98] sm:$0xff] %v887_v13  ;;  %v443_v19 = vadd.f32 %v1038_v24, %v442_v16 }
  0xd3   : > { %v463_v20 = vadd.f32 %v1038_v24, %v462_v17  ;;  %v891_v21 = vpop.eup %890  ;;  %569 = vst [vmem:[%s1046_s18 + $0xd8] sm:$0xff] %v889_v18  ;;  %894 = vtanh.f32 %v481_v14 }
  0xd4   : > { %v893_v22 = vpop.eup %892  ;;  %546 = vst [vmem:[%s1046_s18 + $0x20] sm:$0xff] %v891_v21  ;;  %896 = vtanh.f32 %v501_v15 }
  0xd5   : > { %554 = vst [vmem:[%s1046_s18 + $0x60] sm:$0xff] %v893_v22  ;;  %898 = vtanh.f32 %v443_v19 }
  0xd6   : > { %900 = vtanh.f32 %v463_v20 }
  0xd8   : > { %v482_v23 = vpop.f32.mrf.mxu2  ;;  %v502_v25 = vpop.f32.mrf.mxu3 }
  0xd9   : > { %v895_v26 = vpop.eup %894  ;;  %v483_v27 = vadd.f32 %v1038_v24, %v482_v23  ;;  %v503_v28 = vadd.f32 %v1038_v24, %v502_v25  ;;  %v445_v29 = vpop.f32.mrf.mxu0 }
  0xda   : > { %v465_v30 = vpop.f32.mrf.mxu1  ;;  %v897_v31 = vpop.eup %896  ;;  %562 = vst [vmem:[%s1046_s18 + $0xa0] sm:$0xff] %v895_v26  ;;  %v446_v32 = vadd.f32 %v1038_v24, %v445_v29 }
  0xdb   : > { %v466_v33 = vadd.f32 %v1038_v24, %v465_v30  ;;  %v899_v34 = vpop.eup %898  ;;  %570 = vst [vmem:[%s1046_s18 + $0xe0] sm:$0xff] %v897_v31  ;;  %902 = vtanh.f32 %v483_v27 }
  0xdc   : > { %v901_v35 = vpop.eup %900  ;;  %547 = vst [vmem:[%s1046_s18 + $0x28] sm:$0xff] %v899_v34  ;;  %904 = vtanh.f32 %v503_v28 }
  0xdd   : > { %555 = vst [vmem:[%s1046_s18 + $0x68] sm:$0xff] %v901_v35  ;;  %906 = vtanh.f32 %v446_v32 }
  0xde   : > { %908 = vtanh.f32 %v466_v33 }
  0xe0   : > { %v485_v36 = vpop.f32.mrf.mxu2  ;;  %v505_v37 = vpop.f32.mrf.mxu3 }
  0xe1   : > { %v903_v38 = vpop.eup %902  ;;  %v486_v39 = vadd.f32 %v1038_v24, %v485_v36  ;;  %v506_v40 = vadd.f32 %v1038_v24, %v505_v37  ;;  %v447_v41 = vpop.f32.mrf.mxu0 }
  0xe2   : > { %v467_v42 = vpop.f32.mrf.mxu1  ;;  %v905_v43 = vpop.eup %904  ;;  %563 = vst [vmem:[%s1046_s18 + $0xa8] sm:$0xff] %v903_v38  ;;  %v448_v44 = vadd.f32 %v1038_v24, %v447_v41 }
  0xe3   : > { %v468_v45 = vadd.f32 %v1038_v24, %v467_v42  ;;  %v907_v46 = vpop.eup %906  ;;  %571 = vst [vmem:[%s1046_s18 + $0xe8] sm:$0xff] %v905_v43  ;;  %910 = vtanh.f32 %v486_v39 }
  0xe4   : > { %v909_v47 = vpop.eup %908  ;;  %548 = vst [vmem:[%s1046_s18 + $0x30] sm:$0xff] %v907_v46  ;;  %912 = vtanh.f32 %v506_v40 }
  0xe5   : > { %556 = vst [vmem:[%s1046_s18 + $0x70] sm:$0xff] %v909_v47  ;;  %914 = vtanh.f32 %v448_v44 }
  0xe6   : > { %916 = vtanh.f32 %v468_v45 }
  0xe8   : > { %v487_v48 = vpop.f32.mrf.mxu2  ;;  %v507_v49 = vpop.f32.mrf.mxu3 }
  0xe9   : > { %v911_v50 = vpop.eup %910  ;;  %v488_v51 = vadd.f32 %v1038_v24, %v487_v48  ;;  %v508_v52 = vadd.f32 %v1038_v24, %v507_v49 }
  0xea   : > { %v913_v53 = vpop.eup %912  ;;  %564 = vst [vmem:[%s1046_s18 + $0xb0] sm:$0xff] %v911_v50 }
  0xeb   : > { %v915_v54 = vpop.eup %914  ;;  %572 = vst [vmem:[%s1046_s18 + $0xf0] sm:$0xff] %v913_v53  ;;  %918 = vtanh.f32 %v488_v51 }
  0xec   : > { %v917_v55 = vpop.eup %916  ;;  %549 = vst [vmem:[%s1046_s18 + $0x38] sm:$0xff] %v915_v54  ;;  %920 = vtanh.f32 %v508_v52 }
  0xed   : > { %557 = vst [vmem:[%s1046_s18 + $0x78] sm:$0xff] %v917_v55 }
  0xf1   : > { %v919_v56 = vpop.eup %918 }
  0xf2   : > { %v921_v57 = vpop.eup %920  ;;  %565 = vst [vmem:[%s1046_s18 + $0xb8] sm:$0xff] %v919_v56 }
  0xf3   : > { %573 = vst [vmem:[%s1046_s18 + $0xf8] sm:$0xff] %v921_v57 }
  0xf4 PF: > { %s13_s14 = sadd.s32 1, %s944_s14   ;;  %s1123_s12 = smov %s940_s13 }
  0xf5   : > { %p10_p5 = scmp.ge.s32.totalorder %s13_s14, 10   ;;  %s1124_s13 = smov %s1126_s15 }
  0xf7   :  { %12 = sbr.rel (!%p10_p5) target bundleno = 2 (0x2), region = 68 }

</bundles_post_ra>
